<compile_context>
chip_gen: v7x
topology: tpu7x:2x2x1
jax: 0.10.0
libtpu: 0.0.40
codegen_flags: <defaults>
</compile_context>

<pallas_src>
import functools

import jax
import jax.numpy as jnp
from jax.experimental import pallas as pl
from jax.experimental.pallas import tpu as pltpu

# dtype for MXU inputs and inter-layer activations (f32 accumulation kept).
_COMPUTE_DTYPE = jnp.bfloat16


def _round_up(x, m):
    return (x + m - 1) // m * m


def _vmem_limit(needed_bytes):
    # Tight-ish explicit budget: generous margin over the estimate, but well
    # under v7x's 64 MiB per-TC VMEM.
    return int(min(32 * 1024 * 1024, max(8 * 1024 * 1024, 4 * needed_bytes)))


# -----------------------------------------------------------------------------
# Kernel 1: tiled GEMM + bias + ReLU   (fused 1x1 stem convs)
# -----------------------------------------------------------------------------
def _gemm_bias_relu_kernel(x_ref, w_ref, b_ref, o_ref):
    acc = jnp.dot(x_ref[...], w_ref[...], preferred_element_type=jnp.float32)
    o_ref[...] = jnp.maximum(acc + b_ref[...], 0.0).astype(o_ref.dtype)


def gemm_bias_relu(x, w, bias, out_dtype):
    """x: (M, K), w: (K, N) with BN scale folded in, bias: (N,) -> (M, N)."""
    M, K = x.shape
    K2, N = w.shape
    assert K == K2

    x = x.astype(_COMPUTE_DTYPE)
    w = w.astype(_COMPUTE_DTYPE)
    bias = bias.reshape(1, N).astype(jnp.float32)
    out_bytes = jnp.dtype(out_dtype).itemsize

    def vmem_bytes(tm):
        # double-buffered x/out blocks + resident weight/bias
        return 2 * (tm * K * 2 + tm * N * out_bytes) + (K * N * 2 + N * 4)

    # Largest tile (up to 1024 rows) that still gives >=2 grid steps
    # (megacore / dual-TC) and fits the VMEM budget.
    m128 = _round_up(M, 128)
    tm = 128
    for cand in (1024, 512, 256):
        if m128 >= 2 * cand and vmem_bytes(cand) <= 24 * 1024 * 1024:
            tm = cand
            break

    m_pad = _round_up(M, tm)
    if m_pad != M:
        x = jnp.pad(x, ((0, m_pad - M), (0, 0)))
    grid = (m_pad // tm,)

    out = pl.pallas_call(
        _gemm_bias_relu_kernel,
        out_shape=jax.ShapeDtypeStruct((m_pad, N), out_dtype),
        grid_spec=pltpu.PrefetchScalarGridSpec(
            num_scalar_prefetch=0,
            grid=grid,
            in_specs=[
                pl.BlockSpec((tm, K), lambda i: (i, 0)),
                pl.BlockSpec((K, N), lambda i: (0, 0)),   # weight stays resident
                pl.BlockSpec((1, N), lambda i: (0, 0)),
            ],
            out_specs=pl.BlockSpec((tm, N), lambda i: (i, 0)),
        ),
        compiler_params=pltpu.CompilerParams(
            dimension_semantics=("parallel",),
            vmem_limit_bytes=_vmem_limit(vmem_bytes(tm)),
        ),
        cost_estimate=pl.CostEstimate(
            flops=2 * m_pad * K * N,
            transcendentals=0,
            bytes_accessed=m_pad * K * 2 + K * N * 2 + m_pad * N * out_bytes,
        ),
    )(x, w, bias)
    return out[:M] if m_pad != M else out


# -----------------------------------------------------------------------------
# Kernel 2: direct conv (+BN bias +ReLU) as ONE stacked-tap matmul per image.
#   x_planes: (B*P, Hs, Ws, C)  -- P parity planes per image (P=1 for stride 1)
#   w_taps  : (T*C, N)          -- tap-major weight rows, BN scale folded in
#   taps    : static tuple of (plane, row_off, col_off) per tap
# -----------------------------------------------------------------------------
def _direct_conv_kernel(x_ref, w_ref, b_ref, o_ref, *, taps, ho, wo, bt, planes):
    cin = x_ref.shape[-1]
    t = len(taps)
    for bi in range(bt):
        # Stack all taps along the channel (lane) axis -> (ho, wo, T*cin),
        # then one MXU matmul with K = T*cin (accumulation inside the MXU).
        pieces = [x_ref[bi * planes + p, r:r + ho, c:c + wo, :]
                  for (p, r, c) in taps]
        xs = jnp.concatenate(pieces, axis=-1)
        xs = xs.reshape(ho * wo, t * cin)
        acc = jnp.dot(xs, w_ref[...], preferred_element_type=jnp.float32)
        o_ref[bi] = jnp.maximum(acc + b_ref[...], 0.0).astype(o_ref.dtype)


def direct_conv_bn_relu(x_planes, w_taps, bias, taps, batch, ho, wo, out_dtype):
    x_planes = x_planes.astype(_COMPUTE_DTYPE)
    w_taps = w_taps.astype(_COMPUTE_DTYPE)
    bp, hs, ws, cin = x_planes.shape
    assert bp % batch == 0
    planes = bp // batch
    t = len(taps)
    n = w_taps.shape[-1]
    assert w_taps.shape[0] == t * cin
    bias2 = bias.reshape(1, n).astype(jnp.float32)
    out_bytes = jnp.dtype(out_dtype).itemsize

    # Batch tiling: amortize per-step overhead while keeping >=2 grid steps.
    bt = 1
    for cand in (4, 2):
        if batch % cand == 0 and batch // cand >= 2:
            bt = cand
            break
    grid_steps = batch // bt

    in_block = bt * planes * hs * ws * cin * 2
    out_block = bt * ho * wo * n * out_bytes
    resident = t * cin * n * 2 + n * 4
    scratch = t * ho * wo * cin * 2 + ho * wo * n * 4   # stacked taps + f32 acc
    vmem_need = 2 * (in_block + out_block) + 2 * resident + scratch

    kern = functools.partial(_direct_conv_kernel, taps=taps, ho=ho, wo=wo,
                             bt=bt, planes=planes)
    out = pl.pallas_call(
        kern,
        out_shape=jax.ShapeDtypeStruct((batch, ho * wo, n), out_dtype),
        grid_spec=pltpu.PrefetchScalarGridSpec(
            num_scalar_prefetch=0,
            grid=(grid_steps,),
            in_specs=[
                pl.BlockSpec((bt * planes, hs, ws, cin), lambda b: (b, 0, 0, 0)),
                pl.BlockSpec((t * cin, n), lambda b: (0, 0)),   # resident weights
                pl.BlockSpec((1, n), lambda b: (0, 0)),
            ],
            out_specs=pl.BlockSpec((bt, ho * wo, n), lambda b: (b, 0, 0)),
        ),
        compiler_params=pltpu.CompilerParams(
            dimension_semantics=("parallel",),
            vmem_limit_bytes=_vmem_limit(vmem_need),
        ),
        cost_estimate=pl.CostEstimate(
            flops=2 * batch * ho * wo * t * cin * n,
            transcendentals=0,
            bytes_accessed=batch * (planes * hs * ws * cin * 2
                                    + ho * wo * n * out_bytes) + resident,
        ),
    )(x_planes, w_taps, bias2)
    return out.reshape(batch, ho, wo, n)


# -----------------------------------------------------------------------------
# Kernel 3: 3x3 / stride-2 / pad-1 max pool over the 4 parity planes.
# -----------------------------------------------------------------------------
def _maxpool_kernel(x_ref, o_ref, *, taps, ho, wo):
    p0, r0, c0 = taps[0]
    acc = x_ref[p0, r0:r0 + ho, c0:c0 + wo, :]
    for (p, r, c) in taps[1:]:
        acc = jnp.maximum(acc, x_ref[p, r:r + ho, c:c + wo, :])
    o_ref[0] = acc.astype(o_ref.dtype)


def maxpool_3x3_s2_p1(x_nhwc):
    batch, h, w, c = x_nhwc.shape
    ho = (h - 1) // 2 + 1
    wo = (w - 1) // 2 + 1
    xs = _space_to_depth_pad(x_nhwc, ho, wo, pad_value=float("-inf"))
    taps = tuple(((i % 2) * 2 + (j % 2), i // 2, j // 2)
                 for i in range(3) for j in range(3))
    kern = functools.partial(_maxpool_kernel, taps=taps, ho=ho, wo=wo)

    ebytes = jnp.dtype(x_nhwc.dtype).itemsize
    in_block = 4 * (ho + 1) * (wo + 1) * c * ebytes
    out_block = ho * wo * c * ebytes
    out = pl.pallas_call(
        kern,
        out_shape=jax.ShapeDtypeStruct((batch, ho, wo, c), x_nhwc.dtype),
        grid_spec=pltpu.PrefetchScalarGridSpec(
            num_scalar_prefetch=0,
            grid=(batch,),
            in_specs=[pl.BlockSpec((4, ho + 1, wo + 1, c), lambda b: (b, 0, 0, 0))],
            out_specs=pl.BlockSpec((1, ho, wo, c), lambda b: (b, 0, 0, 0)),
        ),
        compiler_params=pltpu.CompilerParams(
            dimension_semantics=("parallel",),
            vmem_limit_bytes=_vmem_limit(2 * (in_block + out_block)),
        ),
        cost_estimate=pl.CostEstimate(
            flops=0, transcendentals=0,
            bytes_accessed=batch * (in_block + out_block),
        ),
    )(xs)
    return out


# -----------------------------------------------------------------------------
# Layout glue (plain JAX, single pass): padding + parity space-to-depth.
# -----------------------------------------------------------------------------
def _space_to_depth_pad(x, ho, wo, pad_value):
    """Pad for a 3x3/stride-2/pad-1 window and split into 4 parity planes.

    Returns (B*4, ho+1, wo+1, C); plane index = row_parity*2 + col_parity.
    """
    batch, h, w, c = x.shape
    hp, wp = 2 * ho + 2, 2 * wo + 2
    xp = jnp.pad(
        x,
        ((0, 0), (1, hp - h - 1), (1, wp - w - 1), (0, 0)),
        constant_values=pad_value,
    )
    xr = xp.reshape(batch, ho + 1, 2, wo + 1, 2, c)
    xr = jnp.transpose(xr, (0, 2, 4, 1, 3, 5))
    return xr.reshape(batch * 4, ho + 1, wo + 1, c)


# -----------------------------------------------------------------------------
# BasicConv2d = Conv(bias=False) + BatchNorm(eval, folded) + ReLU.
# Params hold ONLY arrays (safe under jit); geometry is static Python ints.
# -----------------------------------------------------------------------------
def _make_conv(key, cin, cout, kh, kw, cin_pad=None):
    k1, k2, k3, k4, k5 = jax.random.split(key, 5)
    fan_in = kh * kw * cin
    w = jax.random.normal(k1, (kh, kw, cin, cout), jnp.float32) / jnp.sqrt(
        jnp.float32(fan_in))
    gamma = 1.0 + 0.1 * jax.random.normal(k2, (cout,), jnp.float32)
    beta = 0.1 * jax.random.normal(k3, (cout,), jnp.float32)
    running_mean = 0.1 * jax.random.normal(k4, (cout,), jnp.float32)
    running_var = 1.0 + 0.1 * jnp.abs(jax.random.normal(k5, (cout,), jnp.float32))
    eps = 1e-5
    scale = gamma / jnp.sqrt(running_var + eps)
    bias = beta - running_mean * scale
    w_folded = w * scale                       # fold BN scale (f32)
    if cin_pad is not None and cin_pad > cin:  # zero rows for padded channels
        w_folded = jnp.pad(w_folded, ((0, 0), (0, 0), (0, cin_pad - cin), (0, 0)))
        cin = cin_pad
    return {
        "w_taps": w_folded.reshape(kh * kw * cin, cout).astype(_COMPUTE_DTYPE),
        "bias": bias.astype(jnp.float32),
    }


def conv_bn_relu(x_nhwc, p, *, kh, kw, stride, ph, pw, out_dtype):
    """Geometry args are static Python ints (never traced)."""
    batch, h, w, _ = x_nhwc.shape
    w_taps, bias = p["w_taps"], p["bias"]
    n = w_taps.shape[-1]

    if kh == 1 and kw == 1 and stride == 1:
        out = gemm_bias_relu(x_nhwc.reshape(batch * h * w, x_nhwc.shape[-1]),
                             w_taps, bias, out_dtype)
        return out.reshape(batch, h, w, n)

    if stride == 1:
        # (1,7) / (7,1) convs: pad once, stacked-tap matmul inside the kernel.
        ho = h + 2 * ph - kh + 1
        wo = w + 2 * pw - kw + 1
        xp = jnp.pad(x_nhwc.astype(_COMPUTE_DTYPE),
                     ((0, 0), (ph, ph), (pw, pw), (0, 0)))
        taps = tuple((0, i, j) for i in range(kh) for j in range(kw))
        return direct_conv_bn_relu(xp, w_taps, bias, taps, batch, ho, wo, out_dtype)

    # 3x3 / stride 2 / pad 1: parity space-to-depth, 9-tap stacked matmul.
    assert (kh, kw, stride, ph, pw) == (3, 3, 2, 1, 1)
    ho = (h - 1) // 2 + 1
    wo = (w - 1) // 2 + 1
    xs = _space_to_depth_pad(x_nhwc.astype(_COMPUTE_DTYPE), ho, wo, 0.0)
    taps = tuple(((i % 2) * 2 + (j % 2), i // 2, j // 2)
                 for i in range(kh) for j in range(kw))
    return direct_conv_bn_relu(xs, w_taps, bias, taps, batch, ho, wo, out_dtype)


# -----------------------------------------------------------------------------
# InceptionD
# -----------------------------------------------------------------------------
def init_inception_d(key, in_channels):
    ks = jax.random.split(key, 6)
    b3_1 = _make_conv(ks[0], in_channels, 64, 1, 1)
    # b3 branch input is padded to 128 channels (upper 64 are zero) -> zero rows.
    b3_2 = _make_conv(ks[1], 64, 128, 3, 3, cin_pad=128)
    b7_1 = _make_conv(ks[2], in_channels, 128, 1, 1)
    b7_2 = _make_conv(ks[3], 128, 128, 1, 7)
    b7_3 = _make_conv(ks[4], 128, 128, 7, 1)
    b7_4 = _make_conv(ks[5], 128, 128, 3, 3)

    # Fused 1x1 stem, lane-aligned: [b7 (128) | b3 (64) | zero pad (64)] = 256.
    stem_w = jnp.concatenate(
        [b7_1["w_taps"], b3_1["w_taps"],
         jnp.zeros((in_channels, 64), _COMPUTE_DTYPE)], axis=1)
    stem_b = jnp.concatenate(
        [b7_1["bias"], b3_1["bias"], jnp.zeros((64,), jnp.float32)], axis=0)

    return {
        "stem_w": stem_w, "stem_b": stem_b,
        "b3x3_2": b3_2, "b7_2": b7_2, "b7_3": b7_3, "b7_4": b7_4,
    }


def inception_d_forward(x_nchw, params):
    x = jnp.transpose(x_nchw, (0, 2, 3, 1))  # NCHW -> NHWC (channels on lanes)
    batch, h, w, cin = x.shape

    # Fused 1x1 stems: x read once, 256 lane-dense output channels.
    stem = gemm_bias_relu(x.reshape(batch * h * w, cin),
                          params["stem_w"], params["stem_b"], _COMPUTE_DTYPE)
    stem = stem.reshape(batch, h, w, 256)
    b7 = stem[..., :128]     # lane-aligned free slice
    b3 = stem[..., 128:]     # 128 channels (upper 64 are zero), lane-aligned

    # branch3x3: 1x1 (above) -> 3x3 stride 2 pad 1
    b3 = conv_bn_relu(b3, params["b3x3_2"], kh=3, kw=3, stride=2, ph=1, pw=1,
                      out_dtype=jnp.float32)

    # branch7x7x3: 1x1 (above) -> (1,7) -> (7,1) -> 3x3 stride 2 pad 1
    b7 = conv_bn_relu(b7, params["b7_2"], kh=1, kw=7, stride=1, ph=0, pw=3,
                      out_dtype=_COMPUTE_DTYPE)
    b7 = conv_bn_relu(b7, params["b7_3"], kh=7, kw=1, stride=1, ph=3, pw=0,
                      out_dtype=_COMPUTE_DTYPE)
    b7 = conv_bn_relu(b7, params["b7_4"], kh=3, kw=3, stride=2, ph=1, pw=1,
                      out_dtype=jnp.float32)

    # branch_pool: MaxPool2d(kernel=3, stride=2, padding=1), kept in f32.
    bp = maxpool_3x3_s2_p1(x)

    out = jnp.concatenate([b3, b7, bp.astype(jnp.float32)], axis=-1)
    return jnp.transpose(out, (0, 3, 1, 2))  # NHWC -> NCHW


if __name__ == "__main__":
    key = jax.random.PRNGKey(0)
    kx, kp = jax.random.split(key)
    B, C, H, W = 2, 4, 16, 16
    x = jax.random.normal(kx, (B, C, H, W), jnp.float32)
    params = init_inception_d(kp, C)

    fwd = jax.jit(inception_d_forward)
    out = jax.block_until_ready(fwd(x, params))

    expected_shape = (B, 128 + 128 + C, H // 2, W // 2)
    assert out.shape == expected_shape, (out.shape, expected_shape)
    assert bool(jnp.all(jnp.isfinite(out)))
    print("KERNEL_OK")
</pallas_src>

<mosaic_0001>
module attributes {stable_mosaic.version = 11 : i64} {
  func.func @_maxpool_kernel(%arg0: i32, %arg1: memref<4x9x9x4xf32, #tpu.memory_space<vmem>>, %arg2: memref<1x8x8x4xf32, #tpu.memory_space<vmem>>) attributes {dimension_semantics = [#tpu.dimension_semantics<parallel>], iteration_bounds = array<i64: 2>, scalar_prefetch = 0 : i64, scratch_operands = 0 : i64, tpu.core_type = #tpu.core_type<tc>, window_params = [{transform_indices = @transform_0, window_bounds = array<i64: 4, 9, 9, 4>}, {transform_indices = @transform_1, window_bounds = array<i64: 1, 8, 8, 4>}]} {
    %c0 = arith.constant 0 : index
    %c0_0 = arith.constant 0 : index
    %c0_1 = arith.constant 0 : index
    %c0_2 = arith.constant 0 : index
    %0 = vector.load %arg1[%c0, %c0_0, %c0_1, %c0_2] : memref<4x9x9x4xf32, #tpu.memory_space<vmem>>, vector<1x8x8x4xf32>
    %1 = vector.shape_cast %0 : vector<1x8x8x4xf32> to vector<8x8x4xf32>
    %c1 = arith.constant 1 : index
    %c0_3 = arith.constant 0 : index
    %c0_4 = arith.constant 0 : index
    %c0_5 = arith.constant 0 : index
    %2 = vector.load %arg1[%c1, %c0_3, %c0_4, %c0_5] : memref<4x9x9x4xf32, #tpu.memory_space<vmem>>, vector<1x8x8x4xf32>
    %3 = vector.shape_cast %2 : vector<1x8x8x4xf32> to vector<8x8x4xf32>
    %4 = arith.maximumf %1, %3 : vector<8x8x4xf32>
    %c0_6 = arith.constant 0 : index
    %c0_7 = arith.constant 0 : index
    %c1_8 = arith.constant 1 : index
    %c0_9 = arith.constant 0 : index
    %5 = vector.load %arg1[%c0_6, %c0_7, %c1_8, %c0_9] : memref<4x9x9x4xf32, #tpu.memory_space<vmem>>, vector<1x8x8x4xf32>
    %6 = vector.shape_cast %5 : vector<1x8x8x4xf32> to vector<8x8x4xf32>
    %7 = arith.maximumf %4, %6 : vector<8x8x4xf32>
    %c2 = arith.constant 2 : index
    %c0_10 = arith.constant 0 : index
    %c0_11 = arith.constant 0 : index
    %c0_12 = arith.constant 0 : index
    %8 = vector.load %arg1[%c2, %c0_10, %c0_11, %c0_12] : memref<4x9x9x4xf32, #tpu.memory_space<vmem>>, vector<1x8x8x4xf32>
    %9 = vector.shape_cast %8 : vector<1x8x8x4xf32> to vector<8x8x4xf32>
    %10 = arith.maximumf %7, %9 : vector<8x8x4xf32>
    %c3 = arith.constant 3 : index
    %c0_13 = arith.constant 0 : index
    %c0_14 = arith.constant 0 : index
    %c0_15 = arith.constant 0 : index
    %11 = vector.load %arg1[%c3, %c0_13, %c0_14, %c0_15] : memref<4x9x9x4xf32, #tpu.memory_space<vmem>>, vector<1x8x8x4xf32>
    %12 = vector.shape_cast %11 : vector<1x8x8x4xf32> to vector<8x8x4xf32>
    %13 = arith.maximumf %10, %12 : vector<8x8x4xf32>
    %c2_16 = arith.constant 2 : index
    %c0_17 = arith.constant 0 : index
    %c1_18 = arith.constant 1 : index
    %c0_19 = arith.constant 0 : index
    %14 = vector.load %arg1[%c2_16, %c0_17, %c1_18, %c0_19] : memref<4x9x9x4xf32, #tpu.memory_space<vmem>>, vector<1x8x8x4xf32>
    %15 = vector.shape_cast %14 : vector<1x8x8x4xf32> to vector<8x8x4xf32>
    %16 = arith.maximumf %13, %15 : vector<8x8x4xf32>
    %c0_20 = arith.constant 0 : index
    %c1_21 = arith.constant 1 : index
    %c0_22 = arith.constant 0 : index
    %c0_23 = arith.constant 0 : index
    %17 = vector.load %arg1[%c0_20, %c1_21, %c0_22, %c0_23] : memref<4x9x9x4xf32, #tpu.memory_space<vmem>>, vector<1x8x8x4xf32>
    %18 = vector.shape_cast %17 : vector<1x8x8x4xf32> to vector<8x8x4xf32>
    %19 = arith.maximumf %16, %18 : vector<8x8x4xf32>
    %c1_24 = arith.constant 1 : index
    %c1_25 = arith.constant 1 : index
    %c0_26 = arith.constant 0 : index
    %c0_27 = arith.constant 0 : index
    %20 = vector.load %arg1[%c1_24, %c1_25, %c0_26, %c0_27] : memref<4x9x9x4xf32, #tpu.memory_space<vmem>>, vector<1x8x8x4xf32>
    %21 = vector.shape_cast %20 : vector<1x8x8x4xf32> to vector<8x8x4xf32>
    %22 = arith.maximumf %19, %21 : vector<8x8x4xf32>
    %c0_28 = arith.constant 0 : index
    %c1_29 = arith.constant 1 : index
    %c1_30 = arith.constant 1 : index
    %c0_31 = arith.constant 0 : index
    %23 = vector.load %arg1[%c0_28, %c1_29, %c1_30, %c0_31] : memref<4x9x9x4xf32, #tpu.memory_space<vmem>>, vector<1x8x8x4xf32>
    %24 = vector.shape_cast %23 : vector<1x8x8x4xf32> to vector<8x8x4xf32>
    %25 = arith.maximumf %22, %24 : vector<8x8x4xf32>
    %c0_32 = arith.constant 0 : index
    %c0_33 = arith.constant 0 : index
    %c0_34 = arith.constant 0 : index
    %c0_35 = arith.constant 0 : index
    %26 = vector.load %arg2[%c0_32, %c0_33, %c0_34, %c0_35] : memref<1x8x8x4xf32, #tpu.memory_space<vmem>>, vector<1x8x8x4xf32>
    %27 = vector.shape_cast %26 : vector<1x8x8x4xf32> to vector<8x8x4xf32>
    %28 = vector.shape_cast %25 : vector<8x8x4xf32> to vector<1x8x8x4xf32>
    tpu.vector_store %arg2[%c0_32, %c0_33, %c0_34, %c0_35], %28 {strides = array<i32>} : memref<1x8x8x4xf32, #tpu.memory_space<vmem>>, vector<1x8x8x4xf32>,
    return
  }
  func.func @transform_0(%arg0: i32) -> (i32, i32, i32, i32) {
    %c0_i32 = arith.constant 0 : i32
    %c0_i32_0 = arith.constant 0 : i32
    %c0_i32_1 = arith.constant 0 : i32
    %c0_i32_2 = arith.constant 0 : i32
    return %arg0, %c0_i32, %c0_i32_0, %c0_i32_1 : i32, i32, i32, i32
  }
  func.func @transform_1(%arg0: i32) -> (i32, i32, i32, i32) {
    %c0_i32 = arith.constant 0 : i32
    %c0_i32_0 = arith.constant 0 : i32
    %c0_i32_1 = arith.constant 0 : i32
    %c0_i32_2 = arith.constant 0 : i32
    return %arg0, %c0_i32, %c0_i32_0, %c0_i32_1 : i32, i32, i32, i32
  }
}

module attributes {stable_mosaic.version = 11 : i64} {
  func.func @_gemm_bias_relu_kernel(%arg0: i32, %arg1: memref<256x4xbf16, #tpu.memory_space<vmem>>, %arg2: memref<4x256xbf16, #tpu.memory_space<vmem>>, %arg3: memref<1x256xf32, #tpu.memory_space<vmem>>, %arg4: memref<256x256xbf16, #tpu.memory_space<vmem>>) attributes {dimension_semantics = [#tpu.dimension_semantics<parallel>], iteration_bounds = array<i64: 2>, scalar_prefetch = 0 : i64, scratch_operands = 0 : i64, tpu.core_type = #tpu.core_type<tc>, window_params = [{transform_indices = @transform_0, window_bounds = array<i64: 256, 4>}, {pipeline_mode = #tpu.pipeline_mode<synchronous>, transform_indices = @transform_1, window_bounds = array<i64: 4, 256>}, {pipeline_mode = #tpu.pipeline_mode<synchronous>, transform_indices = @transform_2, window_bounds = array<i64: 1, 256>}, {transform_indices = @transform_3, window_bounds = array<i64: 256, 256>}]} {
    %c0 = arith.constant 0 : index
    %c0_0 = arith.constant 0 : index
    %0 = vector.load %arg1[%c0, %c0_0] : memref<256x4xbf16, #tpu.memory_space<vmem>>, vector<256x4xbf16>
    %c0_1 = arith.constant 0 : index
    %c0_2 = arith.constant 0 : index
    %1 = vector.load %arg2[%c0_1, %c0_2] : memref<4x256xbf16, #tpu.memory_space<vmem>>, vector<4x256xbf16>
    %cst = arith.constant dense<0.000000e+00> : vector<256x256xf32>
    %2 = tpu.matmul %0, %1, %cst {dimension_numbers = #tpu.dot_dimension_numbers<[1], [0], [0], [1], [0, 0, 1, 1], [], []>} : vector<256x4xbf16>, vector<4x256xbf16>, vector<256x256xf32> -> vector<256x256xf32>
    %c0_3 = arith.constant 0 : index
    %c0_4 = arith.constant 0 : index
    %3 = vector.load %arg3[%c0_3, %c0_4] : memref<1x256xf32, #tpu.memory_space<vmem>>, vector<1x256xf32>
    %4 = vector.broadcast %3 : vector<1x256xf32> to vector<256x256xf32>
    %5 = arith.addf %2, %4 : vector<256x256xf32>
    %cst_5 = arith.constant 0.000000e+00 : f32
    %6 = vector.broadcast %cst_5 : f32 to vector<256x256xf32>
    %7 = arith.maximumf %5, %6 : vector<256x256xf32>
    %8 = arith.truncf %7 : vector<256x256xf32> to vector<256x256xbf16>
    %c0_6 = arith.constant 0 : index
    %c0_7 = arith.constant 0 : index
    %9 = vector.load %arg4[%c0_6, %c0_7] : memref<256x256xbf16, #tpu.memory_space<vmem>>, vector<256x256xbf16>
    tpu.vector_store %arg4[%c0_6, %c0_7], %8 {strides = array<i32>} : memref<256x256xbf16, #tpu.memory_space<vmem>>, vector<256x256xbf16>,
    return
  }
  func.func @transform_0(%arg0: i32) -> (i32, i32) {
    %c0_i32 = arith.constant 0 : i32
    %c0_i32_0 = arith.constant 0 : i32
    return %arg0, %c0_i32 : i32, i32
  }
  func.func @transform_1(%arg0: i32) -> (i32, i32) {
    %c0_i32 = arith.constant 0 : i32
    %c0_i32_0 = arith.constant 0 : i32
    %c0_i32_1 = arith.constant 0 : i32
    return %c0_i32, %c0_i32_0 : i32, i32
  }
  func.func @transform_2(%arg0: i32) -> (i32, i32) {
    %c0_i32 = arith.constant 0 : i32
    %c0_i32_0 = arith.constant 0 : i32
    %c0_i32_1 = arith.constant 0 : i32
    return %c0_i32, %c0_i32_0 : i32, i32
  }
  func.func @transform_3(%arg0: i32) -> (i32, i32) {
    %c0_i32 = arith.constant 0 : i32
    %c0_i32_0 = arith.constant 0 : i32
    return %arg0, %c0_i32 : i32, i32
  }
}

module attributes {stable_mosaic.version = 11 : i64} {
  func.func @_direct_conv_kernel(%arg0: i32, %arg1: memref<1x16x22x128xbf16, #tpu.memory_space<vmem>>, %arg2: memref<896x128xbf16, #tpu.memory_space<vmem>>, %arg3: memref<1x128xf32, #tpu.memory_space<vmem>>, %arg4: memref<1x256x128xbf16, #tpu.memory_space<vmem>>) attributes {dimension_semantics = [#tpu.dimension_semantics<parallel>], iteration_bounds = array<i64: 2>, scalar_prefetch = 0 : i64, scratch_operands = 0 : i64, tpu.core_type = #tpu.core_type<tc>, window_params = [{transform_indices = @transform_0, window_bounds = array<i64: 1, 16, 22, 128>}, {pipeline_mode = #tpu.pipeline_mode<synchronous>, transform_indices = @transform_1, window_bounds = array<i64: 896, 128>}, {pipeline_mode = #tpu.pipeline_mode<synchronous>, transform_indices = @transform_2, window_bounds = array<i64: 1, 128>}, {transform_indices = @transform_3, window_bounds = array<i64: 1, 256, 128>}]} {
    %c0 = arith.constant 0 : index
    %c0_0 = arith.constant 0 : index
    %c0_1 = arith.constant 0 : index
    %c0_2 = arith.constant 0 : index
    %0 = vector.load %arg1[%c0, %c0_0, %c0_1, %c0_2] : memref<1x16x22x128xbf16, #tpu.memory_space<vmem>>, vector<1x16x16x128xbf16>
    %1 = vector.shape_cast %0 : vector<1x16x16x128xbf16> to vector<16x16x128xbf16>
    %c0_3 = arith.constant 0 : index
    %c0_4 = arith.constant 0 : index
    %c1 = arith.constant 1 : index
    %c0_5 = arith.constant 0 : index
    %2 = vector.load %arg1[%c0_3, %c0_4, %c1, %c0_5] : memref<1x16x22x128xbf16, #tpu.memory_space<vmem>>, vector<1x16x16x128xbf16>
    %3 = vector.shape_cast %2 : vector<1x16x16x128xbf16> to vector<16x16x128xbf16>
    %c0_6 = arith.constant 0 : index
    %c0_7 = arith.constant 0 : index
    %c2 = arith.constant 2 : index
    %c0_8 = arith.constant 0 : index
    %4 = vector.load %arg1[%c0_6, %c0_7, %c2, %c0_8] : memref<1x16x22x128xbf16, #tpu.memory_space<vmem>>, vector<1x16x16x128xbf16>
    %5 = vector.shape_cast %4 : vector<1x16x16x128xbf16> to vector<16x16x128xbf16>
    %c0_9 = arith.constant 0 : index
    %c0_10 = arith.constant 0 : index
    %c3 = arith.constant 3 : index
    %c0_11 = arith.constant 0 : index
    %6 = vector.load %arg1[%c0_9, %c0_10, %c3, %c0_11] : memref<1x16x22x128xbf16, #tpu.memory_space<vmem>>, vector<1x16x16x128xbf16>
    %7 = vector.shape_cast %6 : vector<1x16x16x128xbf16> to vector<16x16x128xbf16>
    %c0_12 = arith.constant 0 : index
    %c0_13 = arith.constant 0 : index
    %c4 = arith.constant 4 : index
    %c0_14 = arith.constant 0 : index
    %8 = vector.load %arg1[%c0_12, %c0_13, %c4, %c0_14] : memref<1x16x22x128xbf16, #tpu.memory_space<vmem>>, vector<1x16x16x128xbf16>
    %9 = vector.shape_cast %8 : vector<1x16x16x128xbf16> to vector<16x16x128xbf16>
    %c0_15 = arith.constant 0 : index
    %c0_16 = arith.constant 0 : index
    %c5 = arith.constant 5 : index
    %c0_17 = arith.constant 0 : index
    %10 = vector.load %arg1[%c0_15, %c0_16, %c5, %c0_17] : memref<1x16x22x128xbf16, #tpu.memory_space<vmem>>, vector<1x16x16x128xbf16>
    %11 = vector.shape_cast %10 : vector<1x16x16x128xbf16> to vector<16x16x128xbf16>
    %c0_18 = arith.constant 0 : index
    %c0_19 = arith.constant 0 : index
    %c6 = arith.constant 6 : index
    %c0_20 = arith.constant 0 : index
    %12 = vector.load %arg1[%c0_18, %c0_19, %c6, %c0_20] : memref<1x16x22x128xbf16, #tpu.memory_space<vmem>>, vector<1x16x16x128xbf16>
    %13 = vector.shape_cast %12 : vector<1x16x16x128xbf16> to vector<16x16x128xbf16>
    %14 = tpu.concatenate %1, %3, %5, %7, %9, %11, %13 in 2 : vector<16x16x128xbf16>, vector<16x16x128xbf16>, vector<16x16x128xbf16>, vector<16x16x128xbf16>, vector<16x16x128xbf16>, vector<16x16x128xbf16>, vector<16x16x128xbf16> -> vector<16x16x896xbf16>
    %15 = vector.shape_cast %14 : vector<16x16x896xbf16> to vector<256x896xbf16>
    %c0_21 = arith.constant 0 : index
    %c0_22 = arith.constant 0 : index
    %16 = vector.load %arg2[%c0_21, %c0_22] : memref<896x128xbf16, #tpu.memory_space<vmem>>, vector<896x128xbf16>
    %cst = arith.constant dense<0.000000e+00> : vector<256x128xf32>
    %17 = tpu.matmul %15, %16, %cst {dimension_numbers = #tpu.dot_dimension_numbers<[1], [0], [0], [1], [0, 0, 1, 1], [], []>} : vector<256x896xbf16>, vector<896x128xbf16>, vector<256x128xf32> -> vector<256x128xf32>
    %c0_23 = arith.constant 0 : index
    %c0_24 = arith.constant 0 : index
    %18 = vector.load %arg3[%c0_23, %c0_24] : memref<1x128xf32, #tpu.memory_space<vmem>>, vector<1x128xf32>
    %19 = vector.broadcast %18 : vector<1x128xf32> to vector<256x128xf32>
    %20 = arith.addf %17, %19 : vector<256x128xf32>
    %cst_25 = arith.constant 0.000000e+00 : f32
    %21 = vector.broadcast %cst_25 : f32 to vector<256x128xf32>
    %22 = arith.maximumf %20, %21 : vector<256x128xf32>
    %23 = arith.truncf %22 : vector<256x128xf32> to vector<256x128xbf16>
    %c0_26 = arith.constant 0 : index
    %c0_27 = arith.constant 0 : index
    %c0_28 = arith.constant 0 : index
    %24 = vector.load %arg4[%c0_26, %c0_27, %c0_28] : memref<1x256x128xbf16, #tpu.memory_space<vmem>>, vector<1x256x128xbf16>
    %25 = vector.shape_cast %24 : vector<1x256x128xbf16> to vector<256x128xbf16>
    %26 = vector.shape_cast %23 : vector<256x128xbf16> to vector<1x256x128xbf16>
    tpu.vector_store %arg4[%c0_26, %c0_27, %c0_28], %26 {strides = array<i32>} : memref<1x256x128xbf16, #tpu.memory_space<vmem>>, vector<1x256x128xbf16>,
    return
  }
  func.func @transform_0(%arg0: i32) -> (i32, i32, i32, i32) {
    %c0_i32 = arith.constant 0 : i32
    %c0_i32_0 = arith.constant 0 : i32
    %c0_i32_1 = arith.constant 0 : i32
    %c0_i32_2 = arith.constant 0 : i32
    return %arg0, %c0_i32, %c0_i32_0, %c0_i32_1 : i32, i32, i32, i32
  }
  func.func @transform_1(%arg0: i32) -> (i32, i32) {
    %c0_i32 = arith.constant 0 : i32
    %c0_i32_0 = arith.constant 0 : i32
    %c0_i32_1 = arith.constant 0 : i32
    return %c0_i32, %c0_i32_0 : i32, i32
  }
  func.func @transform_2(%arg0: i32) -> (i32, i32) {
    %c0_i32 = arith.constant 0 : i32
    %c0_i32_0 = arith.constant 0 : i32
    %c0_i32_1 = arith.constant 0 : i32
    return %c0_i32, %c0_i32_0 : i32, i32
  }
  func.func @transform_3(%arg0: i32) -> (i32, i32, i32) {
    %c0_i32 = arith.constant 0 : i32
    %c0_i32_0 = arith.constant 0 : i32
    %c0_i32_1 = arith.constant 0 : i32
    return %arg0, %c0_i32, %c0_i32_0 : i32, i32, i32
  }
}

module attributes {stable_mosaic.version = 11 : i64} {
  func.func @_direct_conv_kernel(%arg0: i32, %arg1: memref<1x22x16x128xbf16, #tpu.memory_space<vmem>>, %arg2: memref<896x128xbf16, #tpu.memory_space<vmem>>, %arg3: memref<1x128xf32, #tpu.memory_space<vmem>>, %arg4: memref<1x256x128xbf16, #tpu.memory_space<vmem>>) attributes {dimension_semantics = [#tpu.dimension_semantics<parallel>], iteration_bounds = array<i64: 2>, scalar_prefetch = 0 : i64, scratch_operands = 0 : i64, tpu.core_type = #tpu.core_type<tc>, window_params = [{transform_indices = @transform_0, window_bounds = array<i64: 1, 22, 16, 128>}, {pipeline_mode = #tpu.pipeline_mode<synchronous>, transform_indices = @transform_1, window_bounds = array<i64: 896, 128>}, {pipeline_mode = #tpu.pipeline_mode<synchronous>, transform_indices = @transform_2, window_bounds = array<i64: 1, 128>}, {transform_indices = @transform_3, window_bounds = array<i64: 1, 256, 128>}]} {
    %c0 = arith.constant 0 : index
    %c0_0 = arith.constant 0 : index
    %c0_1 = arith.constant 0 : index
    %c0_2 = arith.constant 0 : index
    %0 = vector.load %arg1[%c0, %c0_0, %c0_1, %c0_2] : memref<1x22x16x128xbf16, #tpu.memory_space<vmem>>, vector<1x16x16x128xbf16>
    %1 = vector.shape_cast %0 : vector<1x16x16x128xbf16> to vector<16x16x128xbf16>
    %c0_3 = arith.constant 0 : index
    %c1 = arith.constant 1 : index
    %c0_4 = arith.constant 0 : index
    %c0_5 = arith.constant 0 : index
    %2 = vector.load %arg1[%c0_3, %c1, %c0_4, %c0_5] : memref<1x22x16x128xbf16, #tpu.memory_space<vmem>>, vector<1x16x16x128xbf16>
    %3 = vector.shape_cast %2 : vector<1x16x16x128xbf16> to vector<16x16x128xbf16>
    %c0_6 = arith.constant 0 : index
    %c2 = arith.constant 2 : index
    %c0_7 = arith.constant 0 : index
    %c0_8 = arith.constant 0 : index
    %4 = vector.load %arg1[%c0_6, %c2, %c0_7, %c0_8] : memref<1x22x16x128xbf16, #tpu.memory_space<vmem>>, vector<1x16x16x128xbf16>
    %5 = vector.shape_cast %4 : vector<1x16x16x128xbf16> to vector<16x16x128xbf16>
    %c0_9 = arith.constant 0 : index
    %c3 = arith.constant 3 : index
    %c0_10 = arith.constant 0 : index
    %c0_11 = arith.constant 0 : index
    %6 = vector.load %arg1[%c0_9, %c3, %c0_10, %c0_11] : memref<1x22x16x128xbf16, #tpu.memory_space<vmem>>, vector<1x16x16x128xbf16>
    %7 = vector.shape_cast %6 : vector<1x16x16x128xbf16> to vector<16x16x128xbf16>
    %c0_12 = arith.constant 0 : index
    %c4 = arith.constant 4 : index
    %c0_13 = arith.constant 0 : index
    %c0_14 = arith.constant 0 : index
    %8 = vector.load %arg1[%c0_12, %c4, %c0_13, %c0_14] : memref<1x22x16x128xbf16, #tpu.memory_space<vmem>>, vector<1x16x16x128xbf16>
    %9 = vector.shape_cast %8 : vector<1x16x16x128xbf16> to vector<16x16x128xbf16>
    %c0_15 = arith.constant 0 : index
    %c5 = arith.constant 5 : index
    %c0_16 = arith.constant 0 : index
    %c0_17 = arith.constant 0 : index
    %10 = vector.load %arg1[%c0_15, %c5, %c0_16, %c0_17] : memref<1x22x16x128xbf16, #tpu.memory_space<vmem>>, vector<1x16x16x128xbf16>
    %11 = vector.shape_cast %10 : vector<1x16x16x128xbf16> to vector<16x16x128xbf16>
    %c0_18 = arith.constant 0 : index
    %c6 = arith.constant 6 : index
    %c0_19 = arith.constant 0 : index
    %c0_20 = arith.constant 0 : index
    %12 = vector.load %arg1[%c0_18, %c6, %c0_19, %c0_20] : memref<1x22x16x128xbf16, #tpu.memory_space<vmem>>, vector<1x16x16x128xbf16>
    %13 = vector.shape_cast %12 : vector<1x16x16x128xbf16> to vector<16x16x128xbf16>
    %14 = tpu.concatenate %1, %3, %5, %7, %9, %11, %13 in 2 : vector<16x16x128xbf16>, vector<16x16x128xbf16>, vector<16x16x128xbf16>, vector<16x16x128xbf16>, vector<16x16x128xbf16>, vector<16x16x128xbf16>, vector<16x16x128xbf16> -> vector<16x16x896xbf16>
    %15 = vector.shape_cast %14 : vector<16x16x896xbf16> to vector<256x896xbf16>
    %c0_21 = arith.constant 0 : index
    %c0_22 = arith.constant 0 : index
    %16 = vector.load %arg2[%c0_21, %c0_22] : memref<896x128xbf16, #tpu.memory_space<vmem>>, vector<896x128xbf16>
    %cst = arith.constant dense<0.000000e+00> : vector<256x128xf32>
    %17 = tpu.matmul %15, %16, %cst {dimension_numbers = #tpu.dot_dimension_numbers<[1], [0], [0], [1], [0, 0, 1, 1], [], []>} : vector<256x896xbf16>, vector<896x128xbf16>, vector<256x128xf32> -> vector<256x128xf32>
    %c0_23 = arith.constant 0 : index
    %c0_24 = arith.constant 0 : index
    %18 = vector.load %arg3[%c0_23, %c0_24] : memref<1x128xf32, #tpu.memory_space<vmem>>, vector<1x128xf32>
    %19 = vector.broadcast %18 : vector<1x128xf32> to vector<256x128xf32>
    %20 = arith.addf %17, %19 : vector<256x128xf32>
    %cst_25 = arith.constant 0.000000e+00 : f32
    %21 = vector.broadcast %cst_25 : f32 to vector<256x128xf32>
    %22 = arith.maximumf %20, %21 : vector<256x128xf32>
    %23 = arith.truncf %22 : vector<256x128xf32> to vector<256x128xbf16>
    %c0_26 = arith.constant 0 : index
    %c0_27 = arith.constant 0 : index
    %c0_28 = arith.constant 0 : index
    %24 = vector.load %arg4[%c0_26, %c0_27, %c0_28] : memref<1x256x128xbf16, #tpu.memory_space<vmem>>, vector<1x256x128xbf16>
    %25 = vector.shape_cast %24 : vector<1x256x128xbf16> to vector<256x128xbf16>
    %26 = vector.shape_cast %23 : vector<256x128xbf16> to vector<1x256x128xbf16>
    tpu.vector_store %arg4[%c0_26, %c0_27, %c0_28], %26 {strides = array<i32>} : memref<1x256x128xbf16, #tpu.memory_space<vmem>>, vector<1x256x128xbf16>,
    return
  }
  func.func @transform_0(%arg0: i32) -> (i32, i32, i32, i32) {
    %c0_i32 = arith.constant 0 : i32
    %c0_i32_0 = arith.constant 0 : i32
    %c0_i32_1 = arith.constant 0 : i32
    %c0_i32_2 = arith.constant 0 : i32
    return %arg0, %c0_i32, %c0_i32_0, %c0_i32_1 : i32, i32, i32, i32
  }
  func.func @transform_1(%arg0: i32) -> (i32, i32) {
    %c0_i32 = arith.constant 0 : i32
    %c0_i32_0 = arith.constant 0 : i32
    %c0_i32_1 = arith.constant 0 : i32
    return %c0_i32, %c0_i32_0 : i32, i32
  }
  func.func @transform_2(%arg0: i32) -> (i32, i32) {
    %c0_i32 = arith.constant 0 : i32
    %c0_i32_0 = arith.constant 0 : i32
    %c0_i32_1 = arith.constant 0 : i32
    return %c0_i32, %c0_i32_0 : i32, i32
  }
  func.func @transform_3(%arg0: i32) -> (i32, i32, i32) {
    %c0_i32 = arith.constant 0 : i32
    %c0_i32_0 = arith.constant 0 : i32
    %c0_i32_1 = arith.constant 0 : i32
    return %arg0, %c0_i32, %c0_i32_0 : i32, i32, i32
  }
}

module attributes {stable_mosaic.version = 11 : i64} {
  func.func @_direct_conv_kernel(%arg0: i32, %arg1: memref<4x9x9x128xbf16, #tpu.memory_space<vmem>>, %arg2: memref<1152x128xbf16, #tpu.memory_space<vmem>>, %arg3: memref<1x128xf32, #tpu.memory_space<vmem>>, %arg4: memref<1x64x128xf32, #tpu.memory_space<vmem>>) attributes {dimension_semantics = [#tpu.dimension_semantics<parallel>], iteration_bounds = array<i64: 2>, scalar_prefetch = 0 : i64, scratch_operands = 0 : i64, tpu.core_type = #tpu.core_type<tc>, window_params = [{transform_indices = @transform_0, window_bounds = array<i64: 4, 9, 9, 128>}, {pipeline_mode = #tpu.pipeline_mode<synchronous>, transform_indices = @transform_1, window_bounds = array<i64: 1152, 128>}, {pipeline_mode = #tpu.pipeline_mode<synchronous>, transform_indices = @transform_2, window_bounds = array<i64: 1, 128>}, {transform_indices = @transform_3, window_bounds = array<i64: 1, 64, 128>}]} {
    %c0 = arith.constant 0 : index
    %c0_0 = arith.constant 0 : index
    %c0_1 = arith.constant 0 : index
    %c0_2 = arith.constant 0 : index
    %0 = vector.load %arg1[%c0, %c0_0, %c0_1, %c0_2] : memref<4x9x9x128xbf16, #tpu.memory_space<vmem>>, vector<1x8x8x128xbf16>
    %1 = vector.shape_cast %0 : vector<1x8x8x128xbf16> to vector<8x8x128xbf16>
    %c1 = arith.constant 1 : index
    %c0_3 = arith.constant 0 : index
    %c0_4 = arith.constant 0 : index
    %c0_5 = arith.constant 0 : index
    %2 = vector.load %arg1[%c1, %c0_3, %c0_4, %c0_5] : memref<4x9x9x128xbf16, #tpu.memory_space<vmem>>, vector<1x8x8x128xbf16>
    %3 = vector.shape_cast %2 : vector<1x8x8x128xbf16> to vector<8x8x128xbf16>
    %c0_6 = arith.constant 0 : index
    %c0_7 = arith.constant 0 : index
    %c1_8 = arith.constant 1 : index
    %c0_9 = arith.constant 0 : index
    %4 = vector.load %arg1[%c0_6, %c0_7, %c1_8, %c0_9] : memref<4x9x9x128xbf16, #tpu.memory_space<vmem>>, vector<1x8x8x128xbf16>
    %5 = vector.shape_cast %4 : vector<1x8x8x128xbf16> to vector<8x8x128xbf16>
    %c2 = arith.constant 2 : index
    %c0_10 = arith.constant 0 : index
    %c0_11 = arith.constant 0 : index
    %c0_12 = arith.constant 0 : index
    %6 = vector.load %arg1[%c2, %c0_10, %c0_11, %c0_12] : memref<4x9x9x128xbf16, #tpu.memory_space<vmem>>, vector<1x8x8x128xbf16>
    %7 = vector.shape_cast %6 : vector<1x8x8x128xbf16> to vector<8x8x128xbf16>
    %c3 = arith.constant 3 : index
    %c0_13 = arith.constant 0 : index
    %c0_14 = arith.constant 0 : index
    %c0_15 = arith.constant 0 : index
    %8 = vector.load %arg1[%c3, %c0_13, %c0_14, %c0_15] : memref<4x9x9x128xbf16, #tpu.memory_space<vmem>>, vector<1x8x8x128xbf16>
    %9 = vector.shape_cast %8 : vector<1x8x8x128xbf16> to vector<8x8x128xbf16>
    %c2_16 = arith.constant 2 : index
    %c0_17 = arith.constant 0 : index
    %c1_18 = arith.constant 1 : index
    %c0_19 = arith.constant 0 : index
    %10 = vector.load %arg1[%c2_16, %c0_17, %c1_18, %c0_19] : memref<4x9x9x128xbf16, #tpu.memory_space<vmem>>, vector<1x8x8x128xbf16>
    %11 = vector.shape_cast %10 : vector<1x8x8x128xbf16> to vector<8x8x128xbf16>
    %c0_20 = arith.constant 0 : index
    %c1_21 = arith.constant 1 : index
    %c0_22 = arith.constant 0 : index
    %c0_23 = arith.constant 0 : index
    %12 = vector.load %arg1[%c0_20, %c1_21, %c0_22, %c0_23] : memref<4x9x9x128xbf16, #tpu.memory_space<vmem>>, vector<1x8x8x128xbf16>
    %13 = vector.shape_cast %12 : vector<1x8x8x128xbf16> to vector<8x8x128xbf16>
    %c1_24 = arith.constant 1 : index
    %c1_25 = arith.constant 1 : index
    %c0_26 = arith.constant 0 : index
    %c0_27 = arith.constant 0 : index
    %14 = vector.load %arg1[%c1_24, %c1_25, %c0_26, %c0_27] : memref<4x9x9x128xbf16, #tpu.memory_space<vmem>>, vector<1x8x8x128xbf16>
    %15 = vector.shape_cast %14 : vector<1x8x8x128xbf16> to vector<8x8x128xbf16>
    %c0_28 = arith.constant 0 : index
    %c1_29 = arith.constant 1 : index
    %c1_30 = arith.constant 1 : index
    %c0_31 = arith.constant 0 : index
    %16 = vector.load %arg1[%c0_28, %c1_29, %c1_30, %c0_31] : memref<4x9x9x128xbf16, #tpu.memory_space<vmem>>, vector<1x8x8x128xbf16>
    %17 = vector.shape_cast %16 : vector<1x8x8x128xbf16> to vector<8x8x128xbf16>
    %18 = tpu.concatenate %1, %3, %5, %7, %9, %11, %13, %15, %17 in 2 : vector<8x8x128xbf16>, vector<8x8x128xbf16>, vector<8x8x128xbf16>, vector<8x8x128xbf16>, vector<8x8x128xbf16>, vector<8x8x128xbf16>, vector<8x8x128xbf16>, vector<8x8x128xbf16>, vector<8x8x128xbf16> -> vector<8x8x1152xbf16>
    %19 = vector.shape_cast %18 : vector<8x8x1152xbf16> to vector<64x1152xbf16>
    %c0_32 = arith.constant 0 : index
    %c0_33 = arith.constant 0 : index
    %20 = vector.load %arg2[%c0_32, %c0_33] : memref<1152x128xbf16, #tpu.memory_space<vmem>>, vector<1152x128xbf16>
    %cst = arith.constant dense<0.000000e+00> : vector<64x128xf32>
    %21 = tpu.matmul %19, %20, %cst {dimension_numbers = #tpu.dot_dimension_numbers<[1], [0], [0], [1], [0, 0, 1, 1], [], []>} : vector<64x1152xbf16>, vector<1152x128xbf16>, vector<64x128xf32> -> vector<64x128xf32>
    %c0_34 = arith.constant 0 : index
    %c0_35 = arith.constant 0 : index
    %22 = vector.load %arg3[%c0_34, %c0_35] : memref<1x128xf32, #tpu.memory_space<vmem>>, vector<1x128xf32>
    %23 = vector.broadcast %22 : vector<1x128xf32> to vector<64x128xf32>
    %24 = arith.addf %21, %23 : vector<64x128xf32>
    %cst_36 = arith.constant 0.000000e+00 : f32
    %25 = vector.broadcast %cst_36 : f32 to vector<64x128xf32>
    %26 = arith.maximumf %24, %25 : vector<64x128xf32>
    %c0_37 = arith.constant 0 : index
    %c0_38 = arith.constant 0 : index
    %c0_39 = arith.constant 0 : index
    %27 = vector.load %arg4[%c0_37, %c0_38, %c0_39] : memref<1x64x128xf32, #tpu.memory_space<vmem>>, vector<1x64x128xf32>
    %28 = vector.shape_cast %27 : vector<1x64x128xf32> to vector<64x128xf32>
    %29 = vector.shape_cast %26 : vector<64x128xf32> to vector<1x64x128xf32>
    tpu.vector_store %arg4[%c0_37, %c0_38, %c0_39], %29 {strides = array<i32>} : memref<1x64x128xf32, #tpu.memory_space<vmem>>, vector<1x64x128xf32>,
    return
  }
  func.func @transform_0(%arg0: i32) -> (i32, i32, i32, i32) {
    %c0_i32 = arith.constant 0 : i32
    %c0_i32_0 = arith.constant 0 : i32
    %c0_i32_1 = arith.constant 0 : i32
    %c0_i32_2 = arith.constant 0 : i32
    return %arg0, %c0_i32, %c0_i32_0, %c0_i32_1 : i32, i32, i32, i32
  }
  func.func @transform_1(%arg0: i32) -> (i32, i32) {
    %c0_i32 = arith.constant 0 : i32
    %c0_i32_0 = arith.constant 0 : i32
    %c0_i32_1 = arith.constant 0 : i32
    return %c0_i32, %c0_i32_0 : i32, i32
  }
  func.func @transform_2(%arg0: i32) -> (i32, i32) {
    %c0_i32 = arith.constant 0 : i32
    %c0_i32_0 = arith.constant 0 : i32
    %c0_i32_1 = arith.constant 0 : i32
    return %c0_i32, %c0_i32_0 : i32, i32
  }
  func.func @transform_3(%arg0: i32) -> (i32, i32, i32) {
    %c0_i32 = arith.constant 0 : i32
    %c0_i32_0 = arith.constant 0 : i32
    %c0_i32_1 = arith.constant 0 : i32
    return %arg0, %c0_i32, %c0_i32_0 : i32, i32, i32
  }
}

</mosaic_0001>

<bundles_post_ra>
// kernel: inception_d_forward.11
= control target key start
LH: loop header
LB: loop body
LE: loop exit
PB: predicated region body
PF: predicated region fallthrough
CT: control target
= control target key end

     0   :  { %s422_s6 = smov 0   ;;  %s560_s0 = inlined_call_operand.vmem [shape: f32[8,9,9,4], index: 0, kind: input, shape index: {}]   ;;  %s561_s1 = inlined_call_operand.vmem [shape: f32[2,8,8,4], index: 1, kind: output, shape index: {}]  }
   0x1 LB: > { %s428_s7 = sadd.s32 4294967295, %s410_s6   ;;  %p331_p0 = scmp.ge.s32.totalorder %s410_s6, 1  ;;  %s410_s6 = sphi %s422_s6, %s11_s6  }
   0x2   : > { %p89_p1 = scmp.lt.s32.totalorder %s410_s6, 3 }
   0x4   : > { %p90_p2 = pnand %p331_p0, %p89_p1 }
   0x5   : > { %s332_s8 = sshll.u32 (!%p90_p2), %s428_s7, 2  ;;  %p117_p4 = scmp.lt.s32.totalorder (!%p90_p2), %s428_s7, 1  ;;  %vm263_vm0 = vcmask (!%p90_p2), 31744  }
   0x6   : > { %93 = sbr.rel (%p90_p2) target bundleno = 54 (0x36), region = 24  ;;  %p111_p3 = scmp.lt.s32.totalorder (!%p90_p2), %s332_s8, 7 }
   0xd   : > { %s563_s8 = smov (!%p111_p3, %s332_s8), 7  ;;  %s565_s7 = smov (!%p117_p4, %s428_s7), 1 }
   0xe   : > { %s395_s9 = smul.u32 144, %s563_s8  ;;  %s394_s13 = sshll.u32 %s565_s7, 6 }
   0xf   : > { %s514_s16 = scalar_lea.vmem %s561_s1, %s394_s13 }
  0x10   : > { %s436_s12 = scalar_lea.vmem %s560_s0, %s395_s9 }
  0x11   : > { %v122_v0 = vld [vmem:[%s436_s12] sm:$0xff]  ;;  %v336_v1 = vld [vmem:[%s436_s12 + $0x90] sm:$0xff] }
  0x12   : > { %v147_v2 = vld [vmem:[%s436_s12 + $0x1] sm:$0xff]  ;;  %v139_v3 = vmax.f32 %v122_v0, %v336_v1  ;;  %v368_v5 = vld [vmem:[%s436_s12 + $0x10] sm:$0xff] }
  0x13   : > { %v344_v4 = vld [vmem:[%s436_s12 + $0x120] sm:$0xff]  ;;  %v447_v7 = vld [vmem:[%s436_s12 + $0x11] sm:$0xff] }
  0x14   : > { %v444_v6 = vld [vmem:[%s436_s12 + $0xa0] sm:$0xff]  ;;  %v155_v8 = vmax.f32 %v139_v3, %v147_v2  ;;  %v352_v9 = vld [vmem:[%s436_s12 + $0x1b0] sm:$0xff] }
  0x15   : > { %v140_v10 = vmax.f32 %v368_v5, %v444_v6  ;;  %v345_v11 = vld [vmem:[%s436_s12 + $0x130] sm:$0xff]  ;;  %v369_v12 = vld [vmem:[%s436_s12 + $0x20] sm:$0xff] }
  0x16   : > { %v455_v13 = vld [vmem:[%s436_s12 + $0xb0] sm:$0xff]  ;;  %v458_v14 = vld [vmem:[%s436_s12 + $0x21] sm:$0xff]  ;;  %v172_v15 = vmax.f32 %v155_v8, %v344_v4 }
  0x17   : > { %v360_v16 = vld [vmem:[%s436_s12 + $0x121] sm:$0xff]  ;;  %v156_v17 = vmax.f32 %v140_v10, %v447_v7  ;;  %v141_v19 = vmax.f32 %v369_v12, %v455_v13  ;;  %v370_v21 = vld [vmem:[%s436_s12 + $0x30] sm:$0xff] }
  0x18   : > { %v353_v18 = vld [vmem:[%s436_s12 + $0x1c0] sm:$0xff]  ;;  %v470_v23 = vld [vmem:[%s436_s12 + $0x31] sm:$0xff]  ;;  %v189_v24 = vmax.f32 %v172_v15, %v352_v9 }
  0x19   : > { %v346_v20 = vld [vmem:[%s436_s12 + $0x140] sm:$0xff]  ;;  %v173_v25 = vmax.f32 %v156_v17, %v345_v11  ;;  %v361_v26 = vld [vmem:[%s436_s12 + $0x131] sm:$0xff]  ;;  %v157_v27 = vmax.f32 %v141_v19, %v458_v14 }
  0x1a   : > { %v467_v22 = vld [vmem:[%s436_s12 + $0xc0] sm:$0xff]  ;;  %v354_v28 = vld [vmem:[%s436_s12 + $0x1d0] sm:$0xff]  ;;  %v205_v33 = vmax.f32 %v189_v24, %v360_v16 }
  0x1b   : > { %v142_v29 = vmax.f32 %v370_v21, %v467_v22  ;;  %v347_v30 = vld [vmem:[%s436_s12 + $0x150] sm:$0xff]  ;;  %v371_v31 = vld [vmem:[%s436_s12 + $0x40] sm:$0xff]  ;;  %v190_v34 = vmax.f32 %v173_v25, %v353_v18  ;;  %v174_v35 = vmax.f32 %v157_v27, %v346_v20 }
  0x1c   : > { %v484_v32 = vld [vmem:[%s436_s12 + $0xd0] sm:$0xff]  ;;  %v362_v36 = vld [vmem:[%s436_s12 + $0x141] sm:$0xff]  ;;  %v222_v43 = vmax.f32 %v205_v33, %v368_v5 }
  0x1d   : > { %v158_v37 = vmax.f32 %v142_v29, %v470_v23  ;;  %v489_v38 = vld [vmem:[%s436_s12 + $0x41] sm:$0xff]  ;;  %v143_v40 = vmax.f32 %v371_v31, %v484_v32  ;;  %v372_v41 = vld [vmem:[%s436_s12 + $0x50] sm:$0xff]  ;;  %v206_v44 = vmax.f32 %v190_v34, %v361_v26  ;;  %v191_v45 = vmax.f32 %v174_v35, %v354_v28 }
  0x1e   : > { %v355_v39 = vld [vmem:[%s436_s12 + $0x1e0] sm:$0xff]  ;;  %v388_v48 = vld [vmem:[%s436_s12 + $0x51] sm:$0xff]  ;;  %v239_v54 = vmax.f32 %v222_v43, %v444_v6 }
  0x1f   : > { %v495_v42 = vld [vmem:[%s436_s12 + $0xe0] sm:$0xff]  ;;  %v175_v46 = vmax.f32 %v158_v37, %v347_v30  ;;  %v363_v49 = vld [vmem:[%s436_s12 + $0x151] sm:$0xff]  ;;  %v159_v50 = vmax.f32 %v143_v40, %v489_v38  ;;  %v223_v55 = vmax.f32 %v206_v44, %v369_v12  ;;  %v207_v56 = vmax.f32 %v191_v45, %v362_v36 }
  0x20   : > { %v348_v47 = vld [vmem:[%s436_s12 + $0x160] sm:$0xff]  ;;  %v144_v51 = vmax.f32 %v372_v41, %v495_v42  ;;  %v505_v53 = vld [vmem:[%s436_s12 + $0xf0] sm:$0xff]  ;;  %v255_v3 = vmax.f32 %v239_v54, %v447_v7 }
  0x21   : > { %v373_v52 = vld [vmem:[%s436_s12 + $0x60] sm:$0xff]  ;;  %v192_v57 = vmax.f32 %v175_v46, %v355_v39  ;;  %v356_v58 = vld [vmem:[%s436_s12 + $0x1f0] sm:$0xff]  ;;  %v176_v61 = vmax.f32 %v159_v50, %v348_v47  ;;  %v240_v4 = vmax.f32 %v223_v55, %v455_v13  ;;  %v224_v5 = vmax.f32 %v207_v56, %v370_v21 }
  0x22   : > { %v349_v59 = vld [vmem:[%s436_s12 + $0x170] sm:$0xff]  ;;  %v389_v60 = vld [vmem:[%s436_s12 + $0x61] sm:$0xff]  ;;  %v160_v63 = vmax.f32 %v144_v51, %v388_v48  ;;  %v145_v0 = vmax.f32 %v373_v52, %v505_v53  ;;  %264 = vst.msk [vmem:[%s514_s16] sm:$0xff] %vm263_vm0, %v255_v3 }
  0x23   : > { %v364_v62 = vld [vmem:[%s436_s12 + $0x161] sm:$0xff]  ;;  %v374_v1 = vld [vmem:[%s436_s12 + $0x70] sm:$0xff]  ;;  %v208_v6 = vmax.f32 %v192_v57, %v363_v49  ;;  %v193_v11 = vmax.f32 %v176_v61, %v356_v58  ;;  %v256_v7 = vmax.f32 %v240_v4, %v458_v14  ;;  %v241_v17 = vmax.f32 %v224_v5, %v467_v22 }
  0x24   : > { %v382_v2 = vld [vmem:[%s436_s12 + $0x100] sm:$0xff]  ;;  %v390_v10 = vld [vmem:[%s436_s12 + $0x71] sm:$0xff]  ;;  %v177_v12 = vmax.f32 %v160_v63, %v349_v59  ;;  %v161_v15 = vmax.f32 %v145_v0, %v389_v60 }
  0x25   : > { %v357_v8 = vld [vmem:[%s436_s12 + $0x200] sm:$0xff]  ;;  %v146_v16 = vmax.f32 %v374_v1, %v382_v2  ;;  %v225_v13 = vmax.f32 %v208_v6, %v371_v31  ;;  %v365_v18 = vld [vmem:[%s436_s12 + $0x171] sm:$0xff]  ;;  %v209_v21 = vmax.f32 %v193_v11, %v364_v62  ;;  %265 = vst.msk [vmem:[%s514_s16 + $0x8] sm:$0xff] %vm263_vm0, %v256_v7  ;;  %v257_v27 = vmax.f32 %v241_v17, %v470_v23 }
  0x26   : > { %v350_v9 = vld [vmem:[%s436_s12 + $0x180] sm:$0xff]  ;;  %v358_v19 = vld [vmem:[%s436_s12 + $0x210] sm:$0xff]  ;;  %v194_v24 = vmax.f32 %v177_v12, %v357_v8 }
  0x27   : > { %v351_v20 = vld [vmem:[%s436_s12 + $0x190] sm:$0xff]  ;;  %v178_v25 = vmax.f32 %v161_v15, %v350_v9  ;;  %v162_v26 = vmax.f32 %v146_v16, %v390_v10  ;;  %v242_v14 = vmax.f32 %v225_v13, %v484_v32  ;;  %v366_v28 = vld [vmem:[%s436_s12 + $0x181] sm:$0xff]  ;;  %v226_v29 = vmax.f32 %v209_v21, %v372_v41  ;;  %266 = vst.msk [vmem:[%s514_s16 + $0x10] sm:$0xff] %vm263_vm0, %v257_v27 }
  0x28   : > { %v359_v22 = vld [vmem:[%s436_s12 + $0x220] sm:$0xff]  ;;  %v210_v30 = vmax.f32 %v194_v24, %v365_v18  ;;  %v367_v35 = vld [vmem:[%s436_s12 + $0x191] sm:$0xff] }
  0x29   : > { %v195_v31 = vmax.f32 %v178_v25, %v358_v19  ;;  %v179_v33 = vmax.f32 %v162_v26, %v351_v20  ;;  %v258_v34 = vmax.f32 %v242_v14, %v489_v38  ;;  %v243_v36 = vmax.f32 %v226_v29, %v495_v42  ;;  %v375_v39 = vld [vmem:[%s436_s12 + $0x80] sm:$0xff]  ;;  %v383_v45 = vld [vmem:[%s436_s12 + $0x110] sm:$0xff] }
  0x2a   : > { %v227_v23 = vmax.f32 %v210_v30, %v373_v52  ;;  %v391_v47 = vld [vmem:[%s436_s12 + $0x81] sm:$0xff] }
  0x2b   : > { %v211_v37 = vmax.f32 %v195_v31, %v366_v28  ;;  %v196_v32 = vmax.f32 %v179_v33, %v359_v22  ;;  %267 = vst.msk [vmem:[%s514_s16 + $0x18] sm:$0xff] %vm263_vm0, %v258_v34  ;;  %v259_v40 = vmax.f32 %v243_v36, %v388_v48 }
  0x2c   : > { %v244_v41 = vmax.f32 %v227_v23, %v505_v53 }
  0x2d   : > { %v228_v43 = vmax.f32 %v211_v37, %v374_v1  ;;  %v212_v44 = vmax.f32 %v196_v32, %v367_v35  ;;  %268 = vst.msk [vmem:[%s514_s16 + $0x20] sm:$0xff] %vm263_vm0, %v259_v40 }
  0x2e   : > { %v260_v38 = vmax.f32 %v244_v41, %v389_v60 }
  0x2f   : > { %v245_v46 = vmax.f32 %v228_v43, %v382_v2  ;;  %v229_v42 = vmax.f32 %v212_v44, %v375_v39 }
  0x30   : > { %269 = vst.msk [vmem:[%s514_s16 + $0x28] sm:$0xff] %vm263_vm0, %v260_v38 }
  0x31   : > { %v261_v49 = vmax.f32 %v245_v46, %v390_v10  ;;  %v246_v50 = vmax.f32 %v229_v42, %v383_v45 }
  0x33   : > { %270 = vst.msk [vmem:[%s514_s16 + $0x30] sm:$0xff] %vm263_vm0, %v261_v49  ;;  %v262_v51 = vmax.f32 %v246_v50, %v391_v47 }
  0x35   : > { %271 = vst.msk [vmem:[%s514_s16 + $0x38] sm:$0xff] %vm263_vm0, %v262_v51 }
  0x36 PF: > { %s11_s6 = sadd.s32 1, %s410_s6  }
  0x37   : > { %p8_p5 = scmp.ge.s32.totalorder %s11_s6, 4  }
  0x39   :  { %10 = sbr.rel (!%p8_p5) target bundleno = 1 (0x1), region = 59 }

// kernel: inception_d_forward.6
= control target key start
LH: loop header
LB: loop body
LE: loop exit
PB: predicated region body
PF: predicated region fallthrough
CT: control target
= control target key end

     0   :  { %s1073_s12 = smov 0   ;;  %s1236_s0 = inlined_call_operand.vmem [shape: bf16[512,4], index: 0, kind: input, shape index: {}]   ;;  %s1237_s1 = inlined_call_operand.vmem [shape: bf16[4,256], index: 1, kind: input, shape index: {}]   ;;  %s1238_s2 = inlined_call_operand.vmem [shape: f32[1,256], index: 2, kind: input, shape index: {}]   ;;  %s1239_s3 = inlined_call_operand.vmem [shape: bf16[512,256], index: 3, kind: output, shape index: {}]  }
   0x1 LB: > { %s906_s13 = sadd.s32 4294967295, %s1050_s12   ;;  %p910_p0 = scmp.ge.s32.totalorder %s1050_s12, 1  ;;  %s1050_s12 = sphi %s1073_s12, %s13_s12  }
   0x2   : > { %p138_p1 = scmp.lt.s32.totalorder %s1050_s12, 3 }
   0x4   : > { %p139_p2 = pnand %p910_p0, %p138_p1 }
   0x5   : > { %v932_v0 = vld.sshfl [vmem:[%s1237_s1] sm:$0x33 pattern:$0x76325410] (!%p139_p2)  ;;  %vm360_vm0 = vcmask (!%p139_p2), 1041408   ;;  %v1052_v3 = vmov (!%p139_p2), 0   ;;  %v212_v20 = vlaneseq (!%p139_p2) }
   0x6   : > { %142 = sbr.rel (%p139_p2) target bundleno = 296 (0x128), region = 32  ;;  %v310_v1 = vcombine.high (!%p139_p2), %v932_v0, %v932_v0  ;;  %v362_v2 = vsel (!%p139_p2), %vm360_vm0, %v932_v0, 0  ;;  %399 = vmatprep.mubr.bf16.mxu0 (!%p139_p2), %v1052_v3  ;;  %479 = vmatprep.mubr.bf16.mxu1 (!%p139_p2), %v1052_v3  ;;  %s911_s16 = sshll.u32 (!%p139_p2), %s906_s13, 5  ;;  %vm311_vm1 = vcmask (!%p139_p2), 31744   ;;  %v210_v23 = vld [vmem:[%s1238_s2] sm:$0x3] (!%p139_p2) }
   0x7   : > { %p164_p3 = scmp.lt.s32.totalorder (!%p139_p2), %s911_s16, 63  ;;  %v213_v21 = vshrl.u32 (!%p139_p2), %v212_v20, 7 }
   0x8   : > { %933 = vmatprep.subr.msk.bf16.mxu0 (!%p139_p2), %vm360_vm0, %v310_v1  ;;  %1017 = vmatprep.subr.msk.bf16.mxu1 (!%p139_p2), %vm360_vm0, %v310_v1 }
   0x9   : > { %368 = vmatpush1.bf16.msra.mxu0 (!%p139_p2), %v362_v2  ;;  %1018 = vmatpush1.bf16.msra.mxu1 (!%p139_p2), %v362_v2  ;;  %v214_v22 = vsub.s32 (!%p139_p2), 0, %v213_v21  ;;  %v218_v24 = vsub.s32 (!%p139_p2), 1, %v213_v21 }
   0xb   : > { %v1127_v25 = vrot.slane (!%p139_p2), %v210_v23, %v214_v22  ;;  %v1129_v26 = vrot.slane (!%p139_p2), %v210_v23, %v218_v24 }
   0xd   : > { %s1241_s16 = smov (!%p164_p3, %s911_s16), 63 }
   0xe   : > { %s912_s17 = sshll.u32 %s1241_s16, 2  ;;  %s984_s23 = sshll.u32 %s1241_s16, 3 }
   0xf   : > { %s1090_s20 = scalar_lea.vmem %s1236_s0, %s912_s17  ;;  %s1142_s26 = scalar_lea.vmem %s1239_s3, %s984_s23 }
  0x10   : > { %v1028_v4 = vld [vmem:[%s1090_s20] sm:$0xff]   ;;  %v1030_v6 = vld [vmem:[%s1090_s20 + $0x8] sm:$0xff]   ;;  %v1032_v8 = vld [vmem:[%s1090_s20 + $0x10] sm:$0xff]  }
  0x11   : > { %v1029_v5 = vld [vmem:[%s1090_s20 + $0x40] sm:$0xff]   ;;  %934 = vmatmul.mubr.msk.bf16.vlgmr.msra.gmra.mrb[0].mxu0 %vm311_vm1, %v1028_v4  ;;  %v1031_v7 = vld [vmem:[%s1090_s20 + $0x48] sm:$0xff]   ;;  %v1033_v9 = vld [vmem:[%s1090_s20 + $0x50] sm:$0xff]  }
  0x12   : > { %942 = vmatmul.mubr.msk.bf16.vlgmr.msra.gmra.mrb[0].mxu1 %vm311_vm1, %v1029_v5  ;;  %409 = vmatprep.mubr.bf16.mxu0 %v1052_v3  ;;  %v1034_v10 = vld [vmem:[%s1090_s20 + $0x18] sm:$0xff]   ;;  %v1036_v12 = vld [vmem:[%s1090_s20 + $0x20] sm:$0xff]   ;;  %v1038_v14 = vld [vmem:[%s1090_s20 + $0x28] sm:$0xff]  }
  0x13   : > { %489 = vmatprep.mubr.bf16.mxu1 %v1052_v3  ;;  %v1035_v11 = vld [vmem:[%s1090_s20 + $0x58] sm:$0xff]   ;;  %v1037_v13 = vld [vmem:[%s1090_s20 + $0x60] sm:$0xff]   ;;  %v1039_v15 = vld [vmem:[%s1090_s20 + $0x68] sm:$0xff]  }
  0x14   : > { %v1040_v16 = vld [vmem:[%s1090_s20 + $0x30] sm:$0xff]   ;;  %v1042_v18 = vld [vmem:[%s1090_s20 + $0x38] sm:$0xff]  }
  0x15   : > { %v1041_v17 = vld [vmem:[%s1090_s20 + $0x70] sm:$0xff]   ;;  %v1043_v19 = vld [vmem:[%s1090_s20 + $0x78] sm:$0xff]  }
  0x19   : > { %935 = vmatmul.mubr.msk.bf16.gmra.mrb[4].mxu0 %vm311_vm1, %v1030_v6 }
  0x1a   : > { %943 = vmatmul.mubr.msk.bf16.gmra.mrb[4].mxu1 %vm311_vm1, %v1031_v7  ;;  %419 = vmatprep.mubr.bf16.mxu0 %v1052_v3 }
  0x1b   : > { %499 = vmatprep.mubr.bf16.mxu1 %v1052_v3 }
  0x21   : > { %936 = vmatmul.mubr.msk.bf16.gmra.mrb[8].mxu0 %vm311_vm1, %v1032_v8 }
  0x22   : > { %944 = vmatmul.mubr.msk.bf16.gmra.mrb[8].mxu1 %vm311_vm1, %v1033_v9  ;;  %429 = vmatprep.mubr.bf16.mxu0 %v1052_v3 }
  0x23   : > { %509 = vmatprep.mubr.bf16.mxu1 %v1052_v3 }
  0x29   : > { %937 = vmatmul.mubr.msk.bf16.gmra.mrb[12].mxu0 %vm311_vm1, %v1034_v10 }
  0x2a   : > { %945 = vmatmul.mubr.msk.bf16.gmra.mrb[12].mxu1 %vm311_vm1, %v1035_v11  ;;  %439 = vmatprep.mubr.bf16.mxu0 %v1052_v3 }
  0x2b   : > { %519 = vmatprep.mubr.bf16.mxu1 %v1052_v3 }
  0x31   : > { %938 = vmatmul.mubr.msk.bf16.gmra.mrb[16].mxu0 %vm311_vm1, %v1036_v12 }
  0x32   : > { %946 = vmatmul.mubr.msk.bf16.gmra.mrb[16].mxu1 %vm311_vm1, %v1037_v13  ;;  %449 = vmatprep.mubr.bf16.mxu0 %v1052_v3 }
  0x33   : > { %529 = vmatprep.mubr.bf16.mxu1 %v1052_v3 }
  0x39   : > { %939 = vmatmul.mubr.msk.bf16.gmra.mrb[20].mxu0 %vm311_vm1, %v1038_v14 }
  0x3a   : > { %947 = vmatmul.mubr.msk.bf16.gmra.mrb[20].mxu1 %vm311_vm1, %v1039_v15  ;;  %459 = vmatprep.mubr.bf16.mxu0 %v1052_v3 }
  0x3b   : > { %539 = vmatprep.mubr.bf16.mxu1 %v1052_v3 }
  0x41   : > { %940 = vmatmul.mubr.msk.bf16.gmra.mrb[24].mxu0 %vm311_vm1, %v1040_v16 }
  0x42   : > { %948 = vmatmul.mubr.msk.bf16.gmra.mrb[24].mxu1 %vm311_vm1, %v1041_v17  ;;  %469 = vmatprep.mubr.bf16.mxu0 %v1052_v3 }
  0x43   : > { %549 = vmatprep.mubr.bf16.mxu1 %v1052_v3 }
  0x49   : > { %941 = vmatmul.mubr.msk.bf16.gmra.mrb[28].mxu0 %vm311_vm1, %v1042_v18 }
  0x4a   : > { %949 = vmatmul.mubr.msk.bf16.gmra.mrb[28].mxu1 %vm311_vm1, %v1043_v19 }
  0xe4   : > { %v401_v27 = vpop.f32.mrb[0].mxu0 }
  0xe5   : > { %v402_v28 = vadd.f32 %v401_v27, %v1127_v25  ;;  %v481_v29 = vpop.f32.mrb[0].mxu1  ;;  %v403_v30 = vpop.f32.mrb[1].mxu0 }
  0xe6   : > { %v482_v31 = vadd.f32 %v481_v29, %v1127_v25  ;;  %v404_v32 = vadd.f32 %v403_v30, %v1129_v26  ;;  %v483_v33 = vpop.f32.mrb[1].mxu1  ;;  %v405_v34 = vpop.f32.mrb[2].mxu0 }
  0xe7   : > { %v560_v35 = vmax.f32 %v402_v28, 0.0  ;;  %v484_v36 = vadd.f32 %v483_v33, %v1129_v26  ;;  %v406_v37 = vadd.f32 %v405_v34, %v1127_v25  ;;  %v485_v38 = vpop.f32.mrb[2].mxu1  ;;  %v407_v39 = vpop.f32.mrb[3].mxu0 }
  0xe8   : > { %v592_v40 = vmax.f32 %v482_v31, 0.0  ;;  %v561_v41 = vmax.f32 %v404_v32, 0.0  ;;  %v486_v42 = vadd.f32 %v485_v38, %v1127_v25  ;;  %v408_v43 = vadd.f32 %v407_v39, %v1129_v26  ;;  %v487_v44 = vpop.f32.mrb[3].mxu1 }
  0xe9   : > { %v593_v45 = vmax.f32 %v484_v36, 0.0  ;;  %v562_v46 = vmax.f32 %v406_v37, 0.0  ;;  %v488_v47 = vadd.f32 %v487_v44, %v1129_v26 }
  0xea   : > { %v985_v48 = vpack.c.bf16 %v561_v41, %v560_v35  ;;  %v594_v49 = vmax.f32 %v486_v42, 0.0  ;;  %v563_v50 = vmax.f32 %v408_v43, 0.0 }
  0xeb   : > { %v1001_v51 = vpack.c.bf16 %v593_v45, %v592_v40  ;;  %v595_v52 = vmax.f32 %v488_v47, 0.0 }
  0xec   : > { %816 = vst [vmem:[%s1142_s26] sm:$0xff] %v985_v48  ;;  %v986_v53 = vpack.c.bf16 %v563_v50, %v562_v46  ;;  %v411_v54 = vpop.f32.mrb[4].mxu0 }
  0xed   : > { %832 = vst [vmem:[%s1142_s26 + $0x80] sm:$0xff] %v1001_v51  ;;  %v1002_v55 = vpack.c.bf16 %v595_v52, %v594_v49  ;;  %v412_v56 = vadd.f32 %v411_v54, %v1127_v25  ;;  %v491_v57 = vpop.f32.mrb[4].mxu1  ;;  %v413_v58 = vpop.f32.mrb[5].mxu0 }
  0xee   : > { %817 = vst [vmem:[%s1142_s26 + $0x8] sm:$0xff] %v986_v53  ;;  %v492_v59 = vadd.f32 %v491_v57, %v1127_v25  ;;  %v414_v60 = vadd.f32 %v413_v58, %v1129_v26  ;;  %v493_v61 = vpop.f32.mrb[5].mxu1  ;;  %v415_v62 = vpop.f32.mrb[6].mxu0 }
  0xef   : > { %833 = vst [vmem:[%s1142_s26 + $0x88] sm:$0xff] %v1002_v55  ;;  %v564_v63 = vmax.f32 %v412_v56, 0.0  ;;  %v494_v0 = vadd.f32 %v493_v61, %v1129_v26  ;;  %v416_v1 = vadd.f32 %v415_v62, %v1127_v25  ;;  %v495_v2 = vpop.f32.mrb[6].mxu1  ;;  %v417_v3 = vpop.f32.mrb[7].mxu0 }
  0xf0   : > { %v596_v4 = vmax.f32 %v492_v59, 0.0  ;;  %v565_v5 = vmax.f32 %v414_v60, 0.0  ;;  %v496_v6 = vadd.f32 %v495_v2, %v1127_v25  ;;  %v418_v7 = vadd.f32 %v417_v3, %v1129_v26  ;;  %v497_v8 = vpop.f32.mrb[7].mxu1 }
  0xf1   : > { %v597_v9 = vmax.f32 %v494_v0, 0.0  ;;  %v566_v10 = vmax.f32 %v416_v1, 0.0  ;;  %v498_v11 = vadd.f32 %v497_v8, %v1129_v26 }
  0xf2   : > { %v987_v12 = vpack.c.bf16 %v565_v5, %v564_v63  ;;  %v598_v13 = vmax.f32 %v496_v6, 0.0  ;;  %v567_v14 = vmax.f32 %v418_v7, 0.0 }
  0xf3   : > { %v1003_v15 = vpack.c.bf16 %v597_v9, %v596_v4  ;;  %v599_v16 = vmax.f32 %v498_v11, 0.0 }
  0xf4   : > { %818 = vst [vmem:[%s1142_s26 + $0x10] sm:$0xff] %v987_v12  ;;  %v988_v17 = vpack.c.bf16 %v567_v14, %v566_v10  ;;  %v421_v18 = vpop.f32.mrb[8].mxu0 }
  0xf5   : > { %834 = vst [vmem:[%s1142_s26 + $0x90] sm:$0xff] %v1003_v15  ;;  %v1004_v19 = vpack.c.bf16 %v599_v16, %v598_v13  ;;  %v422_v20 = vadd.f32 %v421_v18, %v1127_v25  ;;  %v501_v21 = vpop.f32.mrb[8].mxu1  ;;  %v423_v22 = vpop.f32.mrb[9].mxu0 }
  0xf6   : > { %819 = vst [vmem:[%s1142_s26 + $0x18] sm:$0xff] %v988_v17  ;;  %v502_v23 = vadd.f32 %v501_v21, %v1127_v25  ;;  %v424_v24 = vadd.f32 %v423_v22, %v1129_v26  ;;  %v503_v27 = vpop.f32.mrb[9].mxu1  ;;  %v425_v28 = vpop.f32.mrb[10].mxu0 }
  0xf7   : > { %835 = vst [vmem:[%s1142_s26 + $0x98] sm:$0xff] %v1004_v19  ;;  %v568_v29 = vmax.f32 %v422_v20, 0.0  ;;  %v504_v30 = vadd.f32 %v503_v27, %v1129_v26  ;;  %v426_v31 = vadd.f32 %v425_v28, %v1127_v25  ;;  %v505_v32 = vpop.f32.mrb[10].mxu1  ;;  %v427_v33 = vpop.f32.mrb[11].mxu0 }
  0xf8   : > { %v600_v34 = vmax.f32 %v502_v23, 0.0  ;;  %v569_v35 = vmax.f32 %v424_v24, 0.0  ;;  %v506_v36 = vadd.f32 %v505_v32, %v1127_v25  ;;  %v428_v37 = vadd.f32 %v427_v33, %v1129_v26  ;;  %v507_v38 = vpop.f32.mrb[11].mxu1 }
  0xf9   : > { %v601_v39 = vmax.f32 %v504_v30, 0.0  ;;  %v570_v40 = vmax.f32 %v426_v31, 0.0  ;;  %v508_v41 = vadd.f32 %v507_v38, %v1129_v26 }
  0xfa   : > { %v989_v42 = vpack.c.bf16 %v569_v35, %v568_v29  ;;  %v602_v43 = vmax.f32 %v506_v36, 0.0  ;;  %v571_v44 = vmax.f32 %v428_v37, 0.0 }
  0xfb   : > { %v1005_v45 = vpack.c.bf16 %v601_v39, %v600_v34  ;;  %v603_v46 = vmax.f32 %v508_v41, 0.0 }
  0xfc   : > { %820 = vst [vmem:[%s1142_s26 + $0x20] sm:$0xff] %v989_v42  ;;  %v990_v47 = vpack.c.bf16 %v571_v44, %v570_v40  ;;  %v431_v48 = vpop.f32.mrb[12].mxu0 }
  0xfd   : > { %836 = vst [vmem:[%s1142_s26 + $0xa0] sm:$0xff] %v1005_v45  ;;  %v1006_v49 = vpack.c.bf16 %v603_v46, %v602_v43  ;;  %v432_v50 = vadd.f32 %v431_v48, %v1127_v25  ;;  %v511_v51 = vpop.f32.mrb[12].mxu1  ;;  %v433_v52 = vpop.f32.mrb[13].mxu0 }
  0xfe   : > { %821 = vst [vmem:[%s1142_s26 + $0x28] sm:$0xff] %v990_v47  ;;  %v512_v53 = vadd.f32 %v511_v51, %v1127_v25  ;;  %v434_v54 = vadd.f32 %v433_v52, %v1129_v26  ;;  %v513_v55 = vpop.f32.mrb[13].mxu1  ;;  %v435_v56 = vpop.f32.mrb[14].mxu0 }
  0xff   : > { %837 = vst [vmem:[%s1142_s26 + $0xa8] sm:$0xff] %v1006_v49  ;;  %v572_v57 = vmax.f32 %v432_v50, 0.0  ;;  %v514_v58 = vadd.f32 %v513_v55, %v1129_v26  ;;  %v436_v59 = vadd.f32 %v435_v56, %v1127_v25  ;;  %v515_v60 = vpop.f32.mrb[14].mxu1  ;;  %v437_v61 = vpop.f32.mrb[15].mxu0 }
 0x100   : > { %v604_v62 = vmax.f32 %v512_v53, 0.0  ;;  %v573_v63 = vmax.f32 %v434_v54, 0.0  ;;  %v516_v0 = vadd.f32 %v515_v60, %v1127_v25  ;;  %v438_v1 = vadd.f32 %v437_v61, %v1129_v26  ;;  %v517_v2 = vpop.f32.mrb[15].mxu1 }
 0x101   : > { %v605_v3 = vmax.f32 %v514_v58, 0.0  ;;  %v574_v4 = vmax.f32 %v436_v59, 0.0  ;;  %v518_v5 = vadd.f32 %v517_v2, %v1129_v26 }
 0x102   : > { %v991_v6 = vpack.c.bf16 %v573_v63, %v572_v57  ;;  %v606_v7 = vmax.f32 %v516_v0, 0.0  ;;  %v575_v8 = vmax.f32 %v438_v1, 0.0 }
 0x103   : > { %v1007_v9 = vpack.c.bf16 %v605_v3, %v604_v62  ;;  %v607_v10 = vmax.f32 %v518_v5, 0.0 }
 0x104   : > { %822 = vst [vmem:[%s1142_s26 + $0x30] sm:$0xff] %v991_v6  ;;  %v992_v11 = vpack.c.bf16 %v575_v8, %v574_v4  ;;  %v441_v12 = vpop.f32.mrb[16].mxu0 }
 0x105   : > { %838 = vst [vmem:[%s1142_s26 + $0xb0] sm:$0xff] %v1007_v9  ;;  %v1008_v13 = vpack.c.bf16 %v607_v10, %v606_v7  ;;  %v442_v14 = vadd.f32 %v441_v12, %v1127_v25  ;;  %v521_v15 = vpop.f32.mrb[16].mxu1  ;;  %v443_v16 = vpop.f32.mrb[17].mxu0 }
 0x106   : > { %823 = vst [vmem:[%s1142_s26 + $0x38] sm:$0xff] %v992_v11  ;;  %v522_v17 = vadd.f32 %v521_v15, %v1127_v25  ;;  %v444_v18 = vadd.f32 %v443_v16, %v1129_v26  ;;  %v523_v19 = vpop.f32.mrb[17].mxu1  ;;  %v445_v20 = vpop.f32.mrb[18].mxu0 }
 0x107   : > { %839 = vst [vmem:[%s1142_s26 + $0xb8] sm:$0xff] %v1008_v13  ;;  %v576_v21 = vmax.f32 %v442_v14, 0.0  ;;  %v524_v22 = vadd.f32 %v523_v19, %v1129_v26  ;;  %v446_v23 = vadd.f32 %v445_v20, %v1127_v25  ;;  %v525_v24 = vpop.f32.mrb[18].mxu1  ;;  %v447_v27 = vpop.f32.mrb[19].mxu0 }
 0x108   : > { %v608_v28 = vmax.f32 %v522_v17, 0.0  ;;  %v577_v29 = vmax.f32 %v444_v18, 0.0  ;;  %v526_v30 = vadd.f32 %v525_v24, %v1127_v25  ;;  %v448_v31 = vadd.f32 %v447_v27, %v1129_v26  ;;  %v527_v32 = vpop.f32.mrb[19].mxu1 }
 0x109   : > { %v609_v33 = vmax.f32 %v524_v22, 0.0  ;;  %v578_v34 = vmax.f32 %v446_v23, 0.0  ;;  %v528_v35 = vadd.f32 %v527_v32, %v1129_v26 }
 0x10a   : > { %v993_v36 = vpack.c.bf16 %v577_v29, %v576_v21  ;;  %v610_v37 = vmax.f32 %v526_v30, 0.0  ;;  %v579_v38 = vmax.f32 %v448_v31, 0.0 }
 0x10b   : > { %v1009_v39 = vpack.c.bf16 %v609_v33, %v608_v28  ;;  %v611_v40 = vmax.f32 %v528_v35, 0.0 }
 0x10c   : > { %824 = vst [vmem:[%s1142_s26 + $0x40] sm:$0xff] %v993_v36  ;;  %v994_v41 = vpack.c.bf16 %v579_v38, %v578_v34  ;;  %v451_v42 = vpop.f32.mrb[20].mxu0 }
 0x10d   : > { %840 = vst [vmem:[%s1142_s26 + $0xc0] sm:$0xff] %v1009_v39  ;;  %v1010_v43 = vpack.c.bf16 %v611_v40, %v610_v37  ;;  %v452_v44 = vadd.f32 %v451_v42, %v1127_v25  ;;  %v531_v45 = vpop.f32.mrb[20].mxu1  ;;  %v453_v46 = vpop.f32.mrb[21].mxu0 }
 0x10e   : > { %825 = vst [vmem:[%s1142_s26 + $0x48] sm:$0xff] %v994_v41  ;;  %v532_v47 = vadd.f32 %v531_v45, %v1127_v25  ;;  %v454_v48 = vadd.f32 %v453_v46, %v1129_v26  ;;  %v533_v49 = vpop.f32.mrb[21].mxu1  ;;  %v455_v50 = vpop.f32.mrb[22].mxu0 }
 0x10f   : > { %841 = vst [vmem:[%s1142_s26 + $0xc8] sm:$0xff] %v1010_v43  ;;  %v580_v51 = vmax.f32 %v452_v44, 0.0  ;;  %v534_v52 = vadd.f32 %v533_v49, %v1129_v26  ;;  %v456_v53 = vadd.f32 %v455_v50, %v1127_v25  ;;  %v535_v54 = vpop.f32.mrb[22].mxu1  ;;  %v457_v55 = vpop.f32.mrb[23].mxu0 }
 0x110   : > { %v612_v56 = vmax.f32 %v532_v47, 0.0  ;;  %v581_v57 = vmax.f32 %v454_v48, 0.0  ;;  %v536_v58 = vadd.f32 %v535_v54, %v1127_v25  ;;  %v458_v59 = vadd.f32 %v457_v55, %v1129_v26  ;;  %v537_v60 = vpop.f32.mrb[23].mxu1 }
 0x111   : > { %v613_v61 = vmax.f32 %v534_v52, 0.0  ;;  %v582_v62 = vmax.f32 %v456_v53, 0.0  ;;  %v538_v63 = vadd.f32 %v537_v60, %v1129_v26 }
 0x112   : > { %v995_v0 = vpack.c.bf16 %v581_v57, %v580_v51  ;;  %v614_v1 = vmax.f32 %v536_v58, 0.0  ;;  %v583_v2 = vmax.f32 %v458_v59, 0.0 }
 0x113   : > { %v1011_v3 = vpack.c.bf16 %v613_v61, %v612_v56  ;;  %v615_v4 = vmax.f32 %v538_v63, 0.0 }
 0x114   : > { %826 = vst [vmem:[%s1142_s26 + $0x50] sm:$0xff] %v995_v0  ;;  %v996_v5 = vpack.c.bf16 %v583_v2, %v582_v62  ;;  %v461_v6 = vpop.f32.mrb[24].mxu0 }
 0x115   : > { %842 = vst [vmem:[%s1142_s26 + $0xd0] sm:$0xff] %v1011_v3  ;;  %v1012_v7 = vpack.c.bf16 %v615_v4, %v614_v1  ;;  %v462_v8 = vadd.f32 %v461_v6, %v1127_v25  ;;  %v541_v9 = vpop.f32.mrb[24].mxu1  ;;  %v463_v10 = vpop.f32.mrb[25].mxu0 }
 0x116   : > { %827 = vst [vmem:[%s1142_s26 + $0x58] sm:$0xff] %v996_v5  ;;  %v542_v11 = vadd.f32 %v541_v9, %v1127_v25  ;;  %v464_v12 = vadd.f32 %v463_v10, %v1129_v26  ;;  %v543_v13 = vpop.f32.mrb[25].mxu1  ;;  %v465_v14 = vpop.f32.mrb[26].mxu0 }
 0x117   : > { %843 = vst [vmem:[%s1142_s26 + $0xd8] sm:$0xff] %v1012_v7  ;;  %v584_v15 = vmax.f32 %v462_v8, 0.0  ;;  %v544_v16 = vadd.f32 %v543_v13, %v1129_v26  ;;  %v466_v17 = vadd.f32 %v465_v14, %v1127_v25  ;;  %v545_v18 = vpop.f32.mrb[26].mxu1  ;;  %v467_v19 = vpop.f32.mrb[27].mxu0 }
 0x118   : > { %v616_v20 = vmax.f32 %v542_v11, 0.0  ;;  %v585_v21 = vmax.f32 %v464_v12, 0.0  ;;  %v546_v22 = vadd.f32 %v545_v18, %v1127_v25  ;;  %v468_v23 = vadd.f32 %v467_v19, %v1129_v26  ;;  %v547_v24 = vpop.f32.mrb[27].mxu1 }
 0x119   : > { %v617_v27 = vmax.f32 %v544_v16, 0.0  ;;  %v586_v28 = vmax.f32 %v466_v17, 0.0  ;;  %v548_v29 = vadd.f32 %v547_v24, %v1129_v26 }
 0x11a   : > { %v997_v30 = vpack.c.bf16 %v585_v21, %v584_v15  ;;  %v618_v31 = vmax.f32 %v546_v22, 0.0  ;;  %v587_v32 = vmax.f32 %v468_v23, 0.0 }
 0x11b   : > { %v1013_v33 = vpack.c.bf16 %v617_v27, %v616_v20  ;;  %v619_v34 = vmax.f32 %v548_v29, 0.0 }
 0x11c   : > { %828 = vst [vmem:[%s1142_s26 + $0x60] sm:$0xff] %v997_v30  ;;  %v998_v35 = vpack.c.bf16 %v587_v32, %v586_v28  ;;  %v471_v36 = vpop.f32.mrb[28].mxu0 }
 0x11d   : > { %844 = vst [vmem:[%s1142_s26 + $0xe0] sm:$0xff] %v1013_v33  ;;  %v1014_v37 = vpack.c.bf16 %v619_v34, %v618_v31  ;;  %v472_v38 = vadd.f32 %v471_v36, %v1127_v25  ;;  %v551_v39 = vpop.f32.mrb[28].mxu1  ;;  %v473_v40 = vpop.f32.mrb[29].mxu0 }
 0x11e   : > { %829 = vst [vmem:[%s1142_s26 + $0x68] sm:$0xff] %v998_v35  ;;  %v552_v41 = vadd.f32 %v551_v39, %v1127_v25  ;;  %v474_v42 = vadd.f32 %v473_v40, %v1129_v26  ;;  %v553_v43 = vpop.f32.mrb[29].mxu1  ;;  %v475_v44 = vpop.f32.mrb[30].mxu0 }
 0x11f   : > { %845 = vst [vmem:[%s1142_s26 + $0xe8] sm:$0xff] %v1014_v37  ;;  %v588_v45 = vmax.f32 %v472_v38, 0.0  ;;  %v554_v46 = vadd.f32 %v553_v43, %v1129_v26  ;;  %v476_v47 = vadd.f32 %v475_v44, %v1127_v25  ;;  %v555_v48 = vpop.f32.mrb[30].mxu1  ;;  %v477_v49 = vpop.f32.mrb[31].mxu0 }
 0x120   : > { %v620_v50 = vmax.f32 %v552_v41, 0.0  ;;  %v589_v51 = vmax.f32 %v474_v42, 0.0  ;;  %v556_v52 = vadd.f32 %v555_v48, %v1127_v25  ;;  %v478_v53 = vadd.f32 %v477_v49, %v1129_v26  ;;  %v557_v54 = vpop.f32.mrb[31].mxu1 }
 0x121   : > { %v621_v55 = vmax.f32 %v554_v46, 0.0  ;;  %v590_v56 = vmax.f32 %v476_v47, 0.0  ;;  %v558_v57 = vadd.f32 %v557_v54, %v1129_v26 }
 0x122   : > { %v999_v58 = vpack.c.bf16 %v589_v51, %v588_v45  ;;  %v622_v59 = vmax.f32 %v556_v52, 0.0  ;;  %v591_v60 = vmax.f32 %v478_v53, 0.0 }
 0x123   : > { %v1015_v61 = vpack.c.bf16 %v621_v55, %v620_v50  ;;  %v623_v62 = vmax.f32 %v558_v57, 0.0 }
 0x124   : > { %830 = vst [vmem:[%s1142_s26 + $0x70] sm:$0xff] %v999_v58  ;;  %v1000_v63 = vpack.c.bf16 %v591_v60, %v590_v56 }
 0x125   : > { %846 = vst [vmem:[%s1142_s26 + $0xf0] sm:$0xff] %v1015_v61  ;;  %v1016_v0 = vpack.c.bf16 %v623_v62, %v622_v59 }
 0x126   : > { %831 = vst [vmem:[%s1142_s26 + $0x78] sm:$0xff] %v1000_v63 }
 0x127   : > { %847 = vst [vmem:[%s1142_s26 + $0xf8] sm:$0xff] %v1016_v0 }
 0x128 PF: > { %s13_s12 = sadd.s32 1, %s1050_s12  }
 0x129   : > { %p10_p4 = scmp.ge.s32.totalorder %s13_s12, 4  }
 0x12b   :  { %12 = sbr.rel (!%p10_p4) target bundleno = 1 (0x1), region = 62 }

// kernel: inception_d_forward.8
= control target key start
LH: loop header
LB: loop body
LE: loop exit
PB: predicated region body
PF: predicated region fallthrough
CT: control target
= control target key end

     0   :  { %s4000_s12 = smov 0   ;;  %s5225_s0 = inlined_call_operand.vmem [shape: bf16[2,16,22,128], index: 0, kind: input, shape index: {}]   ;;  %s5226_s1 = inlined_call_operand.vmem [shape: bf16[896,128], index: 1, kind: input, shape index: {}]   ;;  %s5227_s2 = inlined_call_operand.vmem [shape: f32[1,128], index: 2, kind: input, shape index: {}]   ;;  %s5228_s3 = inlined_call_operand.vmem [shape: bf16[2,256,128], index: 3, kind: output, shape index: {}]  }
   0x1 LB: > { %s3012_s13 = sadd.s32 4294967295, %s3978_s12   ;;  %p3016_p0 = scmp.ge.s32.totalorder %s3978_s12, 1  ;;  %s3978_s12 = sphi %s4000_s12, %s13_s12  }
   0x2   : > { %p137_p1 = scmp.lt.s32.totalorder %s3978_s12, 3 }
   0x4   : > { %p138_p2 = pnand %p3016_p0, %p137_p1 }
   0x6   : > { %141 = sbr.rel (%p138_p2) target bundleno = 488 (0x1e8), region = 32 }
   0xd   : > { %v3784_v0 = vld [vmem:[%s5226_s1 + $0x40] sm:$0xff]   ;;  %p161_p3 = scmp.lt.s32.totalorder %s3012_s13, 1  ;;  %v3786_v2 = vld [vmem:[%s5226_s1 + $0x48] sm:$0xff]   ;;  %v3788_v4 = vld [vmem:[%s5226_s1 + $0x50] sm:$0xff]   ;;  %vm444_vm0 = vsmask.f32 7424 }
   0xe   : > { %v3785_v1 = vld [vmem:[%s5226_s1] sm:$0xff]   ;;  %3351 = vmatprep.subr.bf16.mxu0 %v3784_v0  ;;  %3759 = vmatprep.subr.bf16.mxu1 %v3784_v0  ;;  %v3787_v3 = vld [vmem:[%s5226_s1 + $0x8] sm:$0xff]   ;;  %v3789_v5 = vld [vmem:[%s5226_s1 + $0x10] sm:$0xff]   ;;  %vm701_vm1 = vcmask 1046528   ;;  %vm814_vm2 = vsmask.f32 6400 }
   0xf   : > { %3352 = vmatpush3.bf16.msra.mxu0 %v3785_v1  ;;  %3767 = vmatpush3.bf16.msra.mxu1 %v3785_v1  ;;  %s5233_s13 = smov (!%p161_p3, %s3012_s13), 1  ;;  %v3790_v6 = vld [vmem:[%s5226_s1 + $0x58] sm:$0xff]   ;;  %v3792_v8 = vld [vmem:[%s5226_s1 + $0x60] sm:$0xff]   ;;  %v3794_v10 = vld [vmem:[%s5226_s1 + $0x68] sm:$0xff]   ;;  %vm1151_vm3 = vcmask 1045504   ;;  %vm1601_vm5 = vcmask 1044480  }
  0x10   : > { %3353 = vmatprep.subr.bf16.mxu0 %v3786_v2  ;;  %3760 = vmatprep.subr.bf16.mxu1 %v3786_v2  ;;  %s3775_s28 = smul.u32 192, %s5233_s13  ;;  %v3791_v7 = vld [vmem:[%s5226_s1 + $0x18] sm:$0xff]   ;;  %v3793_v9 = vld [vmem:[%s5226_s1 + $0x20] sm:$0xff]   ;;  %v3795_v17 = vld [vmem:[%s5226_s1 + $0x28] sm:$0xff]   ;;  %vm1264_vm4 = vsmask.f32 5376 }
  0x11   : > { %v3796_v21 = vld [vmem:[%s5226_s1 + $0x70] sm:$0xff]   ;;  %v3798_v31 = vld [vmem:[%s5226_s1 + $0x78] sm:$0xff]   ;;  %v3804_v37 = vld [vmem:[%s5226_s1 + $0xc0] sm:$0xff]   ;;  %s3223_s7 = sshll.u32 %s5233_s13, 7 }
  0x12   : > { %s4041_s8 = scalar_lea.vmem %s5225_s0, %s3775_s28  ;;  %v3797_v26 = vld [vmem:[%s5226_s1 + $0x30] sm:$0xff]   ;;  %v3799_v34 = vld [vmem:[%s5226_s1 + $0x38] sm:$0xff]   ;;  %v3805_v40 = vld [vmem:[%s5226_s1 + $0x140] sm:$0xff]   ;;  %s5164_s11 = scalar_lea.vmem %s5228_s3, %s3223_s7 }
  0x13   : > { %3354 = vmatpush3.bf16.msra.mxu0 %v3787_v3  ;;  %3768 = vmatpush3.bf16.msra.mxu1 %v3787_v3  ;;  %v172_v11 = vld [vmem:[%s4041_s8] sm:$0xf]  ;;  %v4051_v12 = vld [vmem:[%s4041_s8 + $0x4] sm:$0xf]  ;;  %v196_v15 = vld [vmem:[%s4041_s8 + $0x90] sm:$0xf] }
  0x14   : > { %3355 = vmatprep.subr.bf16.mxu0 %v3788_v4  ;;  %3761 = vmatprep.subr.bf16.mxu1 %v3788_v4  ;;  %v4054_v13 = vcombine.low %v172_v11, %v4051_v12  ;;  %v4057_v14 = vld [vmem:[%s4041_s8 + $0x8] ss:$0 sps:$4 sm:$0x11]   ;;  %v197_v16 = vld [vmem:[%s4041_s8 + $0x94] sm:$0xf]  ;;  %v3806_v46 = vld [vmem:[%s5226_s1 + $0x80] sm:$0xff]  }
  0x15   : > { %v453_v20 = vshll.u32 %v4057_v14, 16  ;;  %v3032_v22 = vcombine.low %v196_v15, %v197_v16  ;;  %v3803_v23 = vld [vmem:[%s4041_s8 + $0x98] ss:$0 sps:$4 sm:$0x11]   ;;  %v174_v38 = vld [vmem:[%s4041_s8 + $0xc] sm:$0xf] }
  0x16   : > { %v446_v18 = vshrl.u32 %v4054_v13, 16  ;;  %v448_v19 = vshll.u32 %v4054_v13, 16  ;;  %v597_v29 = vshll.u32 %v3803_v23, 16  ;;  %v4086_v39 = vld [vmem:[%s4041_s8 + $0x10] sm:$0xf]  ;;  %v3807_v47 = vld [vmem:[%s5226_s1 + $0x100] sm:$0xff]  }
  0x17   : > { %3356 = vmatpush3.bf16.msra.mxu0 %v3789_v5  ;;  %3769 = vmatpush3.bf16.msra.mxu1 %v3789_v5  ;;  %v455_v25 = vrot.slane %v453_v20, 1  ;;  %v590_v27 = vshrl.u32 %v3032_v22, 16  ;;  %v592_v28 = vshll.u32 %v3032_v22, 16  ;;  %v4092_v41 = vcombine.low %v174_v38, %v4086_v39  ;;  %v4095_v42 = vld [vmem:[%s4041_s8 + $0x14] ss:$0 sps:$4 sm:$0x11]  }
  0x18   : > { %3357 = vmatprep.subr.bf16.mxu0 %v3790_v6  ;;  %3762 = vmatprep.subr.bf16.mxu1 %v3790_v6  ;;  %v450_v24 = vrot.slane %v448_v19, 1  ;;  %v599_v33 = vrot.slane %v597_v29, 1  ;;  %v198_v44 = vld [vmem:[%s4041_s8 + $0x9c] sm:$0xf]  ;;  %v199_v45 = vld [vmem:[%s4041_s8 + $0xa0] sm:$0xf] }
  0x19   : > { %v594_v32 = vrot.slane %v592_v28, 1  ;;  %v458_v48 = vshrl.u32 %v4092_v41, 16  ;;  %v460_v49 = vshll.u32 %v4092_v41, 16  ;;  %v465_v50 = vshll.u32 %v4095_v42, 16  ;;  %v3808_v57 = vld [vmem:[%s5226_s1 + $0xc8] sm:$0xff]   ;;  %v3814_v2 = vld [vmem:[%s5226_s1 + $0xd0] sm:$0xff]  }
  0x1a   : > { %v451_v30 = vor.u32 %v450_v24, %v446_v18  ;;  %v3033_v51 = vcombine.low %v198_v44, %v199_v45  ;;  %v3813_v52 = vld [vmem:[%s4041_s8 + $0xa4] ss:$0 sps:$4 sm:$0x11]   ;;  %v3809_v59 = vld [vmem:[%s5226_s1 + $0x88] sm:$0xff]   ;;  %v176_v4 = vld [vmem:[%s4041_s8 + $0x18] sm:$0xf] }
  0x1b   : > { %3358 = vmatpush3.bf16.msra.mxu0 %v3791_v7  ;;  %3770 = vmatpush3.bf16.msra.mxu1 %v3791_v7  ;;  %v595_v36 = vor.u32 %v594_v32, %v590_v27  ;;  %v462_v53 = vrot.slane %v460_v49, 1  ;;  %v467_v54 = vrot.slane %v465_v50, 1  ;;  %v609_v58 = vshll.u32 %v3813_v52, 16  ;;  %v3817_v63 = vld [vmem:[%s5226_s1 + $0x148] sm:$0xff]   ;;  %v4129_v5 = vld [vmem:[%s4041_s8 + $0x1c] sm:$0xf] }
  0x1c   : > { %3359 = vmatprep.subr.bf16.mxu0 %v3792_v8  ;;  %3763 = vmatprep.subr.bf16.mxu1 %v3792_v8  ;;  %v456_v35 = vsel %vm444_vm0, %v451_v30, %v455_v25  ;;  %v602_v55 = vshrl.u32 %v3033_v51, 16  ;;  %v604_v56 = vshll.u32 %v3033_v51, 16  ;;  %v3819_v3 = vld [vmem:[%s5226_s1 + $0x108] sm:$0xff]   ;;  %v3815_v7 = vld [vmem:[%s5226_s1 + $0x90] sm:$0xff]   ;;  %v3022_v8 = vcombine.low %v176_v4, %v4129_v5  ;;  %v3824_v30 = vld [vmem:[%s5226_s1 + $0xe0] sm:$0xff]  }
  0x1d   : > { %2153 = vmatprep.mubr.bf16.mxu0 %v456_v35  ;;  %v600_v43 = vsel %vm444_vm0, %v595_v36, %v599_v33  ;;  %v463_v60 = vor.u32 %v462_v53, %v458_v48  ;;  %v611_v62 = vrot.slane %v609_v58, 1  ;;  %v200_v11 = vld [vmem:[%s4041_s8 + $0xa8] sm:$0xf]  ;;  %v3823_v19 = vld [vmem:[%s4041_s8 + $0xb0] ss:$0 sps:$4 sm:$0x11]  }
  0x1e   : > { %2249 = vmatprep.mubr.bf16.mxu1 %v600_v43  ;;  %v606_v61 = vrot.slane %v604_v56, 1  ;;  %v470_v15 = vshrl.u32 %v3022_v8, 16  ;;  %v472_v16 = vshll.u32 %v3022_v8, 16  ;;  %v703_v24 = vrot.slane %v4057_v14, 1  ;;  %v4156_v32 = vld [vmem:[%s4041_s8 + $0x28] sm:$0xf] }
  0x1f   : > { %3360 = vmatpush3.bf16.msra.mxu0 %v3793_v9  ;;  %3771 = vmatpush3.bf16.msra.mxu1 %v3793_v9  ;;  %v468_v0 = vsel %vm444_vm0, %v463_v60, %v467_v54  ;;  %v4137_v9 = vld [vmem:[%s4041_s8 + $0x20] ss:$0 sps:$4 sm:$0x11]   ;;  %v621_v25 = vshll.u32 %v3823_v19, 16  ;;  %v3826_v38 = vld [vmem:[%s5226_s1 + $0xe8] sm:$0xff]   ;;  %v3833_v53 = vld [vmem:[%s5226_s1 + $0x150] sm:$0xff]  }
  0x20   : > { %3361 = vmatprep.subr.bf16.mxu0 %v3794_v10  ;;  %3764 = vmatprep.subr.bf16.mxu1 %v3794_v10  ;;  %v607_v1 = vor.u32 %v606_v61, %v602_v55  ;;  %v3816_v10 = vld [vmem:[%s5226_s1 + $0xd8] sm:$0xff]   ;;  %v474_v20 = vrot.slane %v472_v16, 1  ;;  %v3825_v35 = vld [vmem:[%s5226_s1 + $0xa0] sm:$0xff]   ;;  %v3827_v49 = vld [vmem:[%s5226_s1 + $0xa8] sm:$0xff]   ;;  %v709_v4 = vrot.slane %v4137_v9, 1 }
  0x21   : > { %v623_v29 = vrot.slane %v621_v25, 1  ;;  %v3832_v58 = vld [vmem:[%s5226_s1 + $0xf0] sm:$0xff]   ;;  %v4214_v19 = vld [vmem:[%s4041_s8 + $0x8] ss:$0 sps:$4 sm:$0x33]  }
  0x22   : > { %v612_v6 = vsel %vm444_vm0, %v607_v1, %v611_v62  ;;  %v475_v27 = vor.u32 %v474_v20, %v470_v15  ;;  %v3835_v60 = vld [vmem:[%s5226_s1 + $0x110] sm:$0xff]   ;;  %v3836_v1 = vld [vmem:[%s5226_s1 + $0xf8] sm:$0xff]   ;;  %v824_v25 = vshrl.u32 %v4214_v19, 16 }
  0x23   : > { %3362 = vmatpush3.bf16.msra.mxu0 %v3795_v17  ;;  %3772 = vmatpush3.bf16.msra.mxu1 %v3795_v17  ;;  %v477_v17 = vshll.u32 %v4137_v9, 16  ;;  %v3834_v62 = vld [vmem:[%s5226_s1 + $0xb0] sm:$0xff]   ;;  %v222_v14 = vld [vmem:[%s4041_s8 + $0x18] sm:$0xe] }
  0x24   : > { %3363 = vmatprep.subr.bf16.mxu0 %v3796_v21  ;;  %3765 = vmatprep.subr.bf16.mxu1 %v3796_v21 }
  0x25   : > { %v479_v21 = vrot.slane %v477_v17, 1 }
  0x27   : > { %3364 = vmatpush3.bf16.msra.mxu0 %v3797_v26  ;;  %3773 = vmatpush3.bf16.msra.mxu1 %v3797_v26  ;;  %v3818_v26 = vld [vmem:[%s5226_s1 + $0x98] sm:$0xff]   ;;  %v480_v33 = vsel %vm444_vm0, %v475_v27, %v479_v21 }
  0x28   : > { %3365 = vmatprep.subr.bf16.mxu0 %v3798_v31  ;;  %3766 = vmatprep.subr.bf16.mxu1 %v3798_v31  ;;  %v178_v31 = vld [vmem:[%s4041_s8 + $0x24] sm:$0xf] }
  0x29   : > { %v3023_v36 = vcombine.low %v178_v31, %v4156_v32  ;;  %v3844_v31 = vld [vmem:[%s5226_s1 + $0x118] sm:$0xff]  }
  0x2b   : > { %3366 = vmatpush3.bf16.msra.mxu0 %v3799_v34  ;;  %3774 = vmatpush3.bf16.msra.mxu1 %v3799_v34  ;;  %v482_v44 = vshrl.u32 %v3023_v36, 16  ;;  %v484_v45 = vshll.u32 %v3023_v36, 16 }
  0x2c   : > { %3463 = vmatprep.subr.bf16.mxu1 %v3804_v37  ;;  %3575 = vmatprep.subr.bf16.mxu0 %v3805_v40  ;;  %v4164_v37 = vld [vmem:[%s4041_s8 + $0x2c] ss:$0 sps:$4 sm:$0x11]   ;;  %v202_v40 = vld [vmem:[%s4041_s8 + $0xb4] sm:$0xf] }
  0x2d   : > { %v486_v50 = vrot.slane %v484_v45, 1  ;;  %v3854_v45 = vld [vmem:[%s5226_s1 + $0x120] sm:$0xff]  }
  0x2e   : > { %2154 = vmatmul.mubr.bf16.vlgmr.msra.gmra.mrb[0].mxu0 %v4054_v13  ;;  %2250 = vmatmul.mubr.bf16.vlgmr.msra.gmra.mrb[0].mxu1 %v3032_v22  ;;  %v201_v13 = vld [vmem:[%s4041_s8 + $0xac] sm:$0xf] }
  0x2f   : > { %3464 = vmatpush3.bf16.msra.mxu1 %v3806_v46  ;;  %3576 = vmatpush3.bf16.msra.mxu0 %v3807_v47  ;;  %v3034_v18 = vcombine.low %v200_v11, %v201_v13  ;;  %v489_v46 = vshll.u32 %v4164_v37, 16  ;;  %v3831_v47 = vld [vmem:[%s4041_s8 + $0xbc] ss:$0 sps:$4 sm:$0x11]   ;;  %v487_v56 = vor.u32 %v486_v50, %v482_v44  ;;  %v220_v11 = vld [vmem:[%s4041_s8] sm:$0xe] }
  0x30   : > { %3465 = vmatprep.subr.bf16.mxu1 %v3808_v57  ;;  %2161 = vmatprep.mubr.bf16.mxu0 %v468_v0  ;;  %v633_v52 = vshll.u32 %v3831_v47, 16  ;;  %v3837_v13 = vld [vmem:[%s5226_s1 + $0xb8] sm:$0xff]   ;;  %v4234_v44 = vld [vmem:[%s4041_s8 + $0x44] ss:$0 sps:$4 sm:$0x11]  }
  0x31   : > { %3577 = vmatprep.subr.bf16.mxu0 %v3817_v63  ;;  %2257 = vmatprep.mubr.bf16.mxu1 %v612_v6  ;;  %v614_v22 = vshrl.u32 %v3034_v18, 16  ;;  %v616_v23 = vshll.u32 %v3034_v18, 16  ;;  %v706_v63 = vrot.slane %v4095_v42, 1 }
  0x32   : > { %v635_v57 = vrot.slane %v633_v52, 1  ;;  %v513_v52 = vshll.u32 %v4234_v44, 16 }
  0x33   : > { %3466 = vmatpush3.bf16.msra.mxu1 %v3809_v59  ;;  %3578 = vmatpush3.bf16.msra.mxu0 %v3819_v3  ;;  %v618_v28 = vrot.slane %v616_v23, 1  ;;  %v4196_v3 = vld [vmem:[%s4041_s8 + $0x34] sm:$0xf] }
  0x34   : > { %3467 = vmatprep.subr.bf16.mxu1 %v3814_v2  ;;  %3579 = vmatprep.subr.bf16.mxu0 %v3833_v53  ;;  %v180_v2 = vld [vmem:[%s4041_s8 + $0x30] sm:$0xf] }
  0x35   : > { %v619_v34 = vor.u32 %v618_v28, %v614_v22  ;;  %v3024_v6 = vcombine.low %v180_v2, %v4196_v3 }
  0x36   : > { %2162 = vmatmul.mubr.bf16.gmra.mrb[4].mxu0 %v4092_v41  ;;  %2258 = vmatmul.mubr.bf16.gmra.mrb[4].mxu1 %v3033_v51  ;;  %v203_v41 = vld [vmem:[%s4041_s8 + $0xb8] sm:$0xf]  ;;  %v491_v51 = vrot.slane %v489_v46, 1 }
  0x37   : > { %3468 = vmatpush3.bf16.msra.mxu1 %v3815_v7  ;;  %2169 = vmatprep.mubr.bf16.mxu0 %v480_v33  ;;  %v624_v43 = vsel %vm444_vm0, %v619_v34, %v623_v29  ;;  %v3035_v48 = vcombine.low %v202_v40, %v203_v41  ;;  %v4201_v7 = vld [vmem:[%s4041_s8 + $0x38] ss:$0 sps:$4 sm:$0x11]   ;;  %v494_v15 = vshrl.u32 %v3024_v6, 16  ;;  %v496_v16 = vshll.u32 %v3024_v6, 16  ;;  %v3853_v33 = vld [vmem:[%s5226_s1 + $0x160] sm:$0xff]  }
  0x38   : > { %3469 = vmatprep.subr.bf16.mxu1 %v3816_v10  ;;  %2265 = vmatprep.mubr.bf16.mxu1 %v624_v43  ;;  %v492_v61 = vsel %vm444_vm0, %v487_v56, %v491_v51  ;;  %v501_v17 = vshll.u32 %v4201_v7, 16  ;;  %v826_v34 = vrot.slane %v824_v25, 1  ;;  %v4251_v56 = vld [vmem:[%s4041_s8 + $0x4c] sm:$0xf] }
  0x39   : > { %v626_v54 = vshrl.u32 %v3035_v48, 16  ;;  %v628_v55 = vshll.u32 %v3035_v48, 16  ;;  %3580 = vmatpush3.bf16.msra.mxu0 %v3835_v60  ;;  %v498_v20 = vrot.slane %v496_v16, 1 }
  0x3a   : > { %v503_v21 = vrot.slane %v501_v17, 1  ;;  %v3860_v17 = vld [vmem:[%s5226_s1 + $0x168] sm:$0xff]  }
  0x3b   : > { %3470 = vmatpush3.bf16.msra.mxu1 %v3818_v26  ;;  %v630_v59 = vrot.slane %v628_v55, 1  ;;  %v827_v26 = vshll.u32 %v4214_v19, 16  ;;  %v499_v28 = vor.u32 %v498_v20, %v494_v15 }
  0x3c   : > { %3471 = vmatprep.subr.bf16.mxu1 %v3824_v30 }
  0x3d   : > { %v631_v0 = vor.u32 %v630_v59, %v626_v54  ;;  %v504_v40 = vsel %vm444_vm0, %v499_v28, %v503_v21  ;;  %v4247_v54 = vld [vmem:[%s4041_s8 + $0x14] ss:$0 sps:$4 sm:$0x33]  }
  0x3e   : > { %2170 = vmatmul.mubr.bf16.gmra.mrb[8].mxu0 %v3022_v8  ;;  %2266 = vmatmul.mubr.bf16.gmra.mrb[8].mxu1 %v3034_v18  ;;  %v3842_v8 = vld [vmem:[%s5226_s1 + $0x158] sm:$0xff]   ;;  %v3052_v18 = vcombine.low %v220_v11, %v4051_v12  ;;  %v3843_v12 = vld [vmem:[%s5226_s1 + $0x180] sm:$0xff]   ;;  %v844_v60 = vshll.u32 %v4247_v54, 16  ;;  %v3855_v11 = vld [vmem:[%s5226_s1 + $0x188] sm:$0xff]  }
  0x3f   : > { %3472 = vmatpush3.bf16.msra.mxu1 %v3825_v35  ;;  %2177 = vmatprep.mubr.bf16.mxu0 %v492_v61  ;;  %v636_v10 = vsel %vm444_vm0, %v631_v0, %v635_v57  ;;  %v829_v35 = vrot.slane %v827_v26, 2  ;;  %v515_v57 = vrot.slane %v513_v52, 1  ;;  %v4260_v0 = vld [vmem:[%s4041_s8 + $0x50] ss:$0 sps:$4 sm:$0x11]  }
  0x40   : > { %3473 = vmatprep.subr.bf16.mxu1 %v3826_v38  ;;  %2273 = vmatprep.mubr.bf16.mxu1 %v636_v10  ;;  %v816_v22 = vshrl.u32 %v3052_v18, 16  ;;  %v819_v23 = vshll.u32 %v3052_v18, 16  ;;  %v702_v27 = vrot.slane %v3052_v18, 1  ;;  %v4229_v38 = vld [vmem:[%s4041_s8 + $0x40] sm:$0xf]  ;;  %v846_v15 = vrot.slane %v844_v60, 2 }
  0x41   : > { %3581 = vmatprep.subr.bf16.mxu0 %v3842_v8  ;;  %v830_v46 = vor.u32 %v829_v35, %v826_v34  ;;  %v3054_v8 = vcombine.low %v222_v14, %v4129_v5  ;;  %v4264_v10 = vld [vmem:[%s4041_s8 + $0x20] ss:$0 sps:$4 sm:$0x33]   ;;  %v525_v5 = vshll.u32 %v4260_v0, 16 }
  0x42   : > { %v818_v29 = vrot.slane %v816_v22, 1  ;;  %v821_v30 = vrot.slane %v819_v23, 2  ;;  %3582 = vmatpush3.bf16.msra.mxu0 %v3844_v31  ;;  %v704_v47 = vsel %vm701_vm1, %v702_v27, %v703_v24  ;;  %v858_v26 = vshrl.u32 %v4264_v10, 16  ;;  %v3861_v27 = vld [vmem:[%s5226_s1 + $0x128] sm:$0xff]  }
  0x43   : > { %3474 = vmatpush3.bf16.msra.mxu1 %v3827_v49  ;;  %v184_v49 = vld [vmem:[%s4041_s8 + $0x48] sm:$0xf]  ;;  %3583 = vmatprep.subr.bf16.mxu0 %v3853_v33  ;;  %v850_v23 = vshrl.u32 %v3054_v8, 16  ;;  %v853_v25 = vshll.u32 %v3054_v8, 16 }
  0x44   : > { %3475 = vmatprep.subr.bf16.mxu1 %v3832_v58  ;;  %v822_v41 = vor.u32 %v821_v30, %v818_v29  ;;  %v527_v29 = vrot.slane %v525_v5, 1  ;;  %v861_v30 = vshll.u32 %v4264_v10, 16  ;;  %v860_v35 = vrot.slane %v858_v26, 1 }
  0x45   : > { %v852_v33 = vrot.slane %v850_v23, 1  ;;  %v855_v34 = vrot.slane %v853_v25, 2 }
  0x46   : > { %2178 = vmatmul.mubr.bf16.gmra.mrb[12].mxu0 %v3023_v36  ;;  %2274 = vmatmul.mubr.bf16.gmra.mrb[12].mxu1 %v3035_v48  ;;  %v182_v36 = vld [vmem:[%s4041_s8 + $0x3c] sm:$0xf]  ;;  %v221_v48 = vld [vmem:[%s4041_s8 + $0xc] sm:$0xe]  ;;  %v831_v55 = vsel %vm814_vm2, %v822_v41, %v830_v46  ;;  %v4290_v41 = vld [vmem:[%s4041_s8 + $0x58] sm:$0xf] }
  0x47   : > { %3476 = vmatpush3.bf16.msra.mxu1 %v3834_v62  ;;  %v3025_v43 = vcombine.low %v182_v36, %v4229_v38  ;;  %2185 = vmatprep.mubr.bf16.mxu0 %v504_v40  ;;  %v3053_v53 = vcombine.low %v221_v48, %v4086_v39  ;;  %v841_v39 = vshrl.u32 %v4247_v54, 16  ;;  %v4257_v62 = vcombine.low %v184_v49, %v4251_v56  ;;  %v3866_v36 = vld [vmem:[%s5226_s1 + $0x190] sm:$0xff]   ;;  %v4297_v48 = vld [vmem:[%s4041_s8 + $0x5c] ss:$0 sps:$4 sm:$0x11]  }
  0x48   : > { %3477 = vmatprep.subr.bf16.mxu1 %v3836_v1  ;;  %2314 = vmatprep.mubr.bf16.mxu1 %v831_v55  ;;  %v186_v40 = vld [vmem:[%s4041_s8 + $0x54] sm:$0xf]  ;;  %v708_v46 = vrot.slane %v3054_v8, 1  ;;  %v537_v55 = vshll.u32 %v4297_v48, 16  ;;  %v4316_v8 = vld [vmem:[%s4041_s8 + $0x64] sm:$0xf] }
  0x49   : > { %v506_v50 = vshrl.u32 %v3025_v43, 16  ;;  %v508_v51 = vshll.u32 %v3025_v43, 16  ;;  %v833_v58 = vshrl.u32 %v3053_v53, 16  ;;  %v836_v59 = vshll.u32 %v3053_v53, 16  ;;  %3584 = vmatpush3.bf16.msra.mxu0 %v3854_v45 }
  0x4a   : > { %v705_v61 = vrot.slane %v3053_v53, 1  ;;  %v518_v16 = vshrl.u32 %v4257_v62, 16  ;;  %v520_v21 = vshll.u32 %v4257_v62, 16  ;;  %3585 = vmatprep.subr.bf16.mxu0 %v3860_v17  ;;  %v712_v45 = vrot.slane %v4164_v37, 1 }
  0x4b   : > { %3478 = vmatpush3.bf16.msra.mxu1 %v3837_v13  ;;  %v510_v24 = vrot.slane %v508_v51, 1  ;;  %v835_v2 = vrot.slane %v833_v58, 1  ;;  %v843_v13 = vrot.slane %v841_v39, 1  ;;  %v223_v51 = vld [vmem:[%s4041_s8 + $0x24] sm:$0xe] }
  0x4c   : > { %3711 = vmatprep.subr.bf16.mxu1 %v3843_v12  ;;  %v522_v28 = vrot.slane %v520_v21, 1  ;;  %v3055_v14 = vcombine.low %v223_v51, %v4156_v32 }
  0x4d   : > { %v511_v1 = vor.u32 %v510_v24, %v506_v50  ;;  %v847_v22 = vor.u32 %v846_v15, %v843_v13  ;;  %3586 = vmatpush3.bf16.msra.mxu0 %v3861_v27  ;;  %v4306_v24 = vld [vmem:[%s4041_s8 + $0x2c] ss:$0 sps:$4 sm:$0x33]   ;;  %v4340_v27 = vld [vmem:[%s4041_s8 + $0x38] ss:$0 sps:$4 sm:$0x33]  }
  0x4e   : > { %2186 = vmatmul.mubr.bf16.gmra.mrb[16].mxu0 %v3024_v6  ;;  %2315 = vmatmul.mubr.bf16.vlgmr.msra.gmra.mrb[16].mxu1 %v704_v47  ;;  %v838_v6 = vrot.slane %v836_v59, 2  ;;  %v523_v42 = vor.u32 %v522_v28, %v518_v16  ;;  %v4294_v47 = vcombine.low %v186_v40, %v4290_v41  ;;  %v539_v59 = vrot.slane %v537_v55, 1 }
  0x4f   : > { %3712 = vmatpush3.bf16.msra.mxu1 %v3843_v12  ;;  %v516_v18 = vsel %vm444_vm0, %v511_v1, %v515_v57  ;;  %v707_v12 = vsel %vm701_vm1, %v705_v61, %v706_v63  ;;  %v863_v63 = vrot.slane %v861_v30, 2  ;;  %v867_v39 = vshrl.u32 %v3055_v14, 16  ;;  %v188_v61 = vld [vmem:[%s4041_s8 + $0x60] sm:$0xf]  ;;  %v190_v30 = vld [vmem:[%s4041_s8 + $0x6c] sm:$0xf] }
  0x50   : > { %v839_v20 = vor.u32 %v838_v6, %v835_v2  ;;  %3713 = vmatprep.subr.bf16.mxu1 %v3855_v11  ;;  %2193 = vmatprep.mubr.bf16.mxu0 %v516_v18  ;;  %v528_v49 = vsel %vm444_vm0, %v523_v42, %v527_v29  ;;  %v530_v52 = vshrl.u32 %v4294_v47, 16  ;;  %v532_v53 = vshll.u32 %v4294_v47, 16  ;;  %v3877_v42 = vld [vmem:[%s5226_s1 + $0x178] sm:$0xff]  }
  0x51   : > { %v864_v50 = vor.u32 %v863_v63, %v860_v35  ;;  %v870_v60 = vshll.u32 %v3055_v14, 16  ;;  %v710_v1 = vsel %vm701_vm1, %v708_v46, %v709_v4  ;;  %v875_v2 = vshrl.u32 %v4306_v24, 16  ;;  %v224_v4 = vld [vmem:[%s4041_s8 + $0x30] sm:$0xe]  ;;  %v225_v46 = vld [vmem:[%s4041_s8 + $0x3c] sm:$0xe] }
  0x52   : > { %v848_v31 = vsel %vm814_vm2, %v839_v20, %v847_v22  ;;  %v534_v58 = vrot.slane %v532_v53, 1  ;;  %v878_v32 = vshll.u32 %v4306_v24, 16  ;;  %v711_v6 = vrot.slane %v3055_v14, 1  ;;  %v4327_v20 = vld [vmem:[%s4041_s8 + $0x68] ss:$0 sps:$4 sm:$0x11]  }
  0x53   : > { %3714 = vmatpush3.bf16.msra.mxu1 %v3855_v11  ;;  %2322 = vmatprep.mubr.bf16.mxu1 %v848_v31  ;;  %v3871_v11 = vld [vmem:[%s5226_s1 + $0x170] sm:$0xff]   ;;  %v869_v15 = vrot.slane %v867_v39, 1  ;;  %v872_v16 = vrot.slane %v870_v60, 2  ;;  %v4323_v9 = vcombine.low %v188_v61, %v4316_v8  ;;  %v877_v17 = vrot.slane %v875_v2, 1 }
  0x54   : > { %3715 = vmatprep.subr.bf16.mxu1 %v3866_v36  ;;  %v535_v13 = vor.u32 %v534_v58, %v530_v52  ;;  %v880_v18 = vrot.slane %v878_v32, 2  ;;  %v4330_v21 = vcombine.low %v224_v4, %v4196_v3  ;;  %3587 = vmatprep.subr.bf16.mxu0 %v3871_v11  ;;  %v549_v3 = vshll.u32 %v4327_v20, 16  ;;  %v4363_v52 = vld [vmem:[%s4041_s8 + $0x74] ss:$0 sps:$4 sm:$0x11]   ;;  %v3879_v32 = vld [vmem:[%s5226_s1 + $0x138] sm:$0xff]  }
  0x55   : > { %v873_v22 = vor.u32 %v872_v16, %v869_v15  ;;  %v542_v23 = vshrl.u32 %v4323_v9, 16  ;;  %v544_v25 = vshll.u32 %v4323_v9, 16  ;;  %v892_v40 = vshrl.u32 %v4340_v27, 16  ;;  %v4371_v58 = vld [vmem:[%s4041_s8 + $0x44] ss:$0 sps:$4 sm:$0x33]  }
  0x56   : > { %2194 = vmatmul.mubr.bf16.gmra.mrb[20].mxu0 %v3025_v43  ;;  %2323 = vmatmul.mubr.bf16.gmra.mrb[20].mxu1 %v707_v12  ;;  %v856_v43 = vor.u32 %v855_v34, %v852_v33  ;;  %v540_v5 = vsel %vm444_vm0, %v535_v13, %v539_v59  ;;  %v881_v26 = vor.u32 %v880_v18, %v877_v17  ;;  %v884_v12 = vshrl.u32 %v4330_v21, 16 }
  0x57   : > { %3716 = vmatpush3.bf16.msra.mxu1 %v3866_v36  ;;  %2201 = vmatprep.mubr.bf16.mxu0 %v528_v49  ;;  %v887_v28 = vshll.u32 %v4330_v21, 16  ;;  %v546_v29 = vrot.slane %v544_v25, 1  ;;  %v551_v33 = vrot.slane %v549_v3, 1  ;;  %v4347_v36 = vld [vmem:[%s4041_s8 + $0x70] sm:$0xf]  ;;  %v713_v49 = vsel %vm701_vm1, %v711_v6, %v712_v45 }
  0x58   : > { %v865_v57 = vsel %vm814_vm2, %v856_v43, %v864_v50  ;;  %v882_v31 = vsel %vm814_vm2, %v873_v22, %v881_v26  ;;  %v886_v34 = vrot.slane %v884_v12, 1  ;;  %v895_v43 = vshll.u32 %v4340_v27, 16  ;;  %v4393_v22 = vld [vmem:[%s4041_s8 + $0x7c] sm:$0xf] }
  0x59   : > { %2330 = vmatprep.mubr.bf16.mxu1 %v865_v57  ;;  %v889_v35 = vrot.slane %v887_v28, 2  ;;  %v547_v63 = vor.u32 %v546_v29, %v542_v23  ;;  %v715_v50 = vrot.slane %v4201_v7, 1  ;;  %v4360_v51 = vcombine.low %v190_v30, %v4347_v36  ;;  %v3878_v7 = vld [vmem:[%s5226_s1 + $0x198] sm:$0xff]   ;;  %v4400_v12 = vld [vmem:[%s4041_s8 + $0x80] ss:$0 sps:$4 sm:$0x11]  }
  0x5a   : > { %v4366_v53 = vcombine.low %v225_v46, %v4229_v38  ;;  %v894_v57 = vrot.slane %v892_v40, 1  ;;  %v897_v37 = vrot.slane %v895_v43, 2  ;;  %v561_v39 = vshll.u32 %v4363_v52, 16  ;;  %3717 = vmatprep.subr.bf16.mxu1 %v3878_v7  ;;  %v226_v28 = vld [vmem:[%s4041_s8 + $0x48] sm:$0xe] }
  0x5b   : > { %v552_v55 = vsel %vm444_vm0, %v547_v63, %v551_v33  ;;  %v890_v14 = vor.u32 %v889_v35, %v886_v34  ;;  %v554_v45 = vshrl.u32 %v4360_v51, 16  ;;  %v556_v59 = vshll.u32 %v4360_v51, 16  ;;  %3718 = vmatpush3.bf16.msra.mxu1 %v3878_v7  ;;  %v4409_v33 = vld [vmem:[%s4041_s8 + $0x50] ss:$0 sps:$4 sm:$0x33]  }
  0x5c   : > { %v898_v60 = vor.u32 %v897_v37, %v894_v57  ;;  %v904_v61 = vshll.u32 %v4366_v53, 16  ;;  %v912_v2 = vshll.u32 %v4371_v58, 16  ;;  %v714_v6 = vrot.slane %v4330_v21, 1  ;;  %v192_v21 = vld [vmem:[%s4041_s8 + $0x78] sm:$0xf] }
  0x5d   : > { %v558_v11 = vrot.slane %v556_v59, 1  ;;  %v563_v13 = vrot.slane %v561_v39, 1  ;;  %v718_v26 = vrot.slane %v4234_v44, 1  ;;  %v4397_v3 = vcombine.low %v192_v21, %v4393_v22  ;;  %v194_v39 = vld [vmem:[%s4041_s8 + $0x84] sm:$0xf] }
  0x5e   : > { %2202 = vmatmul.mubr.bf16.gmra.mrb[24].mxu0 %v4257_v62  ;;  %v3872_v62 = vld [vmem:[%s5226_s1 + $0x130] sm:$0xff]   ;;  %2331 = vmatmul.mubr.bf16.gmra.mrb[24].mxu1 %v710_v1  ;;  %v909_v1 = vshrl.u32 %v4371_v58, 16  ;;  %v899_v16 = vsel %vm814_vm2, %v890_v14, %v898_v60  ;;  %v906_v4 = vrot.slane %v904_v61, 2  ;;  %v914_v18 = vrot.slane %v912_v2, 2 }
  0x5f   : > { %2209 = vmatprep.mubr.bf16.mxu0 %v540_v5  ;;  %3588 = vmatpush3.bf16.msra.mxu0 %v3872_v62  ;;  %v3888_v62 = vld [vmem:[%s5226_s1 + $0x1a0] sm:$0xff]   ;;  %v559_v5 = vor.u32 %v558_v11, %v554_v45  ;;  %v716_v29 = vsel %vm701_vm1, %v714_v6, %v715_v50  ;;  %v721_v34 = vrot.slane %v4260_v0, 1  ;;  %v566_v35 = vshrl.u32 %v4397_v3, 16  ;;  %v227_v61 = vld [vmem:[%s4041_s8 + $0x54] sm:$0xe] }
  0x60   : > { %2338 = vmatprep.mubr.bf16.mxu1 %v882_v31  ;;  %3589 = vmatprep.subr.bf16.mxu0 %v3877_v42  ;;  %v911_v17 = vrot.slane %v909_v1, 1  ;;  %v4406_v31 = vcombine.low %v226_v28, %v4251_v56  ;;  %v568_v42 = vshll.u32 %v4397_v3, 16  ;;  %v573_v63 = vshll.u32 %v4400_v12, 16  ;;  %v3897_v56 = vld [vmem:[%s5226_s1 + $0x1a8] sm:$0xff]  }
  0x61   : > { %3719 = vmatprep.subr.bf16.mxu1 %v3888_v62  ;;  %v564_v30 = vsel %vm444_vm0, %v559_v5, %v563_v13  ;;  %v929_v46 = vshll.u32 %v4409_v33, 16  ;;  %v724_v14 = vrot.slane %v4297_v48, 1  ;;  %v3059_v6 = vcombine.low %v227_v61, %v4290_v41 }
  0x62   : > { %v915_v25 = vor.u32 %v914_v18, %v911_v17  ;;  %3720 = vmatpush3.bf16.msra.mxu1 %v3888_v62  ;;  %v918_v40 = vshrl.u32 %v4406_v31, 16  ;;  %v921_v43 = vshll.u32 %v4406_v31, 16  ;;  %v570_v50 = vrot.slane %v568_v42, 1  ;;  %v228_v17 = vld [vmem:[%s4041_s8 + $0x60] sm:$0xe] }
  0x63   : > { %3590 = vmatpush3.bf16.msra.mxu0 %v3879_v32  ;;  %3721 = vmatprep.subr.bf16.mxu1 %v3897_v56  ;;  %v931_v45 = vrot.slane %v929_v46, 2  ;;  %v4436_v32 = vld [vmem:[%s4041_s8 + $0x8c] ss:$0 sps:$4 sm:$0x11]   ;;  %v727_v11 = vrot.slane %v4327_v20, 1  ;;  %v935_v21 = vshrl.u32 %v3059_v6, 16 }
  0x64   : > { %v920_v57 = vrot.slane %v918_v40, 1  ;;  %v923_v37 = vrot.slane %v921_v43, 2  ;;  %v571_v59 = vor.u32 %v570_v50, %v566_v35  ;;  %v585_v5 = vshll.u32 %v4436_v32, 16  ;;  %v4458_v35 = vld [vmem:[%s4041_s8 + $0x68] ss:$0 sps:$4 sm:$0x33]  }
  0x65   : > { %v723_v28 = vrot.slane %v3059_v6, 1  ;;  %v3906_v40 = vld [vmem:[%s5226_s1 + $0x1b0] sm:$0xff]   ;;  %v4467_v50 = vld [vmem:[%s4041_s8 + $0x8] ss:$0 sps:$4 sm:$0x77]   ;;  %v1156_v20 = vrot.slane %v4247_v54, 2 }
  0x66   : > { %2210 = vmatmul.mubr.bf16.gmra.mrb[28].mxu0 %v4294_v47  ;;  %v901_v47 = vshrl.u32 %v4366_v53, 16  ;;  %2339 = vmatmul.mubr.bf16.gmra.mrb[28].mxu1 %v713_v49  ;;  %v717_v49 = vrot.slane %v4366_v53, 1  ;;  %v4428_v53 = vld [vmem:[%s4041_s8 + $0x88] sm:$0xf] }
  0x67   : > { %2217 = vmatprep.mubr.bf16.mxu0 %v552_v55  ;;  %2346 = vmatprep.mubr.bf16.mxu1 %v899_v16  ;;  %v575_v55 = vrot.slane %v573_v63, 1  ;;  %v4433_v2 = vcombine.low %v194_v39, %v4428_v53  ;;  %v720_v16 = vrot.slane %v4406_v31, 1  ;;  %v937_v31 = vrot.slane %v935_v21, 1  ;;  %v4491_v21 = vld [vmem:[%s4041_s8 + $0x74] ss:$0 sps:$4 sm:$0x33]  }
  0x68   : > { %v903_v15 = vrot.slane %v901_v47, 1  ;;  %3722 = vmatpush3.bf16.msra.mxu1 %v3897_v56  ;;  %v924_v47 = vor.u32 %v923_v37, %v920_v57  ;;  %v719_v13 = vsel %vm701_vm1, %v717_v49, %v718_v26  ;;  %v960_v49 = vshrl.u32 %v4458_v35, 16 }
  0x69   : > { %v576_v1 = vsel %vm444_vm0, %v571_v59, %v575_v55  ;;  %v578_v18 = vshrl.u32 %v4433_v2, 16  ;;  %v580_v62 = vshll.u32 %v4433_v2, 16  ;;  %v963_v37 = vshll.u32 %v4458_v35, 16  ;;  %3723 = vmatprep.subr.bf16.mxu1 %v3906_v40  ;;  %v3915_v59 = vld [vmem:[%s5226_s1 + $0x1b8] sm:$0xff]  }
  0x6a   : > { %v907_v23 = vor.u32 %v906_v4, %v903_v15  ;;  %v4444_v4 = vld [vmem:[%s4041_s8 + $0x5c] ss:$0 sps:$4 sm:$0x33]   ;;  %v962_v61 = vrot.slane %v960_v49, 1  ;;  %v725_v0 = vsel %vm701_vm1, %v723_v28, %v724_v14  ;;  %v977_v28 = vshrl.u32 %v4491_v21, 16 }
  0x6b   : > { %v946_v26 = vshll.u32 %v4444_v4, 16 }
  0x6c   : > { %v916_v44 = vsel %vm814_vm2, %v907_v23, %v915_v25  ;;  %v938_v23 = vshll.u32 %v3059_v6, 16  ;;  %v943_v25 = vshrl.u32 %v4444_v4, 16  ;;  %3724 = vmatpush3.bf16.msra.mxu1 %v3906_v40  ;;  %v965_v6 = vrot.slane %v963_v37, 2 }
  0x6d   : > { %v948_v56 = vrot.slane %v946_v26, 2  ;;  %3725 = vmatprep.subr.bf16.mxu1 %v3915_v59  ;;  %v979_v40 = vrot.slane %v977_v28, 1 }
  0x6e   : > { %2218 = vmatmul.mubr.bf16.gmra.mrb[32].mxu0 %v4323_v9  ;;  %v926_v9 = vshrl.u32 %v4409_v33, 16  ;;  %2347 = vmatmul.mubr.bf16.gmra.mrb[32].mxu1 %v716_v29  ;;  %v252_v29 = vld [vmem:[%s4041_s8] sm:$0xc]  ;;  %v940_v42 = vrot.slane %v938_v23, 2  ;;  %v945_v63 = vrot.slane %v943_v25, 1  ;;  %v966_v48 = vor.u32 %v965_v6, %v962_v61 }
  0x6f   : > { %2225 = vmatprep.mubr.bf16.mxu0 %v564_v30  ;;  %2354 = vmatprep.mubr.bf16.mxu1 %v916_v44  ;;  %v582_v30 = vrot.slane %v580_v62, 1  ;;  %v4455_v44 = vcombine.low %v228_v17, %v4316_v8  ;;  %v1274_v62 = vshrl.u32 %v4467_v50, 16 }
  0x70   : > { %v928_v7 = vrot.slane %v926_v9, 1  ;;  %v941_v55 = vor.u32 %v940_v42, %v937_v31  ;;  %v949_v57 = vor.u32 %v948_v56, %v945_v63  ;;  %3726 = vmatpush3.bf16.msra.mxu1 %v3915_v59  ;;  %v230_v56 = vld [vmem:[%s4041_s8 + $0x78] sm:$0xe] }
  0x71   : > { %v583_v43 = vor.u32 %v582_v30, %v578_v18  ;;  %v952_v9 = vshrl.u32 %v4455_v44, 16  ;;  %v955_v46 = vshll.u32 %v4455_v44, 16  ;;  %v1276_v25 = vrot.slane %v1274_v62, 2 }
  0x72   : > { %v932_v60 = vor.u32 %v931_v45, %v928_v7  ;;  %v4471_v7 = vld [vmem:[%s4041_s8 + $0x4] sm:$0xf]  ;;  %v950_v17 = vsel %vm814_vm2, %v941_v55, %v949_v57  ;;  %v4518_v55 = vld [vmem:[%s4041_s8 + $0x80] ss:$0 sps:$4 sm:$0x33]   ;;  %v726_v6 = vrot.slane %v4455_v44, 1 }
  0x73   : > { %v4474_v45 = vcombine.low %v252_v29, %v4471_v7 }
  0x74   : > { %v933_v15 = vsel %vm814_vm2, %v924_v47, %v932_v60  ;;  %v954_v47 = vrot.slane %v952_v9, 1  ;;  %v957_v60 = vrot.slane %v955_v46, 2  ;;  %v4511_v9 = vld [vmem:[%s4041_s8 + $0x10] sm:$0xf] }
  0x75   : > { %v1269_v18 = vshll.u32 %v4474_v45, 16  ;;  %v1152_v14 = vrot.slane %v4474_v45, 2 }
  0x76   : > { %2226 = vmatmul.mubr.bf16.gmra.mrb[36].mxu0 %v4360_v51  ;;  %2355 = vmatmul.mubr.bf16.gmra.mrb[36].mxu1 %v719_v13  ;;  %v587_v51 = vrot.slane %v585_v5, 1  ;;  %v1266_v13 = vshrl.u32 %v4474_v45, 16  ;;  %v1277_v5 = vshll.u32 %v4467_v50, 16  ;;  %v958_v30 = vor.u32 %v957_v60, %v954_v47 }
  0x77   : > { %2233 = vmatprep.mubr.bf16.mxu0 %v576_v1  ;;  %2362 = vmatprep.mubr.bf16.mxu1 %v933_v15  ;;  %v722_v1 = vsel %vm701_vm1, %v720_v16, %v721_v34  ;;  %v229_v15 = vld [vmem:[%s4041_s8 + $0x6c] sm:$0xe]  ;;  %v1271_v23 = vrot.slane %v1269_v18, 3 }
  0x78   : > { %v588_v39 = vsel %vm444_vm0, %v583_v43, %v587_v51  ;;  %v1268_v34 = vrot.slane %v1266_v13, 2  ;;  %v253_v16 = vld [vmem:[%s4041_s8 + $0xc] sm:$0xc]  ;;  %v1279_v26 = vrot.slane %v1277_v5, 3  ;;  %v4499_v29 = vcombine.low %v229_v15, %v4347_v36 }
  0x79   : > { %v4504_v51 = vld [vmem:[%s4041_s8 + $0x14] ss:$0 sps:$4 sm:$0x77]   ;;  %v980_v43 = vshll.u32 %v4491_v21, 16  ;;  %v4514_v46 = vcombine.low %v253_v16, %v4511_v9  ;;  %v730_v15 = vrot.slane %v4363_v52, 1  ;;  %v994_v52 = vshrl.u32 %v4518_v55, 16 }
  0x7a   : > { %v1280_v31 = vor.u32 %v1279_v26, %v1276_v25  ;;  %v969_v42 = vshrl.u32 %v4499_v29, 16  ;;  %v972_v63 = vshll.u32 %v4499_v29, 16  ;;  %v1291_v49 = vshrl.u32 %v4504_v51, 16  ;;  %v254_v16 = vld [vmem:[%s4041_s8 + $0x18] sm:$0xc] }
  0x7b   : > { %v1294_v59 = vshll.u32 %v4504_v51, 16  ;;  %v1283_v47 = vshrl.u32 %v4514_v46, 16  ;;  %v1286_v60 = vshll.u32 %v4514_v46, 16  ;;  %v729_v44 = vrot.slane %v4499_v29, 1 }
  0x7c   : > { %v971_v37 = vrot.slane %v969_v42, 1  ;;  %v974_v45 = vrot.slane %v972_v63, 2  ;;  %v1293_v61 = vrot.slane %v1291_v49, 2 }
  0x7d   : > { %v1296_v13 = vrot.slane %v1294_v59, 3  ;;  %v1285_v62 = vrot.slane %v1283_v47, 2  ;;  %v1288_v5 = vrot.slane %v1286_v60, 3  ;;  %v4557_v59 = vld [vmem:[%s4041_s8 + $0x8c] ss:$0 sps:$4 sm:$0x33]  }
  0x7e   : > { %2234 = vmatmul.mubr.bf16.gmra.mrb[40].mxu0 %v4397_v3  ;;  %v1153_v3 = vrot.slane %v4214_v19, 2  ;;  %2363 = vmatmul.mubr.bf16.gmra.mrb[40].mxu1 %v722_v1  ;;  %v1272_v19 = vor.u32 %v1271_v23, %v1268_v34  ;;  %v967_v1 = vsel %vm814_vm2, %v958_v30, %v966_v48  ;;  %v4533_v34 = vcombine.low %v230_v56, %v4393_v22  ;;  %v231_v56 = vld [vmem:[%s4041_s8 + $0x84] sm:$0xe] }
  0x7f   : > { %2241 = vmatprep.mubr.bf16.mxu0 %v588_v39  ;;  %2370 = vmatprep.mubr.bf16.mxu1 %v950_v17  ;;  %v982_v39 = vrot.slane %v980_v43, 2  ;;  %v4529_v17 = vld [vmem:[%s4041_s8 + $0x20] ss:$0 sps:$4 sm:$0x77]   ;;  %v1297_v23 = vor.u32 %v1296_v13, %v1293_v61  ;;  %v1289_v26 = vor.u32 %v1288_v5, %v1285_v62  ;;  %v996_v48 = vrot.slane %v994_v52, 1 }
  0x80   : > { %v1281_v57 = vsel %vm1264_vm4, %v1272_v19, %v1280_v31  ;;  %v1154_v18 = vsel %vm1151_vm3, %v1152_v14, %v1153_v3  ;;  %v986_v3 = vshrl.u32 %v4533_v34, 16  ;;  %v989_v30 = vshll.u32 %v4533_v34, 16  ;;  %v4579_v52 = vld [vmem:[%s4041_s8 + $0x98] ss:$0 sps:$4 sm:$0x33]  }
  0x81   : > { %v983_v25 = vor.u32 %v982_v39, %v979_v40  ;;  %v997_v14 = vshll.u32 %v4518_v55, 16  ;;  %v1308_v29 = vshrl.u32 %v4529_v17, 16  ;;  %v1298_v19 = vsel %vm1264_vm4, %v1289_v26, %v1297_v23  ;;  %v255_v39 = vld [vmem:[%s4041_s8 + $0x24] sm:$0xc] }
  0x82   : > { %v988_v31 = vrot.slane %v986_v3, 1  ;;  %v991_v42 = vrot.slane %v989_v30, 2  ;;  %v1311_v63 = vshll.u32 %v4529_v17, 16  ;;  %v1155_v13 = vrot.slane %v4514_v46, 2  ;;  %v4573_v46 = vld [vmem:[%s4041_s8 + $0x28] sm:$0xf] }
  0x83   : > { %v999_v40 = vrot.slane %v997_v14, 2  ;;  %v1014_v23 = vshll.u32 %v4557_v59, 16  ;;  %v4576_v54 = vcombine.low %v255_v39, %v4573_v46 }
  0x85   : > { %v1317_v14 = vshrl.u32 %v4576_v54, 16 }
  0x86   : > { %2242 = vmatmul.mubr.bf16.gmra.mrb[44].mxu0 %v4433_v2  ;;  %2371 = vmatmul.mubr.bf16.gmra.mrb[44].mxu1 %v725_v0  ;;  %v975_v2 = vor.u32 %v974_v45, %v971_v37  ;;  %v4542_v0 = vld [vmem:[%s4041_s8 + $0x1c] sm:$0xf]  ;;  %v728_v37 = vsel %vm701_vm1, %v726_v6, %v727_v11  ;;  %v1313_v45 = vrot.slane %v1311_v63, 3  ;;  %v4567_v11 = vcombine.low %v231_v56, %v4428_v53 }
  0x87   : > { %2475 = vmatprep.mubr.bf16.mxu0 %v1281_v57  ;;  %2378 = vmatprep.mubr.bf16.mxu1 %v967_v1  ;;  %v4545_v28 = vcombine.low %v254_v16, %v4542_v0  ;;  %v1310_v57 = vrot.slane %v1308_v29, 2  ;;  %v4562_v1 = vld [vmem:[%s4041_s8 + $0x2c] ss:$0 sps:$4 sm:$0x77]   ;;  %v992_v6 = vor.u32 %v991_v42, %v988_v31  ;;  %v731_v16 = vsel %vm701_vm1, %v729_v44, %v730_v15  ;;  %v232_v15 = vld [vmem:[%s4041_s8 + $0x90] sm:$0xe] }
  0x88   : > { %v984_v47 = vsel %vm814_vm2, %v975_v2, %v983_v25  ;;  %v1011_v2 = vshrl.u32 %v4557_v59, 16  ;;  %v1003_v26 = vshrl.u32 %v4567_v11, 16  ;;  %v1006_v3 = vshll.u32 %v4567_v11, 16 }
  0x89   : > { %v1300_v43 = vshrl.u32 %v4545_v28, 16  ;;  %v1303_v49 = vshll.u32 %v4545_v28, 16  ;;  %v1314_v5 = vor.u32 %v1313_v45, %v1310_v57  ;;  %v1158_v25 = vrot.slane %v4545_v28, 2  ;;  %v4597_v45 = vld [vmem:[%s4041_s8 + $0x94] sm:$0xf] }
  0x8a   : > { %v1325_v30 = vshrl.u32 %v4562_v1, 16  ;;  %v1157_v44 = vsel %vm1151_vm3, %v1155_v13, %v1156_v20  ;;  %v1320_v29 = vshll.u32 %v4576_v54, 16  ;;  %v1328_v63 = vshll.u32 %v4562_v1, 16 }
  0x8b   : > { %v1302_v60 = vrot.slane %v1300_v43, 2  ;;  %v1305_v61 = vrot.slane %v1303_v49, 3  ;;  %v1013_v56 = vrot.slane %v1011_v2, 1  ;;  %v1319_v43 = vrot.slane %v1317_v14, 2 }
  0x8c   : > { %v1327_v42 = vrot.slane %v1325_v30, 2  ;;  %v1322_v49 = vrot.slane %v1320_v29, 3  ;;  %v1008_v57 = vrot.slane %v1006_v3, 2  ;;  %v4600_v39 = vcombine.low %v232_v15, %v4597_v45  ;;  %v233_v15 = vld [vmem:[%s4041_s8 + $0x9c] sm:$0xe] }
  0x8d   : > { %v1306_v62 = vor.u32 %v1305_v61, %v1302_v60  ;;  %v732_v60 = vrot.slane %v4533_v34, 1  ;;  %v733_v61 = vrot.slane %v4400_v12, 1  ;;  %v1028_v13 = vshrl.u32 %v4579_v52, 16  ;;  %v4622_v29 = vld [vmem:[%s4041_s8 + $0xa4] ss:$0 sps:$4 sm:$0x33]  }
  0x8e   : > { %2476 = vmatmul.mubr.bf16.vlgmr.msra.gmra.mrb[48].mxu0 %v1154_v18  ;;  %2379 = vmatmul.mubr.bf16.gmra.mrb[48].mxu1 %v728_v37  ;;  %v1000_v18 = vor.u32 %v999_v40, %v996_v48  ;;  %v1159_v48 = vrot.slane %v4264_v10, 2  ;;  %v1016_v40 = vrot.slane %v1014_v23, 2  ;;  %v1005_v10 = vrot.slane %v1003_v26, 1  ;;  %v4611_v23 = vld [vmem:[%s4041_s8 + $0x34] sm:$0xf] }
  0x8f   : > { %2483 = vmatprep.mubr.bf16.mxu0 %v1298_v19  ;;  %2386 = vmatprep.mubr.bf16.mxu1 %v984_v47  ;;  %v4591_v19 = vld [vmem:[%s4041_s8 + $0x38] ss:$0 sps:$4 sm:$0x77]   ;;  %v1315_v31 = vsel %vm1264_vm4, %v1306_v62, %v1314_v5  ;;  %v1330_v37 = vrot.slane %v1328_v63, 3  ;;  %v256_v47 = vld [vmem:[%s4041_s8 + $0x30] sm:$0xc]  ;;  %v1323_v20 = vor.u32 %v1322_v49, %v1319_v43 }
  0x90   : > { %v1001_v28 = vsel %vm814_vm2, %v992_v6, %v1000_v18  ;;  %v1020_v18 = vshrl.u32 %v4600_v39, 16  ;;  %v1023_v62 = vshll.u32 %v4600_v39, 16  ;;  %v1160_v5 = vsel %vm1151_vm3, %v1158_v25, %v1159_v48 }
  0x91   : > { %v1331_v6 = vor.u32 %v1330_v37, %v1327_v42  ;;  %v1031_v2 = vshll.u32 %v4579_v52, 16  ;;  %v4614_v12 = vcombine.low %v256_v47, %v4611_v23  ;;  %v1342_v34 = vshrl.u32 %v4591_v19, 16  ;;  %v4633_v47 = vld [vmem:[%s4041_s8 + $0xa0] sm:$0xf] }
  0x92   : > { %v1017_v26 = vor.u32 %v1016_v40, %v1013_v56  ;;  %v1030_v3 = vrot.slane %v1028_v13, 1  ;;  %v1345_v30 = vshll.u32 %v4591_v19, 16  ;;  %v1025_v14 = vrot.slane %v1023_v62, 2  ;;  %v4626_v56 = vld [vmem:[%s4041_s8 + $0x44] ss:$0 sps:$4 sm:$0x77]  }
  0x93   : > { %v1334_v25 = vshrl.u32 %v4614_v12, 16  ;;  %v1337_v48 = vshll.u32 %v4614_v12, 16  ;;  %v1344_v42 = vrot.slane %v1342_v34, 2  ;;  %v734_v40 = vsel %vm701_vm1, %v732_v60, %v733_v61 }
  0x94   : > { %v1347_v63 = vrot.slane %v1345_v30, 3  ;;  %v735_v37 = vrot.slane %v4567_v11, 1  ;;  %v4636_v13 = vcombine.low %v233_v15, %v4633_v47  ;;  %v1162_v60 = vrot.slane %v4306_v24, 2 }
  0x95   : > { %v1336_v43 = vrot.slane %v1334_v25, 2  ;;  %v1339_v49 = vrot.slane %v1337_v48, 3  ;;  %v1362_v24 = vshll.u32 %v4626_v56, 16 }
  0x96   : > { %2484 = vmatmul.mubr.bf16.gmra.mrb[52].mxu0 %v1157_v44  ;;  %2387 = vmatmul.mubr.bf16.gmra.mrb[52].mxu1 %v731_v16  ;;  %v1009_v16 = vor.u32 %v1008_v57, %v1005_v10  ;;  %v1022_v44 = vrot.slane %v1020_v18, 1  ;;  %v257_v10 = vld [vmem:[%s4041_s8 + $0x3c] sm:$0xc]  ;;  %v1037_v34 = vshrl.u32 %v4636_v13, 16 }
  0x97   : > { %2491 = vmatprep.mubr.bf16.mxu0 %v1315_v31  ;;  %2394 = vmatprep.mubr.bf16.mxu1 %v1001_v28  ;;  %v1332_v28 = vsel %vm1264_vm4, %v1323_v20, %v1331_v6  ;;  %v1033_v31 = vrot.slane %v1031_v2, 2  ;;  %v736_v20 = vrot.slane %v4436_v32, 1  ;;  %v1161_v6 = vrot.slane %v4576_v54, 2 }
  0x98   : > { %v1018_v57 = vsel %vm814_vm2, %v1009_v16, %v1017_v26  ;;  %v1026_v61 = vor.u32 %v1025_v14, %v1022_v44  ;;  %v1340_v62 = vor.u32 %v1339_v49, %v1336_v43  ;;  %v4642_v11 = vcombine.low %v257_v10, %v4229_v38  ;;  %v4655_v14 = vld [vmem:[%s4041_s8 + $0xb0] ss:$0 sps:$4 sm:$0x33]   ;;  %v4665_v49 = vld [vmem:[%s4041_s8 + $0xac] sm:$0xf] }
  0x99   : > { %v1034_v18 = vor.u32 %v1033_v31, %v1030_v3  ;;  %v1045_v2 = vshrl.u32 %v4622_v29, 16  ;;  %v1048_v32 = vshll.u32 %v4622_v29, 16  ;;  %v1359_v54 = vshrl.u32 %v4626_v56, 16  ;;  %v234_v3 = vld [vmem:[%s4041_s8 + $0xa8] sm:$0xe]  ;;  %5230 = vst [vmem:[#allocation2_spill] sm:$0xff] %v4655_v14 }
  0x9a   : > { %v1040_v16 = vshll.u32 %v4636_v13, 16  ;;  %v1351_v26 = vshrl.u32 %v4642_v11, 16  ;;  %v1354_v38 = vshll.u32 %v4642_v11, 16  ;;  %v1163_v30 = vsel %vm1151_vm3, %v1161_v6, %v1162_v60  ;;  %v4659_v31 = vld [vmem:[%s4041_s8 + $0x50] ss:$0 sps:$4 sm:$0x77]  }
  0x9b   : > { %v1361_v15 = vrot.slane %v1359_v54, 2  ;;  %v1364_v44 = vrot.slane %v1362_v24, 3  ;;  %v4668_v10 = vcombine.low %v234_v3, %v4665_v49  ;;  %v1039_v6 = vrot.slane %v1037_v34, 1 }
  0x9c   : > { %v1353_v48 = vrot.slane %v1351_v26, 2  ;;  %v1042_v60 = vrot.slane %v1040_v16, 2  ;;  %v738_v54 = vrot.slane %v4600_v39, 1  ;;  %v1062_v24 = vshrl.u32 %v4655_v14, 16  ;;  %v4676_v26 = vld [vmem:[%s4041_s8 + $0x4c] sm:$0xf] }
  0x9d   : > { %v1054_v39 = vshrl.u32 %v4668_v10, 16 }
  0x9e   : > { %2492 = vmatmul.mubr.bf16.gmra.mrb[56].mxu0 %v1160_v5  ;;  %2395 = vmatmul.mubr.bf16.gmra.mrb[56].mxu1 %v734_v40  ;;  %v1348_v5 = vor.u32 %v1347_v63, %v1344_v42  ;;  %v737_v42 = vsel %vm701_vm1, %v735_v37, %v736_v20  ;;  %v1035_v63 = vsel %vm814_vm2, %v1026_v61, %v1034_v18  ;;  %v3959_v40 = vld [vmem:[%s4041_s8 + $0x98] ss:$0 sps:$4 sm:$0x11]   ;;  %v1164_v37 = vrot.slane %v4614_v12, 2 }
  0x9f   : > { %2499 = vmatprep.mubr.bf16.mxu0 %v1332_v28  ;;  %2402 = vmatprep.mubr.bf16.mxu1 %v1018_v57  ;;  %v1356_v28 = vrot.slane %v1354_v38, 3  ;;  %v739_v43 = vrot.slane %v3959_v40, 1  ;;  %v258_v57 = vld [vmem:[%s4041_s8 + $0x48] sm:$0xc]  ;;  %v1165_v20 = vrot.slane %v4340_v27, 2  ;;  %v1365_v61 = vor.u32 %v1364_v44, %v1361_v15 }
  0xa0   : > { %v1349_v25 = vsel %vm1264_vm4, %v1340_v62, %v1348_v5  ;;  %v1047_v62 = vrot.slane %v1045_v2, 1  ;;  %v1050_v5 = vrot.slane %v1048_v32, 2  ;;  %v4679_v34 = vcombine.low %v258_v57, %v4676_v26  ;;  %v235_v15 = vld [vmem:[%s4041_s8 + $0xb4] sm:$0xe] }
  0xa1   : > { %v1357_v18 = vor.u32 %v1356_v28, %v1353_v48  ;;  %v1376_v2 = vshrl.u32 %v4659_v31, 16  ;;  %v1057_v12 = vshll.u32 %v4668_v10, 16  ;;  %v1065_v27 = vshll.u32 %v4655_v14, 16  ;;  %v4691_v28 = vld [vmem:[%s4041_s8 + $0x5c] ss:$0 sps:$4 sm:$0x77]  }
  0xa2   : > { %v1379_v32 = vshll.u32 %v4659_v31, 16  ;;  %v1043_v16 = vor.u32 %v1042_v60, %v1039_v6  ;;  %v1051_v38 = vor.u32 %v1050_v5, %v1047_v62  ;;  %v1368_v3 = vshrl.u32 %v4679_v34, 16  ;;  %v259_v6 = vld [vmem:[%s4041_s8 + $0x54] sm:$0xc] }
  0xa3   : > { %v1166_v44 = vsel %vm1151_vm3, %v1164_v37, %v1165_v20  ;;  %v1056_v60 = vrot.slane %v1054_v39, 1  ;;  %v1059_v62 = vrot.slane %v1057_v12, 2  ;;  %v1064_v5 = vrot.slane %v1062_v24, 1 }
  0xa4   : > { %v1381_v48 = vrot.slane %v1379_v32, 3  ;;  %v1370_v40 = vrot.slane %v1368_v3, 2  ;;  %v1067_v14 = vrot.slane %v1065_v27, 2  ;;  %v1052_v37 = vsel %vm814_vm2, %v1043_v16, %v1051_v38  ;;  %v4700_v32 = vld [vmem:[%s4041_s8 + $0xb8] sm:$0xf] }
  0xa5   : > { %v1167_v20 = vrot.slane %v4642_v11, 2  ;;  %v4709_v24 = vcombine.low %v259_v6, %v4290_v41  ;;  %v1393_v39 = vshrl.u32 %v4691_v28, 16  ;;  %v741_v11 = vrot.slane %v4636_v13, 1 }
  0xa6   : > { %2500 = vmatmul.mubr.bf16.gmra.mrb[60].mxu0 %v1163_v30  ;;  %2403 = vmatmul.mubr.bf16.gmra.mrb[60].mxu1 %v737_v42  ;;  %v1371_v30 = vshll.u32 %v4679_v34, 16  ;;  %v740_v42 = vsel %vm701_vm1, %v738_v54, %v739_v43  ;;  %v4703_v43 = vcombine.low %v235_v15, %v4700_v32  ;;  %v4706_v54 = vld [vmem:[%s4041_s8 + $0xbc] ss:$0 sps:$4 sm:$0x33]   ;;  %v1396_v27 = vshll.u32 %v4691_v28, 16 }
  0xa7   : > { %2507 = vmatprep.mubr.bf16.mxu0 %v1349_v25  ;;  %2410 = vmatprep.mubr.bf16.mxu1 %v1035_v63  ;;  %v1378_v25 = vrot.slane %v1376_v2, 2  ;;  %v1366_v63 = vsel %vm1264_vm4, %v1357_v18, %v1365_v61  ;;  %v1168_v2 = vrot.slane %v4371_v58, 2  ;;  %v3963_v58 = vld [vmem:[%s4041_s8 + $0xa4] ss:$0 sps:$4 sm:$0x11]   ;;  %v1060_v16 = vor.u32 %v1059_v62, %v1056_v60 }
  0xa8   : > { %v1373_v57 = vrot.slane %v1371_v30, 3  ;;  %v742_v12 = vrot.slane %v3963_v58, 1  ;;  %v1068_v38 = vor.u32 %v1067_v14, %v1064_v5  ;;  %v1385_v3 = vshrl.u32 %v4709_v24, 16  ;;  %v260_v15 = vld [vmem:[%s4041_s8 + $0x60] sm:$0xc] }
  0xa9   : > { %v1382_v18 = vor.u32 %v1381_v48, %v1378_v25  ;;  %v1388_v30 = vshll.u32 %v4709_v24, 16  ;;  %v1071_v41 = vshrl.u32 %v4703_v43, 16  ;;  %v1079_v25 = vshrl.u32 %v4706_v54, 16 }
  0xaa   : > { %v1374_v61 = vor.u32 %v1373_v57, %v1370_v40  ;;  %v1082_v13 = vshll.u32 %v4706_v54, 16  ;;  %v1169_v48 = vsel %vm1151_vm3, %v1167_v20, %v1168_v2  ;;  %v4725_v40 = vld [vmem:[%s4041_s8 + $0x68] ss:$0 sps:$4 sm:$0x77]   ;;  %v1387_v14 = vrot.slane %v1385_v3, 2 }
  0xab   : > { %v1390_v57 = vrot.slane %v1388_v30, 3  ;;  %v1398_v6 = vrot.slane %v1396_v27, 3  ;;  %v4728_v60 = vcombine.low %v260_v15, %v4316_v8  ;;  %v743_v62 = vsel %vm701_vm1, %v741_v11, %v742_v12  ;;  %v261_v3 = vld [vmem:[%s4041_s8 + $0x6c] sm:$0xc] }
  0xac   : > { %v1069_v5 = vsel %vm814_vm2, %v1060_v16, %v1068_v38  ;;  %v1171_v58 = vrot.slane %v4409_v33, 2  ;;  %v1073_v20 = vrot.slane %v1071_v41, 1  ;;  %v1410_v11 = vshrl.u32 %v4725_v40, 16  ;;  %v3964_v16 = vld [vmem:[%s4041_s8 + $0xb0] ss:$0 sps:$4 sm:$0x11]  }
  0xad   : > { %v1402_v8 = vshrl.u32 %v4728_v60, 16  ;;  %v1413_v12 = vshll.u32 %v4725_v40, 16  ;;  %v744_v27 = vrot.slane %v4668_v10, 1  ;;  %v745_v38 = vrot.slane %v3964_v16, 1 }
  0xae   : > { %2508 = vmatmul.mubr.bf16.gmra.mrb[64].mxu0 %v1166_v44  ;;  %2411 = vmatmul.mubr.bf16.gmra.mrb[64].mxu1 %v740_v42  ;;  %v1074_v44 = vshll.u32 %v4703_v43, 16  ;;  %v1383_v42 = vsel %vm1264_vm4, %v1374_v61, %v1382_v18  ;;  %v1081_v61 = vrot.slane %v1079_v25, 1  ;;  %v1084_v18 = vrot.slane %v1082_v13, 2 }
  0xaf   : > { %2515 = vmatprep.mubr.bf16.mxu0 %v1366_v63  ;;  %2418 = vmatprep.mubr.bf16.mxu1 %v1052_v37  ;;  %v1395_v63 = vrot.slane %v1393_v39, 2  ;;  %v1170_v37 = vrot.slane %v4679_v34, 2  ;;  %v1405_v39 = vshll.u32 %v4728_v60, 16  ;;  %v1391_v34 = vor.u32 %v1390_v57, %v1387_v14  ;;  %v4748_v14 = vld [vmem:[%s4041_s8 + $0x74] ss:$0 sps:$4 sm:$0x77]  }
  0xb0   : > { %v1076_v2 = vrot.slane %v1074_v44, 2  ;;  %v1085_v41 = vor.u32 %v1084_v18, %v1081_v61  ;;  %v284_v44 = vld [vmem:[%s4041_s8] sm:$0x8]  ;;  %v1404_v25 = vrot.slane %v1402_v8, 2  ;;  %v746_v10 = vsel %vm701_vm1, %v744_v27, %v745_v38  ;;  %v286_v27 = vld [vmem:[%s4041_s8 + $0x18] sm:$0x8] }
  0xb1   : > { %v1399_v33 = vor.u32 %v1398_v6, %v1395_v63  ;;  %v1172_v30 = vsel %vm1151_vm3, %v1170_v37, %v1171_v58  ;;  %v1407_v13 = vrot.slane %v1405_v39, 3  ;;  %v4745_v63 = vcombine.low %v261_v3, %v4347_v36  ;;  %v3965_v8 = vld [vmem:[%s4041_s8 + $0xbc] ss:$0 sps:$4 sm:$0x11]  }
  0xb2   : > { %v1077_v15 = vor.u32 %v1076_v2, %v1073_v20  ;;  %v3116_v6 = vcombine.low %v284_v44, %v4471_v7  ;;  %v1174_v37 = vrot.slane %v4444_v4, 2  ;;  %v1427_v61 = vshrl.u32 %v4748_v14, 16  ;;  %v262_v7 = vld [vmem:[%s4041_s8 + $0x78] sm:$0xc] }
  0xb3   : > { %v1408_v58 = vor.u32 %v1407_v13, %v1404_v25  ;;  %v1419_v20 = vshrl.u32 %v4745_v63, 16  ;;  %v1422_v2 = vshll.u32 %v4745_v63, 16  ;;  %v1430_v18 = vshll.u32 %v4748_v14, 16  ;;  %v4771_v38 = vld [vmem:[%s4041_s8 + $0x80] ss:$0 sps:$4 sm:$0x77]  }
  0xb4   : > { %v1086_v57 = vsel %vm814_vm2, %v1077_v15, %v1085_v41  ;;  %v748_v39 = vrot.slane %v3965_v8, 1  ;;  %v1602_v4 = vrot.slane %v3116_v6, 3  ;;  %v4768_v16 = vcombine.low %v262_v7, %v4393_v22  ;;  %v4794_v8 = vld [vmem:[%s4041_s8 + $0x8c] ss:$0 sps:$4 sm:$0x77]  }
  0xb5   : > { %v1421_v3 = vrot.slane %v1419_v20, 2  ;;  %v1432_v15 = vrot.slane %v1430_v18, 3  ;;  %v1176_v25 = vrot.slane %v4728_v60, 2  ;;  %v1177_v13 = vrot.slane %v4458_v35, 2  ;;  %v288_v18 = vld [vmem:[%s4041_s8 + $0x30] sm:$0x8] }
  0xb6   : > { %2516 = vmatmul.mubr.bf16.gmra.mrb[68].mxu0 %v1169_v48  ;;  %2419 = vmatmul.mubr.bf16.gmra.mrb[68].mxu1 %v743_v62  ;;  %v1412_v48 = vrot.slane %v1410_v11, 2  ;;  %v1400_v62 = vsel %vm1264_vm4, %v1391_v34, %v1399_v33  ;;  %v1603_v11 = vrot.slane %v4467_v50, 3  ;;  %v3118_v22 = vcombine.low %v286_v27, %v4542_v0  ;;  %v263_v0 = vld [vmem:[%s4041_s8 + $0x84] sm:$0xc] }
  0xb7   : > { %2523 = vmatprep.mubr.bf16.mxu0 %v1383_v42  ;;  %2426 = vmatprep.mubr.bf16.mxu1 %v1069_v5  ;;  %v1415_v42 = vrot.slane %v1413_v12, 3  ;;  %v1173_v5 = vrot.slane %v4709_v24, 2  ;;  %v747_v24 = vrot.slane %v4703_v43, 1  ;;  %v285_v12 = vld [vmem:[%s4041_s8 + $0xc] sm:$0x8]  ;;  %v1429_v43 = vrot.slane %v1427_v61, 2 }
  0xb8   : > { %v3117_v50 = vcombine.low %v285_v12, %v4511_v9  ;;  %v1604_v44 = vsel %vm1601_vm5, %v1602_v4, %v1603_v11  ;;  %v1447_v9 = vshll.u32 %v4771_v38, 16  ;;  %v1606_v35 = vrot.slane %v4504_v51, 3 }
  0xb9   : > { %v1416_v36 = vor.u32 %v1415_v42, %v1412_v48  ;;  %v1175_v34 = vsel %vm1151_vm3, %v1173_v5, %v1174_v37  ;;  %v749_v41 = vsel %vm701_vm1, %v747_v24, %v748_v39  ;;  %v1436_v48 = vshrl.u32 %v4768_v16, 16 }
  0xba   : > { %v1439_v42 = vshll.u32 %v4768_v16, 16  ;;  %v1605_v60 = vrot.slane %v3117_v50, 3  ;;  %v1178_v6 = vsel %vm1151_vm3, %v1176_v25, %v1177_v13  ;;  %v1608_v5 = vrot.slane %v3118_v22, 3  ;;  %v4817_v13 = vld [vmem:[%s4041_s8 + $0x98] ss:$0 sps:$4 sm:$0x77]  }
  0xbb   : > { %v1417_v33 = vsel %vm1264_vm4, %v1408_v58, %v1416_v36  ;;  %v1609_v37 = vrot.slane %v4529_v17, 3  ;;  %v287_v58 = vld [vmem:[%s4041_s8 + $0x24] sm:$0x8]  ;;  %v1438_v36 = vrot.slane %v1436_v48, 2  ;;  %v1449_v61 = vrot.slane %v1447_v9, 3 }
  0xbc   : > { %v1441_v20 = vrot.slane %v1439_v42, 3  ;;  %v4791_v24 = vcombine.low %v263_v0, %v4428_v53  ;;  %v1607_v51 = vsel %vm1601_vm5, %v1605_v60, %v1606_v35  ;;  %v3119_v39 = vcombine.low %v287_v58, %v4573_v46  ;;  %v3966_v9 = vld [vmem:[%s4041_s8 + $0x40] sm:$0xf] }
  0xbd   : > { %v1610_v17 = vsel %vm1601_vm5, %v1608_v5, %v1609_v37  ;;  %v3120_v4 = vcombine.low %v288_v18, %v4611_v23  ;;  %v1179_v11 = vrot.slane %v4745_v63, 2  ;;  %v1180_v12 = vrot.slane %v4491_v21, 2  ;;  %v264_v23 = vld [vmem:[%s4041_s8 + $0x90] sm:$0xc]  ;;  %v291_v18 = vld [vmem:[%s4041_s8 + $0x54] sm:$0x8] }
  0xbe   : > { %2524 = vmatmul.mubr.bf16.gmra.mrb[72].mxu0 %v1172_v30  ;;  %2427 = vmatmul.mubr.bf16.gmra.mrb[72].mxu1 %v746_v10  ;;  %v1424_v30 = vrot.slane %v1422_v2, 3  ;;  %v1442_v53 = vor.u32 %v1441_v20, %v1438_v36  ;;  %v1456_v46 = vshll.u32 %v4791_v24, 16  ;;  %v1461_v27 = vshrl.u32 %v4794_v8, 16 }
  0xbf   : > { %2531 = vmatprep.mubr.bf16.mxu0 %v1400_v62  ;;  %2434 = vmatprep.mubr.bf16.mxu1 %v1086_v57  ;;  %v1444_v62 = vshrl.u32 %v4771_v38, 16  ;;  %v1433_v57 = vor.u32 %v1432_v15, %v1429_v43  ;;  %v1612_v63 = vrot.slane %v4562_v1, 3  ;;  %v1614_v21 = vrot.slane %v3120_v4, 3  ;;  %v289_v15 = vld [vmem:[%s4041_s8 + $0x3c] sm:$0x8] }
  0xc0   : > { %v1425_v10 = vor.u32 %v1424_v30, %v1421_v3  ;;  %v1464_v3 = vshll.u32 %v4794_v8, 16  ;;  %v1611_v30 = vrot.slane %v3119_v39, 3  ;;  %v1615_v43 = vrot.slane %v4591_v19, 3  ;;  %v292_v4 = vld [vmem:[%s4041_s8 + $0x60] sm:$0x8] }
  0xc1   : > { %v1446_v2 = vrot.slane %v1444_v62, 2  ;;  %v4814_v25 = vcombine.low %v264_v23, %v4597_v45  ;;  %v1458_v48 = vrot.slane %v1456_v46, 3  ;;  %v1463_v42 = vrot.slane %v1461_v27, 2  ;;  %v3968_v46 = vld [vmem:[%s4041_s8 + $0x64] sm:$0xf] }
  0xc2   : > { %v1434_v7 = vsel %vm1264_vm4, %v1425_v10, %v1433_v57  ;;  %v1466_v62 = vrot.slane %v1464_v3, 3  ;;  %v1613_v1 = vsel %vm1601_vm5, %v1611_v30, %v1612_v63  ;;  %v3121_v10 = vcombine.low %v289_v15, %v3966_v9 }
  0xc3   : > { %v1616_v19 = vsel %vm1601_vm5, %v1614_v21, %v1615_v43  ;;  %v1182_v57 = vrot.slane %v4768_v16, 2  ;;  %v1183_v60 = vrot.slane %v4518_v55, 2  ;;  %v1470_v0 = vshrl.u32 %v4814_v25, 16 }
  0xc4   : > { %v1478_v5 = vshrl.u32 %v4817_v13, 16  ;;  %v1481_v37 = vshll.u32 %v4817_v13, 16  ;;  %v1467_v36 = vor.u32 %v1466_v62, %v1463_v42  ;;  %v1617_v16 = vrot.slane %v3121_v10, 3  ;;  %v4863_v10 = vld [vmem:[%s4041_s8 + $0xb0] ss:$0 sps:$4 sm:$0x77]  }
  0xc5   : > { %v1618_v55 = vrot.slane %v4626_v56, 3  ;;  %v1184_v20 = vsel %vm1151_vm3, %v1182_v57, %v1183_v60  ;;  %v3124_v27 = vcombine.low %v292_v4, %v3968_v46  ;;  %v1185_v3 = vrot.slane %v4791_v24, 2 }
  0xc6   : > { %2532 = vmatmul.mubr.bf16.gmra.mrb[76].mxu0 %v1175_v34  ;;  %2435 = vmatmul.mubr.bf16.gmra.mrb[76].mxu1 %v749_v41  ;;  %v1450_v34 = vor.u32 %v1449_v61, %v1446_v2  ;;  %v1181_v41 = vsel %vm1151_vm3, %v1179_v11, %v1180_v12  ;;  %v1621_v61 = vrot.slane %v4659_v31, 3  ;;  %v1480_v39 = vrot.slane %v1478_v5, 2 }
  0xc7   : > { %2539 = vmatprep.mubr.bf16.mxu0 %v1417_v33  ;;  %3727 = vmatprep.mubr.bf16.mxu1 %v1604_v44  ;;  %v1453_v33 = vshrl.u32 %v4791_v24, 16  ;;  %v290_v44 = vld [vmem:[%s4041_s8 + $0x48] sm:$0x8]  ;;  %v1619_v56 = vsel %vm1601_vm5, %v1617_v16, %v1618_v55  ;;  %v1186_v23 = vrot.slane %v4557_v59, 2  ;;  %v1624_v24 = vrot.slane %v4691_v28, 3 }
  0xc8   : > { %v1451_v50 = vsel %vm1264_vm4, %v1442_v53, %v1450_v34  ;;  %v3122_v35 = vcombine.low %v290_v44, %v4676_v26  ;;  %v265_v26 = vld [vmem:[%s4041_s8 + $0x9c] sm:$0xc]  ;;  %v4840_v53 = vld [vmem:[%s4041_s8 + $0xa4] ss:$0 sps:$4 sm:$0x77]   ;;  %v1626_v59 = vrot.slane %v3124_v27, 3 }
  0xc9   : > { %v1455_v22 = vrot.slane %v1453_v33, 2  ;;  %v4837_v12 = vcombine.low %v265_v26, %v4633_v47  ;;  %v3967_v34 = vld [vmem:[%s4041_s8 + $0x58] sm:$0xf]  ;;  %v1495_v15 = vshrl.u32 %v4840_v53, 16  ;;  %v1187_v42 = vsel %vm1151_vm3, %v1185_v3, %v1186_v23  ;;  %v3971_v3 = vld [vmem:[%s4041_s8 + $0x88] sm:$0xf] }
  0xca   : > { %v1620_v2 = vrot.slane %v3122_v35, 3  ;;  %v3123_v33 = vcombine.low %v291_v18, %v3967_v34  ;;  %v1188_v5 = vrot.slane %v4814_v25, 2  ;;  %v1512_v26 = vshrl.u32 %v4863_v10, 16  ;;  %v267_v18 = vld [vmem:[%s4041_s8 + $0xb4] sm:$0xc] }
  0xcb   : > { %v1459_v58 = vor.u32 %v1458_v48, %v1455_v22  ;;  %v1487_v21 = vshrl.u32 %v4837_v12, 16  ;;  %v1490_v43 = vshll.u32 %v4837_v12, 16  ;;  %v1627_v22 = vrot.slane %v4725_v40, 3  ;;  %v293_v48 = vld [vmem:[%s4041_s8 + $0x6c] sm:$0x8] }
  0xcc   : > { %v1622_v31 = vsel %vm1601_vm5, %v1620_v2, %v1621_v61  ;;  %v1623_v44 = vrot.slane %v3123_v33, 3  ;;  %v1497_v60 = vrot.slane %v1495_v15, 2  ;;  %v296_v33 = vld [vmem:[%s4041_s8 + $0x90] sm:$0x8]  ;;  %v4883_v46 = vcombine.low %v267_v18, %v4700_v32 }
  0xcd   : > { %v1468_v11 = vsel %vm1264_vm4, %v1459_v58, %v1467_v36  ;;  %v1492_v57 = vrot.slane %v1490_v43, 3  ;;  %v3970_v58 = vld [vmem:[%s4041_s8 + $0x7c] sm:$0xf] }
  0xce   : > { %2540 = vmatmul.mubr.bf16.gmra.mrb[80].mxu0 %v1178_v6  ;;  %3728 = vmatmul.mubr.bf16.vlgmr.msra.gmra.mrb[80].mxu1 %v1607_v51  ;;  %v1473_v6 = vshll.u32 %v4814_v25, 16  ;;  %v1625_v28 = vsel %vm1601_vm5, %v1623_v44, %v1624_v24  ;;  %v4886_v27 = vld [vmem:[%s4041_s8 + $0xbc] ss:$0 sps:$4 sm:$0x77]  }
  0xcf   : > { %2547 = vmatprep.mubr.bf16.mxu0 %v1434_v7  ;;  %3731 = vmatprep.mubr.bf16.mxu1 %v1610_v17  ;;  %v1472_v7 = vrot.slane %v1470_v0, 2  ;;  %v1483_v17 = vrot.slane %v1481_v37, 3  ;;  %v3969_v0 = vld [vmem:[%s4041_s8 + $0x70] sm:$0xf]  ;;  %v1189_v37 = vrot.slane %v4579_v52, 2  ;;  %v1630_v52 = vrot.slane %v4748_v14, 3 }
  0xd0   : > { %v1475_v51 = vrot.slane %v1473_v6, 3  ;;  %v3125_v40 = vcombine.low %v293_v48, %v3969_v0  ;;  %v1628_v6 = vsel %vm1601_vm5, %v1626_v59, %v1627_v22  ;;  %v1529_v44 = vshrl.u32 %v4886_v27, 16 }
  0xd1   : > { %v1484_v63 = vor.u32 %v1483_v17, %v1480_v39  ;;  %v1633_v39 = vrot.slane %v4771_v38, 3  ;;  %v295_v17 = vld [vmem:[%s4041_s8 + $0x84] sm:$0x8]  ;;  %v1532_v24 = vshll.u32 %v4886_v27, 16  ;;  %v1636_v59 = vrot.slane %v4794_v8, 3 }
  0xd2   : > { %v1476_v30 = vor.u32 %v1475_v51, %v1472_v7  ;;  %v1629_v25 = vrot.slane %v3125_v40, 3  ;;  %v1190_v7 = vsel %vm1151_vm3, %v1188_v5, %v1189_v37  ;;  %v3127_v23 = vcombine.low %v295_v17, %v3971_v3  ;;  %v5231_v40 = vld [vmem:[#allocation2_spill] sm:$0xff] }
  0xd3   : > { %v1648_v18 = vrot.slane %v4886_v27, 3 }
  0xd4   : > { %v1485_v62 = vsel %vm1264_vm4, %v1476_v30, %v1484_v63  ;;  %v1631_v14 = vsel %vm1601_vm5, %v1629_v25, %v1630_v52  ;;  %v3128_v30 = vcombine.low %v296_v33, %v4597_v45  ;;  %v1191_v63 = vrot.slane %v4837_v12, 2 }
  0xd5   : > { %v1635_v45 = vrot.slane %v3127_v23, 3  ;;  %v1639_v12 = vrot.slane %v4817_v13, 3 }
  0xd6   : > { %2548 = vmatmul.mubr.bf16.gmra.mrb[84].mxu0 %v1181_v41  ;;  %3732 = vmatmul.mubr.bf16.gmra.mrb[84].mxu1 %v1613_v1  ;;  %v1498_v41 = vshll.u32 %v4840_v53, 16  ;;  %v294_v1 = vld [vmem:[%s4041_s8 + $0x78] sm:$0x8]  ;;  %v1638_v22 = vrot.slane %v3128_v30, 3 }
  0xd7   : > { %2555 = vmatprep.mubr.bf16.mxu0 %v1451_v50  ;;  %3735 = vmatprep.mubr.bf16.mxu1 %v1616_v19  ;;  %v266_v50 = vld [vmem:[%s4041_s8 + $0xa8] sm:$0xc]  ;;  %v1489_v19 = vrot.slane %v1487_v21, 2  ;;  %v3126_v36 = vcombine.low %v294_v1, %v3970_v58  ;;  %v1192_v21 = vrot.slane %v4622_v29, 2  ;;  %v297_v29 = vld [vmem:[%s4041_s8 + $0x9c] sm:$0x8] }
  0xd8   : > { %v4860_v9 = vcombine.low %v266_v50, %v4665_v49  ;;  %v1500_v35 = vrot.slane %v1498_v41, 3  ;;  %v1521_v41 = vshrl.u32 %v4883_v46, 16  ;;  %v1524_v50 = vshll.u32 %v4883_v46, 16 }
  0xd9   : > { %v1493_v2 = vor.u32 %v1492_v57, %v1489_v19  ;;  %v1632_v51 = vrot.slane %v3126_v36, 3  ;;  %v1193_v48 = vsel %vm1151_vm3, %v1191_v63, %v1192_v21  ;;  %v1531_v57 = vrot.slane %v1529_v44, 2 }
  0xda   : > { %v1504_v16 = vshrl.u32 %v4860_v9, 16  ;;  %v1507_v55 = vshll.u32 %v4860_v9, 16  ;;  %v1501_v61 = vor.u32 %v1500_v35, %v1497_v60  ;;  %v1523_v1 = vrot.slane %v1521_v41, 2 }
  0xdb   : > { %v1634_v38 = vsel %vm1601_vm5, %v1632_v51, %v1633_v39  ;;  %v1526_v19 = vrot.slane %v1524_v50, 3  ;;  %v1534_v60 = vrot.slane %v1532_v24, 3  ;;  %v1637_v35 = vsel %vm1601_vm5, %v1635_v45, %v1636_v59 }
  0xdc   : > { %v1506_v4 = vrot.slane %v1504_v16, 2  ;;  %v1640_v8 = vsel %vm1601_vm5, %v1638_v22, %v1639_v12  ;;  %v1194_v0 = vrot.slane %v4860_v9, 2  ;;  %v1642_v36 = vrot.slane %v4840_v53, 3 }
  0xdd   : > { %v1527_v5 = vor.u32 %v1526_v19, %v1523_v1  ;;  %v1535_v37 = vor.u32 %v1534_v60, %v1531_v57  ;;  %v1198_v53 = vrot.slane %v4706_v54, 2 }
  0xde   : > { %2556 = vmatmul.mubr.bf16.gmra.mrb[88].mxu0 %v1184_v20  ;;  %3736 = vmatmul.mubr.bf16.gmra.mrb[88].mxu1 %v1619_v56  ;;  %v1515_v20 = vshll.u32 %v4863_v10, 16  ;;  %v1514_v56 = vrot.slane %v1512_v26, 2 }
  0xdf   : > { %2563 = vmatprep.mubr.bf16.mxu0 %v1468_v11  ;;  %3739 = vmatprep.mubr.bf16.mxu1 %v1622_v31  ;;  %v1509_v11 = vrot.slane %v1507_v55, 3  ;;  %v1502_v31 = vsel %vm1264_vm4, %v1493_v2, %v1501_v61  ;;  %v299_v55 = vld [vmem:[%s4041_s8 + $0xb4] sm:$0x8]  ;;  %v1197_v61 = vrot.slane %v4883_v46, 2 }
  0xe0   : > { %v1517_v34 = vrot.slane %v1515_v20, 3  ;;  %v3131_v9 = vcombine.low %v299_v55, %v4700_v32 }
  0xe1   : > { %v1510_v43 = vor.u32 %v1509_v11, %v1506_v4  ;;  %v1199_v11 = vsel %vm1151_vm3, %v1197_v61, %v1198_v53 }
  0xe2   : > { %v1518_v15 = vor.u32 %v1517_v34, %v1514_v56  ;;  %v1647_v52 = vrot.slane %v3131_v9, 3 }
  0xe6   : > { %2564 = vmatmul.mubr.bf16.gmra.mrb[92].mxu0 %v1187_v42  ;;  %3740 = vmatmul.mubr.bf16.gmra.mrb[92].mxu1 %v1625_v28  ;;  %v1519_v42 = vsel %vm1264_vm4, %v1510_v43, %v1518_v15  ;;  %v3129_v28 = vcombine.low %v297_v29, %v4633_v47  ;;  %v1645_v47 = vrot.slane %v4863_v10, 3 }
  0xe7   : > { %2571 = vmatprep.mubr.bf16.mxu0 %v1485_v62  ;;  %3743 = vmatprep.mubr.bf16.mxu1 %v1628_v6  ;;  %v298_v62 = vld [vmem:[%s4041_s8 + $0xa8] sm:$0x8]  ;;  %v1195_v6 = vrot.slane %v5231_v40, 2 }
  0xe8   : > { %v3130_v13 = vcombine.low %v298_v62, %v4665_v49  ;;  %v1641_v58 = vrot.slane %v3129_v28, 3  ;;  %v1536_v49 = vsel %vm1264_vm4, %v1527_v5, %v1535_v37 }
  0xe9   : > { %v1196_v26 = vsel %vm1151_vm3, %v1194_v0, %v1195_v6 }
  0xea   : > { %v1644_v16 = vrot.slane %v3130_v13, 3  ;;  %v1643_v20 = vsel %vm1601_vm5, %v1641_v58, %v1642_v36  ;;  %v4946_v36 = vld [vmem:[%s5227_s2] ss:$0 sm:$0xff] }
  0xec   : > { %v1646_v2 = vsel %vm1601_vm5, %v1644_v16, %v1645_v47 }
  0xee   : > { %2572 = vmatmul.mubr.bf16.gmra.mrb[96].mxu0 %v1190_v7  ;;  %3744 = vmatmul.mubr.bf16.gmra.mrb[96].mxu1 %v1631_v14 }
  0xef   : > { %2579 = vmatprep.mubr.bf16.mxu0 %v1502_v31  ;;  %3747 = vmatprep.mubr.bf16.mxu1 %v1634_v38  ;;  %v1649_v31 = vsel %vm1601_vm5, %v1647_v52, %v1648_v18 }
  0xf6   : > { %2580 = vmatmul.mubr.bf16.gmra.mrb[100].mxu0 %v1193_v48  ;;  %3748 = vmatmul.mubr.bf16.gmra.mrb[100].mxu1 %v1637_v35 }
  0xf7   : > { %2587 = vmatprep.mubr.bf16.mxu0 %v1519_v42  ;;  %3751 = vmatprep.mubr.bf16.mxu1 %v1640_v8 }
  0xfe   : > { %2588 = vmatmul.mubr.bf16.gmra.mrb[104].mxu0 %v1196_v26  ;;  %3752 = vmatmul.mubr.bf16.gmra.mrb[104].mxu1 %v1643_v20 }
  0xff   : > { %2595 = vmatprep.mubr.bf16.mxu0 %v1536_v49  ;;  %3755 = vmatprep.mubr.bf16.mxu1 %v1646_v2 }
 0x101   : > { %v3367_v25 = vpop.f32.mrb[0].mxu0  ;;  %v3439_v10 = vpop.f32.mrb[0].mxu1 }
 0x102   : > { %v3368_v7 = vpop.f32.mrb[1].mxu0  ;;  %v3440_v51 = vpop.f32.mrb[1].mxu1 }
 0x103   : > { %v3369_v39 = vadd.f32 %v3368_v7, %v3367_v25  ;;  %v3370_v17 = vpop.f32.mrb[2].mxu0  ;;  %v4921_v32 = vadd.f32 %v3440_v51, %v3439_v10  ;;  %v3442_v4 = vpop.f32.mrb[2].mxu1 }
 0x104   : > { %v3371_v56 = vpop.f32.mrb[3].mxu0  ;;  %v3443_v34 = vpop.f32.mrb[3].mxu1 }
 0x105   : > { %v3372_v33 = vadd.f32 %v3371_v56, %v3370_v17  ;;  %v4924_v54 = vadd.f32 %v3443_v34, %v3442_v4  ;;  %v2156_v9 = vadd.f32 %v3369_v39, %v4946_v36 }
 0x106   : > { %2596 = vmatmul.mubr.bf16.gmra.mrb[108].mxu0 %v1199_v11  ;;  %3756 = vmatmul.mubr.bf16.gmra.mrb[108].mxu1 %v1649_v31 }
 0x107   : > { %v2159_v10 = vadd.f32 %v3372_v33, %v4946_v36 }
 0x109   : > { %v3373_v46 = vpop.f32.mrb[4].mxu0  ;;  %v3445_v27 = vpop.f32.mrb[4].mxu1 }
 0x10a   : > { %v3374_v14 = vpop.f32.mrb[5].mxu0  ;;  %v3446_v3 = vpop.f32.mrb[5].mxu1 }
 0x10b   : > { %v3375_v23 = vadd.f32 %v3374_v14, %v3373_v46  ;;  %v3376_v38 = vpop.f32.mrb[6].mxu0  ;;  %v4927_v30 = vadd.f32 %v3446_v3, %v3445_v27  ;;  %v3448_v63 = vpop.f32.mrb[6].mxu1 }
 0x10c   : > { %v3377_v21 = vpop.f32.mrb[7].mxu0  ;;  %v3449_v43 = vpop.f32.mrb[7].mxu1 }
 0x10d   : > { %v3378_v15 = vadd.f32 %v3377_v21, %v3376_v38  ;;  %v4929_v41 = vadd.f32 %v3449_v43, %v3448_v63  ;;  %v2164_v31 = vadd.f32 %v3375_v23, %v4946_v36 }
 0x10f   : > { %v2167_v3 = vadd.f32 %v3378_v15, %v4946_v36 }
 0x111   : > { %v3379_v50 = vpop.f32.mrb[8].mxu0  ;;  %v3451_v44 = vpop.f32.mrb[8].mxu1 }
 0x112   : > { %v3380_v24 = vpop.f32.mrb[9].mxu0  ;;  %v3452_v45 = vpop.f32.mrb[9].mxu1 }
 0x113   : > { %v3381_v59 = vadd.f32 %v3380_v24, %v3379_v50  ;;  %v3382_v22 = vpop.f32.mrb[10].mxu0  ;;  %v4931_v12 = vadd.f32 %v3452_v45, %v3451_v44  ;;  %v3454_v29 = vpop.f32.mrb[10].mxu1 }
 0x114   : > { %v3383_v48 = vpop.f32.mrb[11].mxu0  ;;  %v3455_v42 = vpop.f32.mrb[11].mxu1 }
 0x115   : > { %v3384_v62 = vadd.f32 %v3383_v48, %v3382_v22  ;;  %v4933_v1 = vadd.f32 %v3455_v42, %v3454_v29  ;;  %v2172_v29 = vadd.f32 %v3381_v59, %v4946_v36 }
 0x119   : > { %v3385_v19 = vpop.f32.mrb[12].mxu0  ;;  %v3457_v57 = vpop.f32.mrb[12].mxu1 }
 0x11a   : > { %v3386_v60 = vpop.f32.mrb[13].mxu0  ;;  %v3458_v35 = vpop.f32.mrb[13].mxu1 }
 0x11b   : > { %v4935_v28 = vadd.f32 %v3386_v60, %v3385_v19  ;;  %v3388_v8 = vpop.f32.mrb[14].mxu0  ;;  %v4937_v13 = vadd.f32 %v3458_v35, %v3457_v57  ;;  %v3460_v0 = vpop.f32.mrb[14].mxu1  ;;  %v2175_v57 = vadd.f32 %v3384_v62, %v4946_v36 }
 0x11c   : > { %v3389_v40 = vpop.f32.mrb[15].mxu0  ;;  %v3461_v6 = vpop.f32.mrb[15].mxu1 }
 0x11d   : > { %v4939_v5 = vadd.f32 %v3389_v40, %v3388_v8  ;;  %v4941_v37 = vadd.f32 %v3461_v6, %v3460_v0 }
 0x121   : > { %v3391_v58 = vpop.f32.mrb[16].mxu0  ;;  %v3479_v47 = vpop.f32.mrb[16].mxu1 }
 0x122   : > { %v3392_v16 = vpop.f32.mrb[17].mxu0  ;;  %v3480_v49 = vpop.f32.mrb[17].mxu1 }
 0x123   : > { %v4948_v55 = vadd.f32 %v3392_v16, %v3391_v58  ;;  %v3394_v26 = vpop.f32.mrb[18].mxu0  ;;  %v3481_v2 = vadd.f32 %v3480_v49, %v3479_v47  ;;  %v3482_v61 = vpop.f32.mrb[18].mxu1 }
 0x124   : > { %v3395_v20 = vpop.f32.mrb[19].mxu0  ;;  %v3483_v25 = vpop.f32.mrb[19].mxu1 }
 0x125   : > { %v4951_v53 = vadd.f32 %v3395_v20, %v3394_v26  ;;  %v4954_v52 = vadd.f32 %v3481_v2, %v2156_v9  ;;  %v3484_v18 = vadd.f32 %v3483_v25, %v3482_v61  ;;  %v2180_v26 = vadd.f32 %v4935_v28, %v4946_v36 }
 0x126   : > { %v2183_v2 = vadd.f32 %v4939_v5, %v4946_v36 }
 0x127   : > { %v4956_v7 = vadd.f32 %v3484_v18, %v2159_v10 }
 0x129   : > { %v3397_v51 = vpop.f32.mrb[20].mxu0  ;;  %v3485_v4 = vpop.f32.mrb[20].mxu1 }
 0x12a   : > { %v3398_v17 = vpop.f32.mrb[21].mxu0  ;;  %v3486_v34 = vpop.f32.mrb[21].mxu1 }
 0x12b   : > { %v4958_v11 = vadd.f32 %v3398_v17, %v3397_v51  ;;  %v3400_v56 = vpop.f32.mrb[22].mxu0  ;;  %v3487_v46 = vadd.f32 %v3486_v34, %v3485_v4  ;;  %v3488_v27 = vpop.f32.mrb[22].mxu1 }
 0x12c   : > { %v3401_v39 = vpop.f32.mrb[23].mxu0  ;;  %v3489_v33 = vpop.f32.mrb[23].mxu1 }
 0x12d   : > { %v4961_v14 = vadd.f32 %v3401_v39, %v3400_v56  ;;  %v4964_v38 = vadd.f32 %v3487_v46, %v2164_v31  ;;  %v3490_v63 = vadd.f32 %v3489_v33, %v3488_v27  ;;  %v2188_v39 = vadd.f32 %v4948_v55, %v4946_v36 }
 0x12e   : > { %v2191_v33 = vadd.f32 %v4951_v53, %v4946_v36 }
 0x12f   : > { %v4966_v21 = vadd.f32 %v3490_v63, %v2167_v3 }
 0x131   : > { %v3403_v43 = vpop.f32.mrb[24].mxu0  ;;  %v3491_v44 = vpop.f32.mrb[24].mxu1 }
 0x132   : > { %v3404_v50 = vpop.f32.mrb[25].mxu0  ;;  %v3492_v22 = vpop.f32.mrb[25].mxu1 }
 0x133   : > { %v4968_v24 = vadd.f32 %v3404_v50, %v3403_v43  ;;  %v3406_v45 = vpop.f32.mrb[26].mxu0  ;;  %v3493_v48 = vadd.f32 %v3492_v22, %v3491_v44  ;;  %v3494_v42 = vpop.f32.mrb[26].mxu1 }
 0x134   : > { %v3407_v23 = vpop.f32.mrb[27].mxu0  ;;  %v3495_v15 = vpop.f32.mrb[27].mxu1 }
 0x135   : > { %v4971_v19 = vadd.f32 %v3407_v23, %v3406_v45  ;;  %v4974_v60 = vadd.f32 %v3493_v48, %v2172_v29  ;;  %v3496_v35 = vadd.f32 %v3495_v15, %v3494_v42  ;;  %v2196_v48 = vadd.f32 %v4958_v11, %v4946_v36 }
 0x137   : > { %v4976_v8 = vadd.f32 %v3496_v35, %v2175_v57  ;;  %v2199_v35 = vadd.f32 %v4961_v14, %v4946_v36 }
 0x139   : > { %v3409_v0 = vpop.f32.mrb[28].mxu0  ;;  %v3497_v6 = vpop.f32.mrb[28].mxu1 }
 0x13a   : > { %v3410_v40 = vpop.f32.mrb[29].mxu0  ;;  %v3498_v47 = vpop.f32.mrb[29].mxu1 }
 0x13b   : > { %v4978_v58 = vadd.f32 %v3410_v40, %v3409_v0  ;;  %v3412_v16 = vpop.f32.mrb[30].mxu0  ;;  %v3499_v49 = vadd.f32 %v3498_v47, %v3497_v6  ;;  %v3500_v20 = vpop.f32.mrb[30].mxu1 }
 0x13c   : > { %v3413_v59 = vpop.f32.mrb[31].mxu0  ;;  %v3501_v62 = vpop.f32.mrb[31].mxu1 }
 0x13d   : > { %v4982_v9 = vadd.f32 %v3413_v59, %v3412_v16  ;;  %v4986_v61 = vadd.f32 %v3499_v49, %v2180_v26  ;;  %v3502_v25 = vadd.f32 %v3501_v62, %v3500_v20  ;;  %v2204_v62 = vadd.f32 %v4968_v24, %v4946_v36 }
 0x13f   : > { %v4988_v10 = vadd.f32 %v3502_v25, %v2183_v2 }
 0x141   : > { %v3415_v18 = vpop.f32.mrb[32].mxu0  ;;  %v3503_v17 = vpop.f32.mrb[32].mxu1 }
 0x142   : > { %v3416_v51 = vpop.f32.mrb[33].mxu0  ;;  %v3504_v28 = vpop.f32.mrb[33].mxu1 }
 0x143   : > { %v4990_v4 = vadd.f32 %v3416_v51, %v3415_v18  ;;  %v3418_v56 = vpop.f32.mrb[34].mxu0  ;;  %v3505_v31 = vadd.f32 %v3504_v28, %v3503_v17  ;;  %v3506_v46 = vpop.f32.mrb[34].mxu1  ;;  %v2207_v51 = vadd.f32 %v4971_v19, %v4946_v36 }
 0x144   : > { %v3419_v34 = vpop.f32.mrb[35].mxu0  ;;  %v3507_v5 = vpop.f32.mrb[35].mxu1 }
 0x145   : > { %v4994_v27 = vadd.f32 %v3419_v34, %v3418_v56  ;;  %v4998_v3 = vadd.f32 %v3505_v31, %v2188_v39  ;;  %v3508_v63 = vadd.f32 %v3507_v5, %v3506_v46 }
 0x147   : > { %v5000_v43 = vadd.f32 %v3508_v63, %v2191_v33  ;;  %v2212_v63 = vadd.f32 %v4978_v58, %v4946_v36 }
 0x149   : > { %v3421_v50 = vpop.f32.mrb[36].mxu0  ;;  %v3509_v45 = vpop.f32.mrb[36].mxu1 }
 0x14a   : > { %v3422_v44 = vpop.f32.mrb[37].mxu0  ;;  %v3510_v55 = vpop.f32.mrb[37].mxu1 }
 0x14b   : > { %v5002_v22 = vadd.f32 %v3422_v44, %v3421_v50  ;;  %v3424_v23 = vpop.f32.mrb[38].mxu0  ;;  %v3511_v42 = vadd.f32 %v3510_v55, %v3509_v45  ;;  %v3512_v15 = vpop.f32.mrb[38].mxu1 }
 0x14c   : > { %v3425_v29 = vpop.f32.mrb[39].mxu0  ;;  %v3513_v53 = vpop.f32.mrb[39].mxu1 }
 0x14d   : > { %v5006_v57 = vadd.f32 %v3425_v29, %v3424_v23  ;;  %v5010_v0 = vadd.f32 %v3511_v42, %v2196_v48  ;;  %v3514_v40 = vadd.f32 %v3513_v53, %v3512_v15  ;;  %v2215_v23 = vadd.f32 %v4982_v9, %v4946_v36 }
 0x14f   : > { %v5012_v6 = vadd.f32 %v3514_v40, %v2199_v35 }
 0x151   : > { %v3427_v16 = vpop.f32.mrb[40].mxu0  ;;  %v3515_v59 = vpop.f32.mrb[40].mxu1 }
 0x152   : > { %v3428_v47 = vpop.f32.mrb[41].mxu0  ;;  %v3516_v11 = vpop.f32.mrb[41].mxu1 }
 0x153   : > { %v5014_v26 = vadd.f32 %v3428_v47, %v3427_v16  ;;  %v3430_v49 = vpop.f32.mrb[42].mxu0  ;;  %v3517_v2 = vadd.f32 %v3516_v11, %v3515_v59  ;;  %v3518_v25 = vpop.f32.mrb[42].mxu1  ;;  %v2220_v47 = vadd.f32 %v4990_v4, %v4946_v36 }
 0x154   : > { %v3431_v20 = vpop.f32.mrb[43].mxu0  ;;  %v3519_v14 = vpop.f32.mrb[43].mxu1 }
 0x155   : > { %v5018_v18 = vadd.f32 %v3431_v20, %v3430_v49  ;;  %v5022_v17 = vadd.f32 %v3517_v2, %v2204_v62  ;;  %v3520_v56 = vadd.f32 %v3519_v14, %v3518_v25  ;;  %v2223_v62 = vadd.f32 %v4994_v27, %v4946_v36 }
 0x157   : > { %v5024_v28 = vadd.f32 %v3520_v56, %v2207_v51 }
 0x159   : > { %v3433_v34 = vpop.f32.mrb[44].mxu0  ;;  %v3521_v31 = vpop.f32.mrb[44].mxu1 }
 0x15a   : > { %v3434_v39 = vpop.f32.mrb[45].mxu0  ;;  %v3522_v24 = vpop.f32.mrb[45].mxu1 }
 0x15b   : > { %v5026_v46 = vadd.f32 %v3434_v39, %v3433_v34  ;;  %v3436_v5 = vpop.f32.mrb[46].mxu0  ;;  %v3523_v50 = vadd.f32 %v3522_v24, %v3521_v31  ;;  %v3524_v44 = vpop.f32.mrb[46].mxu1  ;;  %v2228_v24 = vadd.f32 %v5002_v22, %v4946_v36 }
 0x15c   : > { %v3437_v33 = vpop.f32.mrb[47].mxu0  ;;  %v3525_v19 = vpop.f32.mrb[47].mxu1 }
 0x15d   : > { %v5030_v45 = vadd.f32 %v3437_v33, %v3436_v5  ;;  %v5034_v55 = vadd.f32 %v3523_v50, %v2212_v63  ;;  %v3526_v29 = vadd.f32 %v3525_v19, %v3524_v44  ;;  %v2231_v44 = vadd.f32 %v5006_v57, %v4946_v36 }
 0x15f   : > { %v5036_v48 = vadd.f32 %v3526_v29, %v2215_v23 }
 0x161   : > { %v3591_v42 = vpop.f32.mrb[48].mxu0  ;;  %v3527_v53 = vpop.f32.mrb[48].mxu1 }
 0x162   : > { %v3592_v15 = vpop.f32.mrb[49].mxu0  ;;  %v3528_v16 = vpop.f32.mrb[49].mxu1 }
 0x163   : > { %v3593_v35 = vadd.f32 %v3592_v15, %v3591_v42  ;;  %v3594_v40 = vpop.f32.mrb[50].mxu0  ;;  %v3529_v59 = vadd.f32 %v3528_v16, %v3527_v53  ;;  %v3530_v49 = vpop.f32.mrb[50].mxu1 }
 0x164   : > { %v3595_v58 = vpop.f32.mrb[51].mxu0  ;;  %v3531_v20 = vpop.f32.mrb[51].mxu1 }
 0x165   : > { %v3596_v11 = vadd.f32 %v3595_v58, %v3594_v40  ;;  %v5041_v9 = vadd.f32 %v3593_v35, %v4954_v52  ;;  %v5045_v2 = vadd.f32 %v3529_v59, %v2220_v47  ;;  %v3532_v25 = vadd.f32 %v3531_v20, %v3530_v49 }
 0x166   : > { %v2236_v58 = vadd.f32 %v5014_v26, %v4946_v36 }
 0x167   : > { %v5048_v14 = vadd.f32 %v3596_v11, %v4956_v7  ;;  %v5050_v51 = vadd.f32 %v3532_v25, %v2223_v62  ;;  %v2239_v11 = vadd.f32 %v5018_v18, %v4946_v36 }
 0x169   : > { %v3597_v56 = vpop.f32.mrb[52].mxu0  ;;  %v3533_v34 = vpop.f32.mrb[52].mxu1 }
 0x16a   : > { %v3598_v4 = vpop.f32.mrb[53].mxu0  ;;  %v3534_v5 = vpop.f32.mrb[53].mxu1 }
 0x16b   : > { %v3599_v39 = vadd.f32 %v3598_v4, %v3597_v56  ;;  %v3600_v31 = vpop.f32.mrb[54].mxu0  ;;  %v3535_v33 = vadd.f32 %v3534_v5, %v3533_v34  ;;  %v3536_v27 = vpop.f32.mrb[54].mxu1 }
 0x16c   : > { %v3601_v52 = vpop.f32.mrb[55].mxu0  ;;  %v3537_v7 = vpop.f32.mrb[55].mxu1 }
 0x16d   : > { %v3602_v63 = vadd.f32 %v3601_v52, %v3600_v31  ;;  %v5055_v50 = vadd.f32 %v3599_v39, %v4964_v38  ;;  %v5059_v19 = vadd.f32 %v3535_v33, %v2228_v24  ;;  %v3538_v23 = vadd.f32 %v3537_v7, %v3536_v27 }
 0x16e   : > { %v2244_v52 = vadd.f32 %v5026_v46, %v4946_v36 }
 0x16f   : > { %v5062_v29 = vadd.f32 %v3602_v63, %v4966_v21  ;;  %v5064_v42 = vadd.f32 %v3538_v23, %v2231_v44  ;;  %v2247_v63 = vadd.f32 %v5030_v45, %v4946_v36 }
 0x171   : > { %v3603_v15 = vpop.f32.mrb[56].mxu0  ;;  %v3539_v53 = vpop.f32.mrb[56].mxu1 }
 0x172   : > { %v3604_v22 = vpop.f32.mrb[57].mxu0  ;;  %v3540_v16 = vpop.f32.mrb[57].mxu1 }
 0x173   : > { %v3605_v35 = vadd.f32 %v3604_v22, %v3603_v15  ;;  %v3606_v40 = vpop.f32.mrb[58].mxu0  ;;  %v3541_v47 = vadd.f32 %v3540_v16, %v3539_v53  ;;  %v3542_v57 = vpop.f32.mrb[58].mxu1 }
 0x174   : > { %v3607_v38 = vpop.f32.mrb[59].mxu0  ;;  %v3543_v21 = vpop.f32.mrb[59].mxu1 }
 0x175   : > { %v3608_v59 = vadd.f32 %v3607_v38, %v3606_v40  ;;  %v5069_v49 = vadd.f32 %v3605_v35, %v4974_v60  ;;  %v5073_v20 = vadd.f32 %v3541_v47, %v2236_v58  ;;  %v3544_v62 = vadd.f32 %v3543_v21, %v3542_v57 }
 0x176   : > { %v2252_v38 = vadd.f32 %v4921_v32, %v4946_v36 }
 0x177   : > { %v5076_v25 = vadd.f32 %v3608_v59, %v4976_v8  ;;  %v5078_v56 = vadd.f32 %v3544_v62, %v2239_v11  ;;  %v2255_v59 = vadd.f32 %v4924_v54, %v4946_v36 }
 0x179   : > { %v3609_v4 = vpop.f32.mrb[60].mxu0  ;;  %v3545_v34 = vpop.f32.mrb[60].mxu1 }
 0x17a   : > { %v3610_v26 = vpop.f32.mrb[61].mxu0  ;;  %v3546_v5 = vpop.f32.mrb[61].mxu1 }
 0x17b   : > { %v3611_v39 = vadd.f32 %v3610_v26, %v3609_v4  ;;  %v3612_v31 = vpop.f32.mrb[62].mxu0  ;;  %v3547_v24 = vadd.f32 %v3546_v5, %v3545_v34  ;;  %v3548_v18 = vpop.f32.mrb[62].mxu1 }
 0x17c   : > { %v3613_v60 = vpop.f32.mrb[63].mxu0  ;;  %v3549_v8 = vpop.f32.mrb[63].mxu1 }
 0x17d   : > { %v3614_v33 = vadd.f32 %v3613_v60, %v3612_v31  ;;  %v5083_v27 = vadd.f32 %v3611_v39, %v4986_v61  ;;  %v5087_v7 = vadd.f32 %v3547_v24, %v2244_v52  ;;  %v3550_v44 = vadd.f32 %v3549_v8, %v3548_v18 }
 0x17e   : > { %v2260_v60 = vadd.f32 %v4927_v30, %v4946_v36 }
 0x17f   : > { %v5090_v23 = vadd.f32 %v3614_v33, %v4988_v10  ;;  %v5092_v15 = vadd.f32 %v3550_v44, %v2247_v63  ;;  %v2263_v33 = vadd.f32 %v4929_v41, %v4946_v36 }
 0x181   : > { %v3615_v22 = vpop.f32.mrb[64].mxu0  ;;  %v3551_v53 = vpop.f32.mrb[64].mxu1 }
 0x182   : > { %v3616_v46 = vpop.f32.mrb[65].mxu0  ;;  %v3552_v16 = vpop.f32.mrb[65].mxu1 }
 0x183   : > { %v3617_v35 = vadd.f32 %v3616_v46, %v3615_v22  ;;  %v3618_v40 = vpop.f32.mrb[66].mxu0  ;;  %v3553_v58 = vadd.f32 %v3552_v16, %v3551_v53  ;;  %v3554_v45 = vpop.f32.mrb[66].mxu1 }
 0x184   : > { %v3619_v61 = vpop.f32.mrb[67].mxu0  ;;  %v3555_v10 = vpop.f32.mrb[67].mxu1 }
 0x185   : > { %v3620_v47 = vadd.f32 %v3619_v61, %v3618_v40  ;;  %v5097_v57 = vadd.f32 %v3617_v35, %v4998_v3  ;;  %v5101_v21 = vadd.f32 %v3553_v58, %v2252_v38  ;;  %v3556_v11 = vadd.f32 %v3555_v10, %v3554_v45 }
 0x186   : > { %v2268_v61 = vadd.f32 %v4931_v12, %v4946_v36 }
 0x187   : > { %v5104_v62 = vadd.f32 %v3620_v47, %v5000_v43  ;;  %v5106_v4 = vadd.f32 %v3556_v11, %v2255_v59  ;;  %v2271_v47 = vadd.f32 %v4933_v1, %v4946_v36 }
 0x189   : > { %v3621_v26 = vpop.f32.mrb[68].mxu0  ;;  %v3557_v34 = vpop.f32.mrb[68].mxu1 }
 0x18a   : > { %v3622_v32 = vpop.f32.mrb[69].mxu0  ;;  %v3558_v5 = vpop.f32.mrb[69].mxu1 }
 0x18b   : > { %v3623_v39 = vadd.f32 %v3622_v32, %v3621_v26  ;;  %v3624_v31 = vpop.f32.mrb[70].mxu0  ;;  %v3559_v52 = vadd.f32 %v3558_v5, %v3557_v34  ;;  %v3560_v54 = vpop.f32.mrb[70].mxu1 }
 0x18c   : > { %v3625_v3 = vpop.f32.mrb[71].mxu0  ;;  %v3561_v43 = vpop.f32.mrb[71].mxu1 }
 0x18d   : > { %v3626_v24 = vadd.f32 %v3625_v3, %v3624_v31  ;;  %v5111_v18 = vadd.f32 %v3623_v39, %v5010_v0  ;;  %v5115_v8 = vadd.f32 %v3559_v52, %v2260_v60  ;;  %v3562_v63 = vadd.f32 %v3561_v43, %v3560_v54 }
 0x18e   : > { %v2276_v3 = vadd.f32 %v4937_v13, %v4946_v36 }
 0x18f   : > { %v5118_v44 = vadd.f32 %v3626_v24, %v5012_v6  ;;  %v5120_v22 = vadd.f32 %v3562_v63, %v2263_v33  ;;  %v2279_v24 = vadd.f32 %v4941_v37, %v4946_v36 }
 0x191   : > { %v3627_v46 = vpop.f32.mrb[72].mxu0  ;;  %v3563_v53 = vpop.f32.mrb[72].mxu1 }
 0x192   : > { %v3628_v30 = vpop.f32.mrb[73].mxu0  ;;  %v3564_v16 = vpop.f32.mrb[73].mxu1 }
 0x193   : > { %v3629_v35 = vadd.f32 %v3628_v30, %v3627_v46  ;;  %v3630_v40 = vpop.f32.mrb[74].mxu0  ;;  %v3565_v38 = vadd.f32 %v3564_v16, %v3563_v53  ;;  %v3566_v41 = vpop.f32.mrb[74].mxu1 }
 0x194   : > { %v3631_v0 = vpop.f32.mrb[75].mxu0  ;;  %v3567_v6 = vpop.f32.mrb[75].mxu1 }
 0x195   : > { %v3632_v58 = vadd.f32 %v3631_v0, %v3630_v40  ;;  %v5125_v45 = vadd.f32 %v3629_v35, %v5022_v17  ;;  %v5129_v10 = vadd.f32 %v3565_v38, %v2268_v61  ;;  %v3568_v59 = vadd.f32 %v3567_v6, %v3566_v41 }
 0x197   : > { %v5132_v11 = vadd.f32 %v3632_v58, %v5024_v28  ;;  %v5134_v26 = vadd.f32 %v3568_v59, %v2271_v47 }
 0x199   : > { %v3633_v32 = vpop.f32.mrb[76].mxu0  ;;  %v3569_v34 = vpop.f32.mrb[76].mxu1 }
 0x19a   : > { %v3634_v12 = vpop.f32.mrb[77].mxu0  ;;  %v3570_v5 = vpop.f32.mrb[77].mxu1 }
 0x19b   : > { %v3635_v39 = vadd.f32 %v3634_v12, %v3633_v32  ;;  %v3636_v31 = vpop.f32.mrb[78].mxu0  ;;  %v3571_v60 = vadd.f32 %v3570_v5, %v3569_v34  ;;  %v3572_v1 = vpop.f32.mrb[78].mxu1 }
 0x19c   : > { %v3637_v17 = vpop.f32.mrb[79].mxu0  ;;  %v3573_v28 = vpop.f32.mrb[79].mxu1 }
 0x19d   : > { %v3638_v52 = vadd.f32 %v3637_v17, %v3636_v31  ;;  %v5139_v54 = vadd.f32 %v3635_v39, %v5034_v55  ;;  %v5143_v43 = vadd.f32 %v3571_v60, %v2276_v3  ;;  %v3574_v33 = vadd.f32 %v3573_v28, %v3572_v1 }
 0x19f   : > { %v5146_v63 = vadd.f32 %v3638_v52, %v5036_v48  ;;  %v5148_v46 = vadd.f32 %v3574_v33, %v2279_v24 }
 0x1a1   : > { %v3639_v13 = vpop.f32.mrb[80].mxu0  ;;  %v3729_v53 = vpop.f32.mrb[80].mxu1 }
 0x1a2   : > { %v3640_v30 = vpop.f32.mrb[81].mxu0  ;;  %v2647_v55 = vadd.f32 %v3729_v53, %v5055_v50  ;;  %v2638_v16 = vpop.f32.mrb[81].mxu1 }
 0x1a3   : > { %v3641_v35 = vadd.f32 %v3640_v30, %v3639_v13  ;;  %v3642_v40 = vpop.f32.mrb[82].mxu0  ;;  %v2639_v37 = vadd.f32 %v2638_v16, %v5041_v9  ;;  %v3730_v36 = vpop.f32.mrb[82].mxu1 }
 0x1a4   : > { %v3643_v0 = vpop.f32.mrb[83].mxu0  ;;  %v2650_v48 = vadd.f32 %v3730_v36, %v5062_v29  ;;  %v2641_v41 = vpop.f32.mrb[83].mxu1  ;;  %v2767_v47 = vmax.f32 %v2647_v55, 0.0 }
 0x1a5   : > { %v3644_v61 = vadd.f32 %v3643_v0, %v3642_v40  ;;  %v5153_v38 = vadd.f32 %v3641_v35, %v5045_v2  ;;  %v2642_v58 = vadd.f32 %v2641_v41, %v5048_v14  ;;  %v2765_v59 = vmax.f32 %v2639_v37, 0.0 }
 0x1a6   : > { %v2768_v50 = vmax.f32 %v2650_v48, 0.0 }
 0x1a7   : > { %v5159_v6 = vadd.f32 %v3644_v61, %v5050_v51  ;;  %v2766_v9 = vmax.f32 %v2642_v58, 0.0 }
 0x1a8   : > { %v3264_v32 = vpack.c.bf16 %v2768_v50, %v2767_v47 }
 0x1a9   : > { %v3645_v2 = vpop.f32.mrb[84].mxu0  ;;  %v3259_v12 = vpack.c.bf16 %v2766_v9, %v2765_v59  ;;  %v3733_v34 = vpop.f32.mrb[84].mxu1 }
 0x1aa   : > { %v3646_v29 = vpop.f32.mrb[85].mxu0  ;;  %3336 = vst [vmem:[%s5164_s11 + $0x8] sm:$0xff] %v3264_v32   ;;  %v2663_v51 = vadd.f32 %v3733_v34, %v5083_v27  ;;  %v2654_v31 = vpop.f32.mrb[85].mxu1 }
 0x1ab   : > { %v3647_v14 = vadd.f32 %v3646_v29, %v3645_v2  ;;  %v3648_v39 = vpop.f32.mrb[86].mxu0  ;;  %3260 = vst [vmem:[%s5164_s11] sm:$0xff] %v3259_v12   ;;  %v2655_v17 = vadd.f32 %v2654_v31, %v5069_v49  ;;  %v3734_v3 = vpop.f32.mrb[86].mxu1 }
 0x1ac   : > { %v3649_v5 = vpop.f32.mrb[87].mxu0  ;;  %v2666_v52 = vadd.f32 %v3734_v3, %v5090_v23  ;;  %v2657_v28 = vpop.f32.mrb[87].mxu1  ;;  %v2771_v27 = vmax.f32 %v2663_v51, 0.0 }
 0x1ad   : > { %v3650_v60 = vadd.f32 %v3649_v5, %v3648_v39  ;;  %v5171_v1 = vadd.f32 %v3647_v14, %v5059_v19  ;;  %v2658_v24 = vadd.f32 %v2657_v28, %v5076_v25  ;;  %v2769_v30 = vmax.f32 %v2655_v17, 0.0 }
 0x1ae   : > { %v2772_v13 = vmax.f32 %v2666_v52, 0.0 }
 0x1af   : > { %v5176_v33 = vadd.f32 %v3650_v60, %v5064_v42  ;;  %v2770_v53 = vmax.f32 %v2658_v24, 0.0 }
 0x1b0   : > { %v3274_v35 = vpack.c.bf16 %v2772_v13, %v2771_v27 }
 0x1b1   : > { %v3651_v49 = vpop.f32.mrb[88].mxu0  ;;  %v3269_v55 = vpack.c.bf16 %v2770_v53, %v2769_v30  ;;  %v3737_v19 = vpop.f32.mrb[88].mxu1 }
 0x1b2   : > { %v3652_v40 = vpop.f32.mrb[89].mxu0  ;;  %3338 = vst [vmem:[%s5164_s11 + $0x18] sm:$0xff] %v3274_v35   ;;  %v2679_v23 = vadd.f32 %v3737_v19, %v5111_v18  ;;  %v2670_v37 = vpop.f32.mrb[89].mxu1 }
 0x1b3   : > { %v3653_v16 = vadd.f32 %v3652_v40, %v3651_v49  ;;  %v3654_v0 = vpop.f32.mrb[90].mxu0  ;;  %3337 = vst [vmem:[%s5164_s11 + $0x10] sm:$0xff] %v3269_v55   ;;  %v2671_v42 = vadd.f32 %v2670_v37, %v5097_v57  ;;  %v3738_v36 = vpop.f32.mrb[90].mxu1 }
 0x1b4   : > { %v3655_v25 = vpop.f32.mrb[91].mxu0  ;;  %v2682_v41 = vadd.f32 %v3738_v36, %v5118_v44  ;;  %v2673_v58 = vpop.f32.mrb[91].mxu1  ;;  %v2775_v18 = vmax.f32 %v2679_v23, 0.0 }
 0x1b5   : > { %v3656_v61 = vadd.f32 %v3655_v25, %v3654_v0  ;;  %v5183_v48 = vadd.f32 %v3653_v16, %v5073_v20  ;;  %v2674_v47 = vadd.f32 %v2673_v58, %v5104_v62  ;;  %v2773_v9 = vmax.f32 %v2671_v42, 0.0 }
 0x1b6   : > { %v2776_v59 = vmax.f32 %v2682_v41, 0.0 }
 0x1b7   : > { %v5188_v50 = vadd.f32 %v3656_v61, %v5078_v56  ;;  %v2774_v2 = vmax.f32 %v2674_v47, 0.0 }
 0x1b8   : > { %v3284_v32 = vpack.c.bf16 %v2776_v59, %v2775_v18 }
 0x1b9   : > { %v3657_v57 = vpop.f32.mrb[92].mxu0  ;;  %v3279_v12 = vpack.c.bf16 %v2774_v2, %v2773_v9  ;;  %v3741_v20 = vpop.f32.mrb[92].mxu1 }
 0x1ba   : > { %v3658_v29 = vpop.f32.mrb[93].mxu0  ;;  %3340 = vst [vmem:[%s5164_s11 + $0x28] sm:$0xff] %v3284_v32   ;;  %v2695_v44 = vadd.f32 %v3741_v20, %v5139_v54  ;;  %v2686_v39 = vpop.f32.mrb[93].mxu1 }
 0x1bb   : > { %v3659_v34 = vadd.f32 %v3658_v29, %v3657_v57  ;;  %v3660_v14 = vpop.f32.mrb[94].mxu0  ;;  %3339 = vst [vmem:[%s5164_s11 + $0x20] sm:$0xff] %v3279_v12   ;;  %v2687_v56 = vadd.f32 %v2686_v39, %v5125_v45  ;;  %v3742_v51 = vpop.f32.mrb[94].mxu1 }
 0x1bc   : > { %v3661_v62 = vpop.f32.mrb[95].mxu0  ;;  %v2698_v17 = vadd.f32 %v3742_v51, %v5146_v63  ;;  %v2689_v3 = vpop.f32.mrb[95].mxu1  ;;  %v2779_v28 = vmax.f32 %v2695_v44, 0.0 }
 0x1bd   : > { %v3662_v31 = vadd.f32 %v3661_v62, %v3660_v14  ;;  %v2566_v5 = vadd.f32 %v3659_v34, %v5087_v7  ;;  %v2690_v60 = vadd.f32 %v2689_v3, %v5132_v11  ;;  %v2777_v24 = vmax.f32 %v2687_v56, 0.0 }
 0x1be   : > { %v2780_v54 = vmax.f32 %v2698_v17, 0.0 }
 0x1bf   : > { %v2569_v52 = vadd.f32 %v3662_v31, %v5092_v15  ;;  %v2778_v27 = vmax.f32 %v2690_v60, 0.0 }
 0x1c0   : > { %v3294_v30 = vpack.c.bf16 %v2780_v54, %v2779_v28 }
 0x1c1   : > { %v3663_v13 = vpop.f32.mrb[96].mxu0  ;;  %v3289_v53 = vpack.c.bf16 %v2778_v27, %v2777_v24  ;;  %v3745_v49 = vpop.f32.mrb[96].mxu1 }
 0x1c2   : > { %v3664_v45 = vpop.f32.mrb[97].mxu0  ;;  %3342 = vst [vmem:[%s5164_s11 + $0x38] sm:$0xff] %v3294_v30   ;;  %v2711_v63 = vadd.f32 %v3745_v49, %v5171_v1  ;;  %v2702_v40 = vpop.f32.mrb[97].mxu1 }
 0x1c3   : > { %v3665_v35 = vadd.f32 %v3664_v45, %v3663_v13  ;;  %v3666_v7 = vpop.f32.mrb[98].mxu0  ;;  %3341 = vst [vmem:[%s5164_s11 + $0x30] sm:$0xff] %v3289_v53   ;;  %v2703_v15 = vadd.f32 %v2702_v40, %v5153_v38  ;;  %v3746_v11 = vpop.f32.mrb[98].mxu1 }
 0x1c4   : > { %v3667_v55 = vpop.f32.mrb[99].mxu0  ;;  %v2714_v0 = vadd.f32 %v3746_v11, %v5176_v33  ;;  %v2705_v23 = vpop.f32.mrb[99].mxu1  ;;  %v2783_v42 = vmax.f32 %v2711_v63, 0.0 }
 0x1c5   : > { %v3668_v19 = vadd.f32 %v3667_v55, %v3666_v7  ;;  %v2574_v16 = vadd.f32 %v3665_v35, %v5101_v21  ;;  %v2706_v37 = vadd.f32 %v2705_v23, %v5159_v6  ;;  %v2781_v36 = vmax.f32 %v2703_v15, 0.0 }
 0x1c6   : > { %v2784_v1 = vmax.f32 %v2714_v0, 0.0 }
 0x1c7   : > { %v2577_v25 = vadd.f32 %v3668_v19, %v5106_v4  ;;  %v2782_v61 = vmax.f32 %v2706_v37, 0.0 }
 0x1c8   : > { %v3304_v58 = vpack.c.bf16 %v2784_v1, %v2783_v42 }
 0x1c9   : > { %v3669_v41 = vpop.f32.mrb[100].mxu0  ;;  %v3299_v47 = vpack.c.bf16 %v2782_v61, %v2781_v36  ;;  %v3749_v18 = vpop.f32.mrb[100].mxu1 }
 0x1ca   : > { %v3670_v38 = vpop.f32.mrb[101].mxu0  ;;  %3344 = vst [vmem:[%s5164_s11 + $0x48] sm:$0xff] %v3304_v58   ;;  %v2727_v9 = vadd.f32 %v3749_v18, %v2566_v5  ;;  %v2718_v33 = vpop.f32.mrb[101].mxu1 }
 0x1cb   : > { %v3671_v59 = vadd.f32 %v3670_v38, %v3669_v41  ;;  %v3672_v21 = vpop.f32.mrb[102].mxu0  ;;  %3343 = vst [vmem:[%s5164_s11 + $0x40] sm:$0xff] %v3299_v47   ;;  %v2719_v6 = vadd.f32 %v2718_v33, %v5183_v48  ;;  %v3750_v4 = vpop.f32.mrb[102].mxu1 }
 0x1cc   : > { %v3673_v2 = vpop.f32.mrb[103].mxu0  ;;  %v2730_v29 = vadd.f32 %v3750_v4, %v2569_v52  ;;  %v2721_v12 = vpop.f32.mrb[103].mxu1  ;;  %v2787_v14 = vmax.f32 %v2727_v9, 0.0 }
 0x1cd   : > { %v3674_v57 = vadd.f32 %v3673_v2, %v3672_v21  ;;  %v2582_v32 = vadd.f32 %v3671_v59, %v5115_v8  ;;  %v2722_v20 = vadd.f32 %v2721_v12, %v5188_v50  ;;  %v2785_v39 = vmax.f32 %v2719_v6, 0.0 }
 0x1ce   : > { %v2788_v44 = vmax.f32 %v2730_v29, 0.0 }
 0x1cf   : > { %v2585_v34 = vadd.f32 %v3674_v57, %v5120_v22  ;;  %v2786_v62 = vmax.f32 %v2722_v20, 0.0 }
 0x1d0   : > { %v3314_v51 = vpack.c.bf16 %v2788_v44, %v2787_v14 }
 0x1d1   : > { %v3675_v56 = vpop.f32.mrb[104].mxu0  ;;  %v3309_v48 = vpack.c.bf16 %v2786_v62, %v2785_v39  ;;  %v3753_v5 = vpop.f32.mrb[104].mxu1 }
 0x1d2   : > { %v3676_v31 = vpop.f32.mrb[105].mxu0  ;;  %3346 = vst [vmem:[%s5164_s11 + $0x58] sm:$0xff] %v3314_v51   ;;  %v2743_v8 = vadd.f32 %v3753_v5, %v2582_v32  ;;  %v2734_v60 = vpop.f32.mrb[105].mxu1 }
 0x1d3   : > { %v3677_v17 = vadd.f32 %v3676_v31, %v3675_v56  ;;  %v3678_v3 = vpop.f32.mrb[106].mxu0  ;;  %3345 = vst [vmem:[%s5164_s11 + $0x50] sm:$0xff] %v3309_v48   ;;  %v2735_v50 = vadd.f32 %v2734_v60, %v2574_v16  ;;  %v3754_v28 = vpop.f32.mrb[106].mxu1 }
 0x1d4   : > { %v3679_v52 = vpop.f32.mrb[107].mxu0  ;;  %v2746_v24 = vadd.f32 %v3754_v28, %v2585_v34  ;;  %v2737_v27 = vpop.f32.mrb[107].mxu1  ;;  %v2791_v45 = vmax.f32 %v2743_v8, 0.0 }
 0x1d5   : > { %v3680_v22 = vadd.f32 %v3679_v52, %v3678_v3  ;;  %v2590_v54 = vadd.f32 %v3677_v17, %v5129_v10  ;;  %v2738_v13 = vadd.f32 %v2737_v27, %v2577_v25  ;;  %v2789_v49 = vmax.f32 %v2735_v50, 0.0 }
 0x1d6   : > { %v2792_v53 = vmax.f32 %v2746_v24, 0.0 }
 0x1d7   : > { %v2593_v30 = vadd.f32 %v3680_v22, %v5134_v26  ;;  %v2790_v35 = vmax.f32 %v2738_v13, 0.0 }
 0x1d8   : > { %v3324_v63 = vpack.c.bf16 %v2792_v53, %v2791_v45 }
 0x1d9   : > { %v3681_v7 = vpop.f32.mrb[108].mxu0  ;;  %v3319_v55 = vpack.c.bf16 %v2790_v35, %v2789_v49  ;;  %v3757_v15 = vpop.f32.mrb[108].mxu1 }
 0x1da   : > { %v3682_v40 = vpop.f32.mrb[109].mxu0  ;;  %3348 = vst [vmem:[%s5164_s11 + $0x68] sm:$0xff] %v3324_v63   ;;  %v2750_v10 = vpop.f32.mrb[109].mxu1 }
 0x1db   : > { %v3683_v11 = vadd.f32 %v3682_v40, %v3681_v7  ;;  %v3684_v19 = vpop.f32.mrb[110].mxu0  ;;  %3347 = vst [vmem:[%s5164_s11 + $0x60] sm:$0xff] %v3319_v55   ;;  %v2751_v26 = vadd.f32 %v2750_v10, %v2590_v54  ;;  %v3758_v23 = vpop.f32.mrb[110].mxu1 }
 0x1dc   : > { %v3685_v16 = vpop.f32.mrb[111].mxu0  ;;  %v2753_v25 = vpop.f32.mrb[111].mxu1 }
 0x1dd   : > { %v2598_v0 = vadd.f32 %v3683_v11, %v5143_v43  ;;  %v3686_v37 = vadd.f32 %v3685_v16, %v3684_v19  ;;  %v2754_v36 = vadd.f32 %v2753_v25, %v2593_v30  ;;  %v2793_v61 = vmax.f32 %v2751_v26, 0.0 }
 0x1df   : > { %v2759_v42 = vadd.f32 %v3757_v15, %v2598_v0  ;;  %v2601_v1 = vadd.f32 %v3686_v37, %v5148_v46  ;;  %v2794_v58 = vmax.f32 %v2754_v36, 0.0 }
 0x1e1   : > { %v2762_v41 = vadd.f32 %v3758_v23, %v2601_v1  ;;  %v2795_v38 = vmax.f32 %v2759_v42, 0.0  ;;  %v3329_v18 = vpack.c.bf16 %v2794_v58, %v2793_v61 }
 0x1e3   : > { %v2796_v47 = vmax.f32 %v2762_v41, 0.0  ;;  %3349 = vst [vmem:[%s5164_s11 + $0x70] sm:$0xff] %v3329_v18  }
 0x1e5   : > { %v3334_v59 = vpack.c.bf16 %v2796_v47, %v2795_v38 }
 0x1e7   : > { %3350 = vst [vmem:[%s5164_s11 + $0x78] sm:$0xff] %v3334_v59  }
 0x1e8 PF: > { %s13_s12 = sadd.s32 1, %s3978_s12  }
 0x1e9   : > { %p10_p4 = scmp.ge.s32.totalorder %s13_s12, 4  }
 0x1eb   :  { %12 = sbr.rel (!%p10_p4) target bundleno = 1 (0x1), region = 62 }

// kernel: inception_d_forward.10
= control target key start
LH: loop header
LB: loop body
LE: loop exit
PB: predicated region body
PF: predicated region fallthrough
CT: control target
= control target key end

     0   :  { %s2235_s12 = smov 0   ;;  %s2594_s0 = inlined_call_operand.vmem [shape: bf16[8,9,9,128], index: 0, kind: input, shape index: {}]   ;;  %s2595_s1 = inlined_call_operand.vmem [shape: bf16[1152,128], index: 1, kind: input, shape index: {}]   ;;  %s2596_s2 = inlined_call_operand.vmem [shape: f32[1,128], index: 2, kind: input, shape index: {}]   ;;  %s2597_s3 = inlined_call_operand.vmem [shape: f32[2,64,128], index: 3, kind: output, shape index: {}]  }
   0x1 LB: > { %s2241_s13 = sadd.s32 4294967295, %s2213_s12   ;;  %p1669_p0 = scmp.ge.s32.totalorder %s2213_s12, 1  ;;  %s2213_s12 = sphi %s2235_s12, %s13_s12  }
   0x2   : > { %p139_p1 = scmp.lt.s32.totalorder %s2213_s12, 3 }
   0x4   : > { %p140_p2 = pnand %p1669_p0, %p139_p1 }
   0x5   : > { %v2087_v0 = vld [vmem:[%s2595_s1 + $0x40] sm:$0xff] (!%p140_p2)   ;;  %v2091_v4 = vld [vmem:[%s2595_s1 + $0x48] sm:$0xff] (!%p140_p2)   ;;  %v2095_v8 = vld [vmem:[%s2595_s1 + $0x50] sm:$0xff] (!%p140_p2)   ;;  %s1670_s23 = sshll.u32 (!%p140_p2), %s2241_s13, 2  ;;  %p171_p4 = scmp.lt.s32.totalorder (!%p140_p2), %s2241_s13, 1 }
   0x6   : > { %143 = sbr.rel (%p140_p2) target bundleno = 326 (0x146), region = 32  ;;  %v2088_v1 = vld [vmem:[%s2595_s1 + $0xc0] sm:$0xff] (!%p140_p2)   ;;  %1866 = vmatprep.subr.bf16.mxu0 (!%p140_p2), %v2087_v0  ;;  %v2092_v5 = vld [vmem:[%s2595_s1 + $0xc8] sm:$0xff] (!%p140_p2)   ;;  %v2096_v9 = vld [vmem:[%s2595_s1 + $0xd0] sm:$0xff] (!%p140_p2)   ;;  %p165_p3 = scmp.lt.s32.totalorder (!%p140_p2), %s1670_s23, 7 }
   0x7   : > { %v2089_v2 = vld [vmem:[%s2595_s1] sm:$0xff] (!%p140_p2)   ;;  %1906 = vmatprep.subr.bf16.mxu1 (!%p140_p2), %v2088_v1  ;;  %v2093_v6 = vld [vmem:[%s2595_s1 + $0x8] sm:$0xff] (!%p140_p2)   ;;  %v2097_v10 = vld [vmem:[%s2595_s1 + $0x10] sm:$0xff] (!%p140_p2)  }
   0x8   : > { %v2090_v3 = vld [vmem:[%s2595_s1 + $0x80] sm:$0xff] (!%p140_p2)   ;;  %1867 = vmatpush3.bf16.msra.mxu0 (!%p140_p2), %v2089_v2  ;;  %v2094_v7 = vld [vmem:[%s2595_s1 + $0x88] sm:$0xff] (!%p140_p2)   ;;  %v2098_v11 = vld [vmem:[%s2595_s1 + $0x90] sm:$0xff] (!%p140_p2)  }
   0x9   : > { %1907 = vmatpush3.bf16.msra.mxu1 (!%p140_p2), %v2090_v3  ;;  %1868 = vmatprep.subr.bf16.mxu0 (!%p140_p2), %v2091_v4  ;;  %v2099_v12 = vld [vmem:[%s2595_s1 + $0x58] sm:$0xff] (!%p140_p2)   ;;  %v2103_v16 = vld [vmem:[%s2595_s1 + $0x60] sm:$0xff] (!%p140_p2)   ;;  %v2107_v20 = vld [vmem:[%s2595_s1 + $0x68] sm:$0xff] (!%p140_p2)  }
   0xa   : > { %1908 = vmatprep.subr.bf16.mxu1 (!%p140_p2), %v2092_v5  ;;  %v2100_v13 = vld [vmem:[%s2595_s1 + $0xd8] sm:$0xff] (!%p140_p2)   ;;  %v2104_v17 = vld [vmem:[%s2595_s1 + $0xe0] sm:$0xff] (!%p140_p2)   ;;  %v2108_v21 = vld [vmem:[%s2595_s1 + $0xe8] sm:$0xff] (!%p140_p2)  }
   0xb   : > { %v2101_v14 = vld [vmem:[%s2595_s1 + $0x18] sm:$0xff] (!%p140_p2)   ;;  %v2105_v18 = vld [vmem:[%s2595_s1 + $0x20] sm:$0xff] (!%p140_p2)   ;;  %v2109_v22 = vld [vmem:[%s2595_s1 + $0x28] sm:$0xff] (!%p140_p2)  }
   0xc   : > { %1869 = vmatpush3.bf16.msra.mxu0 (!%p140_p2), %v2093_v6  ;;  %v2102_v15 = vld [vmem:[%s2595_s1 + $0x98] sm:$0xff] (!%p140_p2)   ;;  %v2106_v19 = vld [vmem:[%s2595_s1 + $0xa0] sm:$0xff] (!%p140_p2)   ;;  %v2110_v23 = vld [vmem:[%s2595_s1 + $0xa8] sm:$0xff] (!%p140_p2)  }
   0xd   : > { %1909 = vmatpush3.bf16.msra.mxu1 %v2094_v7  ;;  %1870 = vmatprep.subr.bf16.mxu0 %v2095_v8  ;;  %s2599_s23 = smov (!%p165_p3, %s1670_s23), 7  ;;  %v2111_v24 = vld [vmem:[%s2595_s1 + $0x70] sm:$0xff]   ;;  %v2115_v28 = vld [vmem:[%s2595_s1 + $0x78] sm:$0xff]   ;;  %v2126_v43 = vld [vmem:[%s2595_s1 + $0x140] sm:$0xff]   ;;  %s2601_s13 = smov (!%p171_p4, %s2241_s13), 1 }
   0xe   : > { %1910 = vmatprep.subr.bf16.mxu1 %v2096_v9  ;;  %v2112_v25 = vld [vmem:[%s2595_s1 + $0xf0] sm:$0xff]   ;;  %s2078_s21 = smul.u32 72, %s2599_s23  ;;  %v2116_v29 = vld [vmem:[%s2595_s1 + $0xf8] sm:$0xff]   ;;  %v2127_v44 = vld [vmem:[%s2595_s1 + $0x1c0] sm:$0xff]   ;;  %s1865_s17 = sshll.u32 %s2601_s13, 6 }
   0xf   : > { %v2113_v26 = vld [vmem:[%s2595_s1 + $0x30] sm:$0xff]   ;;  %v2117_v30 = vld [vmem:[%s2595_s1 + $0x38] sm:$0xff]   ;;  %v2128_v49 = vld [vmem:[%s2595_s1 + $0x100] sm:$0xff]   ;;  %s175_s20 = scalar_lea.vmem %s2597_s3, %s1865_s17 }
  0x10   : > { %1871 = vmatpush3.bf16.msra.mxu0 %v2097_v10  ;;  %v2114_v27 = vld [vmem:[%s2595_s1 + $0xb0] sm:$0xff]   ;;  %v2118_v31 = vld [vmem:[%s2595_s1 + $0xb8] sm:$0xff]   ;;  %s2345_s5 = scalar_lea.vmem %s2594_s0, %s2078_s21  ;;  %v2130_v52 = vld [vmem:[%s2595_s1 + $0x148] sm:$0xff]  }
  0x11   : > { %1911 = vmatpush3.bf16.msra.mxu1 %v2098_v11  ;;  %1872 = vmatprep.subr.bf16.mxu0 %v2099_v12  ;;  %v2119_v32 = vld [vmem:[%s2345_s5 + $0x48] ss:$8 sps:$4 sm:$0xff]   ;;  %v1683_v34 = vld [vmem:[%s2345_s5 + $0x98] sm:$0xf]  ;;  %v177_v36 = vld [vmem:[%s2345_s5] sm:$0xf] }
  0x12   : > { %1912 = vmatprep.subr.bf16.mxu1 %v2100_v13  ;;  %v1682_v33 = vld [vmem:[%s2345_s5 + $0x90] sm:$0xf]  ;;  %1301 = vmatprep.mubr.bf16.mxu0 %v2119_v32  ;;  %v178_v37 = vld [vmem:[%s2345_s5 + $0x8] sm:$0xf]  ;;  %v194_v38 = vld [vmem:[%s2345_s5 + $0x4] sm:$0x1] }
  0x13   : > { %v1758_v35 = vcombine.low %v1682_v33, %v1683_v34  ;;  %v195_v39 = vld [vmem:[%s2345_s5 + $0xc] sm:$0x1]  ;;  %v1755_v40 = vcombine.low %v177_v36, %v178_v37  ;;  %v1730_v41 = vcombine.low %v177_v36, %v194_v38  ;;  %v2129_v55 = vld [vmem:[%s2595_s1 + $0x180] sm:$0xff]   ;;  %v1698_v56 = vld [vmem:[%s2345_s5 + $0x94] sm:$0x1] }
  0x14   : > { %1873 = vmatpush3.bf16.msra.mxu0 %v2101_v14  ;;  %v1731_v42 = vcombine.low %v178_v37, %v195_v39  ;;  %v2132_v57 = vld [vmem:[%s2595_s1 + $0x108] sm:$0xff]   ;;  %v2134_v60 = vld [vmem:[%s2345_s5 + $0x58] ss:$8 sps:$4 sm:$0xff]   ;;  %v1699_v61 = vld [vmem:[%s2345_s5 + $0x9c] sm:$0x1]  ;;  %v2388_v4 = vcombine.low %v1682_v33, %v1698_v56 }
  0x15   : > { %1913 = vmatpush3.bf16.msra.mxu1 %v2102_v15  ;;  %1874 = vmatprep.subr.bf16.mxu0 %v2103_v16  ;;  %v297_v45 = vshll.u32 %v1730_v41, 16  ;;  %v295_v47 = vshrl.u32 %v1730_v41, 16  ;;  %v2131_v59 = vld [vmem:[%s2595_s1 + $0x1c8] sm:$0xff]   ;;  %v1684_v62 = vld [vmem:[%s2345_s5 + $0xa0] sm:$0xf]  ;;  %v2141_v10 = vld [vmem:[%s2595_s1 + $0x150] sm:$0xff]   ;;  %v2395_v11 = vcombine.low %v1683_v34, %v1699_v61 }
  0x16   : > { %1914 = vmatprep.subr.bf16.mxu1 %v2104_v17  ;;  %1366 = vmatprep.mubr.bf16.mxu1 %v1758_v35  ;;  %v304_v46 = vshll.u32 %v1731_v42, 16  ;;  %v302_v48 = vshrl.u32 %v1731_v42, 16  ;;  %v2380_v63 = vld [vmem:[%s2345_s5 + $0xa8] sm:$0xf]  ;;  %v179_v2 = vld [vmem:[%s2345_s5 + $0x10] sm:$0xf] }
  0x17   : > { %v299_v50 = vrot.slane %v297_v45, 1  ;;  %v2133_v0 = vld [vmem:[%s2595_s1 + $0x188] sm:$0xff]   ;;  %v1767_v1 = vcombine.low %v1684_v62, %v2380_v63  ;;  %v180_v3 = vld [vmem:[%s2345_s5 + $0x18] sm:$0xf]  ;;  %v196_v5 = vld [vmem:[%s2345_s5 + $0x14] sm:$0x1] }
  0x18   : > { %1875 = vmatpush3.bf16.msra.mxu0 %v2105_v18  ;;  %v306_v51 = vrot.slane %v304_v46, 1  ;;  %v197_v6 = vld [vmem:[%s2345_s5 + $0x1c] sm:$0x1]  ;;  %v1764_v7 = vcombine.low %v179_v2, %v180_v3  ;;  %v1732_v8 = vcombine.low %v179_v2, %v196_v5  ;;  %v2142_v12 = vld [vmem:[%s2595_s1 + $0x1d0] sm:$0xff]   ;;  %v393_v17 = vshll.u32 %v2388_v4, 16  ;;  %v2162_v5 = vld [vmem:[%s2595_s1 + $0x128] sm:$0xff]  }
  0x19   : > { %1915 = vmatpush3.bf16.msra.mxu1 %v2106_v19  ;;  %1876 = vmatprep.subr.bf16.mxu0 %v2107_v20  ;;  %v300_v53 = vor.u32 %v299_v50, %v295_v47  ;;  %v1733_v9 = vcombine.low %v180_v3, %v197_v6  ;;  %v1700_v18 = vld [vmem:[%s2345_s5 + $0xa4] sm:$0x1]  ;;  %v2143_v19 = vld [vmem:[%s2595_s1 + $0x110] sm:$0xff]   ;;  %v2148_v33 = vld [vmem:[%s2595_s1 + $0x198] sm:$0xff]  }
  0x1a   : > { %1916 = vmatprep.subr.bf16.mxu1 %v2108_v21  ;;  %v307_v54 = vor.u32 %v306_v51, %v302_v48  ;;  %v311_v13 = vshll.u32 %v1732_v8, 16  ;;  %v309_v15 = vshrl.u32 %v1732_v8, 16  ;;  %v2149_v34 = vld [vmem:[%s2345_s5 + $0x68] ss:$8 sps:$4 sm:$0xff]   ;;  %v1687_v36 = vld [vmem:[%s2345_s5 + $0xb8] sm:$0xf] }
  0x1b   : > { %v318_v14 = vshll.u32 %v1733_v9, 16  ;;  %v316_v16 = vshrl.u32 %v1733_v9, 16  ;;  %v1686_v35 = vld [vmem:[%s2345_s5 + $0xb0] sm:$0xf]  ;;  %v395_v37 = vrot.slane %v393_v17, 1  ;;  %v2156_v50 = vld [vmem:[%s2595_s1 + $0x160] sm:$0xff]  }
  0x1c   : > { %1877 = vmatpush3.bf16.msra.mxu0 %v2109_v22  ;;  %v1757_v58 = vcombine.low %v300_v53, %v307_v54  ;;  %v313_v20 = vrot.slane %v311_v13, 1  ;;  %v2144_v22 = vld [vmem:[%s2595_s1 + $0x190] sm:$0xff]   ;;  %v1701_v39 = vld [vmem:[%s2345_s5 + $0xac] sm:$0x1]  ;;  %v181_v41 = vld [vmem:[%s2345_s5 + $0x20] sm:$0xf] }
  0x1d   : > { %1917 = vmatpush3.bf16.msra.mxu1 %v2110_v23  ;;  %1878 = vmatprep.subr.bf16.mxu0 %v2111_v24  ;;  %v320_v21 = vrot.slane %v318_v14, 1  ;;  %v2145_v23 = vld [vmem:[%s2595_s1 + $0x158] sm:$0xff]   ;;  %v400_v24 = vshll.u32 %v2395_v11, 16  ;;  %v1702_v42 = vld [vmem:[%s2345_s5 + $0xb4] sm:$0x1]  ;;  %v2439_v51 = vcombine.low %v2380_v63, %v1701_v39  ;;  %v2160_v63 = vld [vmem:[%s2595_s1 + $0x168] sm:$0xff]  }
  0x1e   : > { %1918 = vmatprep.subr.bf16.mxu1 %v2112_v25  ;;  %v314_v25 = vor.u32 %v313_v20, %v309_v15  ;;  %v199_v45 = vld [vmem:[%s2345_s5 + $0x2c] sm:$0x1]  ;;  %v1688_v13 = vld [vmem:[%s2345_s5 + $0xc0] sm:$0xf]  ;;  %v1689_v15 = vld [vmem:[%s2345_s5 + $0xc8] sm:$0xf] }
  0x1f   : > { %v402_v38 = vrot.slane %v400_v24, 1  ;;  %v2163_v9 = vld [vmem:[%s2595_s1 + $0x1a8] sm:$0xff]   ;;  %v412_v17 = vshrl.u32 %v2439_v51, 16  ;;  %v183_v20 = vld [vmem:[%s2345_s5 + $0x30] sm:$0xf] }
  0x20   : > { %1879 = vmatpush3.bf16.msra.mxu0 %v2113_v26  ;;  %v321_v26 = vor.u32 %v320_v21, %v316_v16  ;;  %v184_v21 = vld [vmem:[%s2345_s5 + $0x38] sm:$0xf] }
  0x21   : > { %1919 = vmatpush3.bf16.msra.mxu1 %v2114_v27  ;;  %1880 = vmatprep.subr.bf16.mxu0 %v2115_v28  ;;  %v2146_v27 = vld [vmem:[%s2595_s1 + $0x1d8] sm:$0xff]   ;;  %v391_v28 = vshrl.u32 %v2388_v4, 16  ;;  %v2161_v4 = vld [vmem:[%s2595_s1 + $0x1e8] sm:$0xff]  }
  0x22   : > { %1920 = vmatprep.subr.bf16.mxu1 %v2116_v29  ;;  %v2147_v29 = vld [vmem:[%s2595_s1 + $0x118] sm:$0xff]   ;;  %v1766_v32 = vcombine.low %v314_v25, %v321_v26  ;;  %v1782_v25 = vcombine.low %v183_v20, %v184_v21 }
  0x24   : > { %1881 = vmatpush3.bf16.msra.mxu0 %v2117_v30  ;;  %v398_v30 = vshrl.u32 %v2395_v11, 16 }
  0x25   : > { %1921 = vmatpush3.bf16.msra.mxu1 %v2118_v31  ;;  %1946 = vmatprep.subr.bf16.mxu0 %v2126_v43  ;;  %v2420_v31 = vcombine.low %v1684_v62, %v1700_v18  ;;  %v182_v43 = vld [vmem:[%s2345_s5 + $0x28] sm:$0xf]  ;;  %v2159_v62 = vld [vmem:[%s2595_s1 + $0x1a0] sm:$0xff]  }
  0x26   : > { %1986 = vmatprep.subr.bf16.mxu1 %v2127_v44  ;;  %v198_v44 = vld [vmem:[%s2345_s5 + $0x24] sm:$0x1]  ;;  %v1735_v48 = vcombine.low %v182_v43, %v199_v45  ;;  %v403_v11 = vor.u32 %v402_v38, %v398_v30  ;;  %v2174_v38 = vld [vmem:[%s2595_s1 + $0x1b0] sm:$0xff]  }
  0x27   : > { %1302 = vmatmul.mubr.bf16.vlgmr.msra.gmra.mrb[0].mxu0 %v1755_v40  ;;  %v1776_v40 = vcombine.low %v1686_v35, %v1687_v36  ;;  %v407_v46 = vshll.u32 %v2420_v31, 16  ;;  %v1734_v47 = vcombine.low %v181_v41, %v198_v44  ;;  %v405_v6 = vshrl.u32 %v2420_v31, 16 }
  0x28   : > { %1947 = vmatpush3.bf16.msra.mxu0 %v2128_v49  ;;  %1367 = vmatmul.mubr.bf16.vlgmr.msra.gmra.mrb[0].mxu1 %v1757_v58  ;;  %v1773_v49 = vcombine.low %v181_v41, %v182_v43  ;;  %v332_v54 = vshll.u32 %v1735_v48, 16  ;;  %v330_v56 = vshrl.u32 %v1735_v48, 16  ;;  %v2158_v58 = vld [vmem:[%s2595_s1 + $0x120] sm:$0xff]   ;;  %v1705_v41 = vld [vmem:[%s2345_s5 + $0xcc] sm:$0x1]  ;;  %v2176_v43 = vld [vmem:[%s2595_s1 + $0x1f8] sm:$0xff]  }
  0x29   : > { %1948 = vmatprep.subr.bf16.mxu0 %v2130_v52  ;;  %1987 = vmatpush3.bf16.msra.mxu1 %v2129_v55  ;;  %v1703_v52 = vld [vmem:[%s2345_s5 + $0xbc] sm:$0x1]  ;;  %v325_v53 = vshll.u32 %v1734_v47, 16  ;;  %v323_v55 = vshrl.u32 %v1734_v47, 16  ;;  %v409_v16 = vrot.slane %v407_v46, 1 }
  0x2a   : > { %1309 = vmatprep.mubr.bf16.mxu0 %v2134_v60  ;;  %1988 = vmatprep.subr.bf16.mxu1 %v2131_v59  ;;  %v2448_v59 = vcombine.low %v1686_v35, %v1702_v42  ;;  %v334_v61 = vrot.slane %v332_v54, 1  ;;  %v2177_v48 = vld [vmem:[%s2595_s1 + $0x138] sm:$0xff]  }
  0x2b   : > { %1374 = vmatprep.mubr.bf16.mxu1 %v1767_v1  ;;  %v327_v60 = vrot.slane %v325_v53, 1  ;;  %v2457_v1 = vcombine.low %v1687_v36, %v1703_v52  ;;  %v410_v44 = vor.u32 %v409_v16, %v405_v6  ;;  %v2179_v54 = vld [vmem:[%s2345_s5 + $0x50] ss:$8 sps:$4 sm:$0xff]  }
  0x2c   : > { %1949 = vmatpush3.bf16.msra.mxu0 %v2132_v57  ;;  %v2157_v57 = vld [vmem:[%s2595_s1 + $0x1e0] sm:$0xff]   ;;  %v335_v3 = vor.u32 %v334_v61, %v330_v56  ;;  %v419_v30 = vshrl.u32 %v2448_v59, 16  ;;  %v1745_v56 = vcombine.low %v1689_v15, %v1705_v41  ;;  %v1722_v41 = vld [vmem:[%s2345_s5 + $0xc] sm:$0x1] }
  0x2d   : > { %1989 = vmatpush3.bf16.msra.mxu1 %v2133_v0  ;;  %1950 = vmatprep.subr.bf16.mxu0 %v2141_v10  ;;  %v414_v0 = vshll.u32 %v2439_v51, 16  ;;  %v328_v2 = vor.u32 %v327_v60, %v323_v55  ;;  %v396_v10 = vor.u32 %v395_v37, %v391_v28  ;;  %v428_v14 = vshll.u32 %v2457_v1, 16  ;;  %v2171_v28 = vld [vmem:[%s2595_s1 + $0x170] sm:$0xff]   ;;  %v2178_v51 = vld [vmem:[%s2595_s1 + $0x1b8] sm:$0xff]   ;;  %v2182_v61 = vld [vmem:[%s2595_s1 + $0x200] sm:$0xff]  }
  0x2e   : > { %1990 = vmatprep.subr.bf16.mxu1 %v2142_v12  ;;  %v2164_v12 = vld [vmem:[%s2345_s5 + $0x78] ss:$8 sps:$4 sm:$0xff]   ;;  %v2173_v37 = vld [vmem:[%s2595_s1 + $0x130] sm:$0xff]   ;;  %v440_v6 = vshrl.u32 %v1745_v56, 16 }
  0x2f   : > { %1310 = vmatmul.mubr.bf16.gmra.mrb[4].mxu0 %v1764_v7  ;;  %v421_v7 = vshll.u32 %v2448_v59, 16  ;;  %v1775_v8 = vcombine.low %v328_v2, %v335_v3  ;;  %v416_v18 = vrot.slane %v414_v0, 1  ;;  %v1760_v26 = vcombine.low %v396_v10, %v403_v11  ;;  %v2513_v59 = vld [vmem:[%s2345_s5 + $0x10] sm:$0xf] }
  0x30   : > { %1951 = vmatpush3.bf16.msra.mxu0 %v2143_v19  ;;  %1375 = vmatmul.mubr.bf16.gmra.mrb[4].mxu1 %v1766_v32  ;;  %v1785_v19 = vcombine.low %v1688_v13, %v1689_v15  ;;  %v430_v52 = vrot.slane %v428_v14, 1  ;;  %v2190_v14 = vld [vmem:[%s2595_s1 + $0x218] sm:$0xff]   ;;  %v1725_v15 = vld [vmem:[%s2345_s5 + $0x24] sm:$0x1] }
  0x31   : > { %1991 = vmatpush3.bf16.msra.mxu1 %v2144_v22  ;;  %1952 = vmatprep.subr.bf16.mxu0 %v2145_v23  ;;  %v200_v22 = vld [vmem:[%s2345_s5 + $0x34] sm:$0x1]  ;;  %v201_v23 = vld [vmem:[%s2345_s5 + $0x3c] sm:$0x1]  ;;  %v423_v31 = vrot.slane %v421_v7, 1  ;;  %v417_v45 = vor.u32 %v416_v18, %v412_v17 }
  0x32   : > { %1992 = vmatprep.subr.bf16.mxu1 %v2146_v27  ;;  %1317 = vmatprep.mubr.bf16.mxu0 %v2149_v34  ;;  %v1736_v24 = vcombine.low %v183_v20, %v200_v22  ;;  %v1737_v27 = vcombine.low %v184_v21, %v201_v23  ;;  %v1704_v34 = vld [vmem:[%s2345_s5 + $0xc4] sm:$0x1]  ;;  %v2185_v7 = vld [vmem:[%s2345_s5 + $0xe8] ss:$8 sps:$4 sm:$0xff]   ;;  %v1726_v18 = vld [vmem:[%s2345_s5 + $0x2c] sm:$0x1] }
  0x33   : > { %1382 = vmatprep.mubr.bf16.mxu1 %v1776_v40  ;;  %v2175_v40 = vld [vmem:[%s2595_s1 + $0x178] sm:$0xff]   ;;  %v1769_v55 = vcombine.low %v410_v44, %v417_v45  ;;  %v424_v0 = vor.u32 %v423_v31, %v419_v30  ;;  %v1710_v17 = vld [vmem:[%s2345_s5 + $0x28] sm:$0xf]  ;;  %v2196_v30 = vld [vmem:[%s2595_s1 + $0x220] sm:$0xff]  }
  0x34   : > { %1953 = vmatpush3.bf16.msra.mxu0 %v2147_v29  ;;  %v2172_v29 = vld [vmem:[%s2595_s1 + $0x1f0] sm:$0xff]   ;;  %v339_v32 = vshll.u32 %v1736_v24, 16  ;;  %v346_v35 = vshll.u32 %v1737_v27, 16  ;;  %v344_v36 = vshrl.u32 %v1737_v27, 16  ;;  %v2192_v27 = vld [vmem:[%s2345_s5 + $0xf8] ss:$8 sps:$4 sm:$0xff]  }
  0x35   : > { %1993 = vmatpush3.bf16.msra.mxu1 %v2148_v33  ;;  %1954 = vmatprep.subr.bf16.mxu0 %v2156_v50  ;;  %v337_v33 = vshrl.u32 %v1736_v24, 16  ;;  %v1744_v50 = vcombine.low %v1688_v13, %v1704_v34  ;;  %v1724_v13 = vld [vmem:[%s2345_s5 + $0x1c] sm:$0x1]  ;;  %v2191_v23 = vld [vmem:[%s2345_s5 + $0x70] ss:$8 sps:$4 sm:$0xff]   ;;  %v2541_v24 = vcombine.low %v1710_v17, %v1726_v18 }
  0x36   : > { %1994 = vmatprep.subr.bf16.mxu1 %v2157_v57  ;;  %v341_v39 = vrot.slane %v339_v32, 1  ;;  %v348_v42 = vrot.slane %v346_v35, 1  ;;  %v2180_v57 = vld [vmem:[%s2345_s5 + $0xd8] ss:$8 sps:$4 sm:$0xff]   ;;  %v1723_v45 = vld [vmem:[%s2345_s5 + $0x14] sm:$0x1] }
  0x37   : > { %1318 = vmatmul.mubr.bf16.gmra.mrb[8].mxu0 %v1773_v49  ;;  %v426_v49 = vshrl.u32 %v2457_v1, 16  ;;  %v435_v60 = vshll.u32 %v1744_v50, 16  ;;  %v433_v3 = vshrl.u32 %v1744_v50, 16  ;;  %v517_v32 = vshll.u32 %v2541_v24, 16  ;;  %v2556_v34 = vld [vmem:[%s2345_s5 + $0x38] sm:$0xf] }
  0x38   : > { %1955 = vmatpush3.bf16.msra.mxu0 %v2158_v58  ;;  %1383 = vmatmul.mubr.bf16.gmra.mrb[8].mxu1 %v1775_v8  ;;  %v342_v46 = vor.u32 %v341_v39, %v337_v33  ;;  %v349_v47 = vor.u32 %v348_v42, %v344_v36  ;;  %v2510_v58 = vld [vmem:[%s2345_s5 + $0x8] sm:$0xf]  ;;  %v1708_v8 = vld [vmem:[%s2345_s5 + $0x18] sm:$0xf]  ;;  %v2559_v35 = vld [vmem:[%s2345_s5 + $0x40] sm:$0xf] }
  0x39   : > { %1995 = vmatpush3.bf16.msra.mxu1 %v2159_v62  ;;  %1956 = vmatprep.subr.bf16.mxu0 %v2160_v63  ;;  %v2183_v62 = vld [vmem:[%s2595_s1 + $0x208] sm:$0xff]   ;;  %v442_v63 = vshll.u32 %v1745_v56, 16  ;;  %v431_v1 = vor.u32 %v430_v52, %v426_v49  ;;  %v1761_v2 = vcombine.low %v2510_v58, %v2513_v59  ;;  %v2535_v16 = vcombine.low %v1708_v8, %v1724_v13  ;;  %v1728_v36 = vld [vmem:[%s2345_s5 + $0x3c] sm:$0x1] }
  0x3a   : > { %1996 = vmatprep.subr.bf16.mxu1 %v2161_v4  ;;  %1325 = vmatprep.mubr.bf16.mxu0 %v2164_v12  ;;  %v1784_v53 = vcombine.low %v342_v46, %v349_v47  ;;  %v2184_v4 = vld [vmem:[%s2345_s5 + $0x60] ss:$8 sps:$4 sm:$0xff]   ;;  %v515_v46 = vshrl.u32 %v2541_v24, 16  ;;  %v1747_v49 = vcombine.low %v2513_v59, %v1723_v45  ;;  %v519_v50 = vrot.slane %v517_v32, 1 }
  0x3b   : > { %1390 = vmatprep.mubr.bf16.mxu1 %v1785_v19  ;;  %v1778_v10 = vcombine.low %v424_v0, %v431_v1  ;;  %v444_v11 = vrot.slane %v442_v63, 1  ;;  %v1709_v12 = vld [vmem:[%s2345_s5 + $0x20] sm:$0xf]  ;;  %v1727_v19 = vld [vmem:[%s2345_s5 + $0x34] sm:$0x1]  ;;  %v2197_v33 = vld [vmem:[%s2595_s1 + $0x228] sm:$0xff]  }
  0x3c   : > { %1957 = vmatpush3.bf16.msra.mxu0 %v2162_v5  ;;  %v437_v5 = vrot.slane %v435_v60, 1  ;;  %v1770_v22 = vcombine.low %v1708_v8, %v1709_v12  ;;  %v2198_v47 = vld [vmem:[%s2345_s5 + $0x80] ss:$8 sps:$4 sm:$0xff]   ;;  %v496_v63 = vshll.u32 %v1747_v49, 16  ;;  %v2204_v0 = vld [vmem:[%s2595_s1 + $0x238] sm:$0xff]  }
  0x3d   : > { %1997 = vmatpush3.bf16.msra.mxu1 %v2163_v9  ;;  %1958 = vmatprep.subr.bf16.mxu0 %v2171_v28  ;;  %v2189_v9 = vld [vmem:[%s2595_s1 + $0x210] sm:$0xff]   ;;  %v445_v21 = vor.u32 %v444_v11, %v440_v6 }
  0x3e   : > { %1998 = vmatprep.subr.bf16.mxu1 %v2172_v29  ;;  %v438_v20 = vor.u32 %v437_v5, %v433_v3  ;;  %v503_v29 = vshll.u32 %v2535_v16, 16  ;;  %v520_v3 = vor.u32 %v519_v50, %v515_v46 }
  0x3f   : > { %1326 = vmatmul.mubr.bf16.gmra.mrb[12].mxu0 %v1782_v25  ;;  %v1711_v25 = vld [vmem:[%s2345_s5 + $0x30] sm:$0xf] }
  0x40   : > { %1431 = vmatprep.mubr.bf16.mxu0 %v1760_v26  ;;  %1959 = vmatpush3.bf16.msra.mxu0 %v2173_v37  ;;  %v2544_v26 = vcombine.low %v1709_v12, %v1725_v15  ;;  %v1751_v28 = vcombine.low %v1711_v25, %v1727_v19  ;;  %v1787_v31 = vcombine.low %v438_v20, %v445_v21  ;;  %v1729_v37 = vld [vmem:[%s2345_s5 + $0x44] sm:$0x1]  ;;  %v505_v52 = vrot.slane %v503_v29, 1 }
  0x41   : > { %1999 = vmatpush3.bf16.msra.mxu1 %v2174_v38  ;;  %1960 = vmatprep.subr.bf16.mxu0 %v2175_v40  ;;  %v501_v40 = vshrl.u32 %v2535_v16, 16  ;;  %v1779_v42 = vcombine.low %v1710_v17, %v1711_v25  ;;  %v1753_v44 = vcombine.low %v2559_v35, %v1729_v37 }
  0x42   : > { %2000 = vmatprep.subr.bf16.mxu1 %v2176_v43  ;;  %1391 = vmatmul.mubr.bf16.gmra.mrb[12].mxu1 %v1784_v53  ;;  %v510_v38 = vshll.u32 %v2544_v26, 16  ;;  %v524_v39 = vshll.u32 %v1751_v28, 16  ;;  %v1752_v43 = vcombine.low %v2556_v34, %v1728_v36  ;;  %v508_v53 = vshrl.u32 %v2544_v26, 16  ;;  %v1754_v26 = vld [vmem:[%s2596_s2] ss:$0 sm:$0xff] }
  0x43   : > { %1496 = vmatprep.mubr.bf16.mxu1 %v2179_v54  ;;  %v538_v59 = vshll.u32 %v1753_v44, 16  ;;  %v506_v5 = vor.u32 %v505_v52, %v501_v40  ;;  %v536_v12 = vshrl.u32 %v1753_v44, 16 }
  0x44   : > { %1961 = vmatpush3.bf16.msra.mxu0 %v2177_v48  ;;  %v1746_v48 = vcombine.low %v2510_v58, %v1722_v41  ;;  %v512_v54 = vrot.slane %v510_v38, 1  ;;  %v526_v56 = vrot.slane %v524_v39, 1  ;;  %v531_v58 = vshll.u32 %v1752_v43, 16 }
  0x45   : > { %2001 = vmatpush3.bf16.msra.mxu1 %v2178_v51  ;;  %2038 = vmatprep.subr.bf16.mxu0 %v2182_v61  ;;  %v522_v51 = vshrl.u32 %v1751_v28, 16  ;;  %v540_v13 = vrot.slane %v538_v59, 1 }
  0x46   : > { %2062 = vmatprep.subr.bf16.mxu1 %v2182_v61  ;;  %v487_v60 = vshrl.u32 %v1746_v48, 16  ;;  %v513_v6 = vor.u32 %v512_v54, %v508_v53  ;;  %v533_v11 = vrot.slane %v531_v58, 1 }
  0x47   : > { %1432 = vmatmul.mubr.bf16.vlgmr.msra.gmra.mrb[16].mxu0 %v2180_v57  ;;  %v2203_v57 = vld [vmem:[%s2595_s1 + $0x230] sm:$0xff]   ;;  %v541_v18 = vor.u32 %v540_v13, %v536_v12 }
  0x48   : > { %1439 = vmatprep.mubr.bf16.mxu0 %v1769_v55  ;;  %2039 = vmatpush3.bf16.msra.mxu0 %v2182_v61  ;;  %v2199_v55 = vld [vmem:[%s2345_s5 + $0x108] ss:$8 sps:$4 sm:$0xff]   ;;  %v1772_v16 = vcombine.low %v506_v5, %v513_v6 }
  0x49   : > { %2040 = vmatprep.subr.bf16.mxu0 %v2183_v62 }
  0x4a   : > { %1497 = vmatmul.mubr.bf16.vlgmr.msra.gmra.mrb[16].mxu1 %v1761_v2  ;;  %v498_v2 = vrot.slane %v496_v63, 1 }
  0x4b   : > { %2070 = vmatpush3.bf16.msra.mxu1 %v2182_v61  ;;  %1504 = vmatprep.mubr.bf16.mxu1 %v2184_v4  ;;  %v489_v61 = vshll.u32 %v1746_v48, 16  ;;  %v527_v4 = vor.u32 %v526_v56, %v522_v51 }
  0x4c   : > { %2041 = vmatpush3.bf16.msra.mxu0 %v2183_v62  ;;  %2063 = vmatprep.subr.bf16.mxu1 %v2183_v62 }
  0x4d   : > { %2042 = vmatprep.subr.bf16.mxu0 %v2189_v9  ;;  %v491_v1 = vrot.slane %v489_v61, 1  ;;  %v1781_v15 = vcombine.low %v520_v3, %v527_v4 }
  0x4f   : > { %1440 = vmatmul.mubr.bf16.gmra.mrb[20].mxu0 %v2185_v7  ;;  %2071 = vmatpush3.bf16.msra.mxu1 %v2183_v62  ;;  %v494_v62 = vshrl.u32 %v1747_v49, 16  ;;  %v1788_v7 = vcombine.low %v2556_v34, %v2559_v35  ;;  %v492_v8 = vor.u32 %v491_v1, %v487_v60 }
  0x50   : > { %1447 = vmatprep.mubr.bf16.mxu0 %v1778_v10  ;;  %2043 = vmatpush3.bf16.msra.mxu0 %v2189_v9  ;;  %v529_v10 = vshrl.u32 %v1752_v43, 16 }
  0x51   : > { %2044 = vmatprep.subr.bf16.mxu0 %v2190_v14  ;;  %2064 = vmatprep.subr.bf16.mxu1 %v2189_v9 }
  0x52   : > { %1505 = vmatmul.mubr.bf16.gmra.mrb[20].mxu1 %v1770_v22  ;;  %v534_v17 = vor.u32 %v533_v11, %v529_v10 }
  0x53   : > { %2072 = vmatpush3.bf16.msra.mxu1 %v2189_v9  ;;  %1512 = vmatprep.mubr.bf16.mxu1 %v2191_v23  ;;  %v499_v9 = vor.u32 %v498_v2, %v494_v62 }
  0x54   : > { %2045 = vmatpush3.bf16.msra.mxu0 %v2190_v14  ;;  %2065 = vmatprep.subr.bf16.mxu1 %v2190_v14  ;;  %v1790_v19 = vcombine.low %v534_v17, %v541_v18 }
  0x55   : > { %2046 = vmatprep.subr.bf16.mxu0 %v2196_v30 }
  0x57   : > { %1448 = vmatmul.mubr.bf16.gmra.mrb[24].mxu0 %v2192_v27  ;;  %2073 = vmatpush3.bf16.msra.mxu1 %v2190_v14  ;;  %v1763_v14 = vcombine.low %v492_v8, %v499_v9 }
  0x58   : > { %1455 = vmatprep.mubr.bf16.mxu0 %v1787_v31  ;;  %2047 = vmatpush3.bf16.msra.mxu0 %v2196_v30 }
  0x59   : > { %2048 = vmatprep.subr.bf16.mxu0 %v2197_v33  ;;  %2066 = vmatprep.subr.bf16.mxu1 %v2196_v30 }
  0x5a   : > { %1513 = vmatmul.mubr.bf16.gmra.mrb[24].mxu1 %v1779_v42 }
  0x5b   : > { %2074 = vmatpush3.bf16.msra.mxu1 %v2196_v30  ;;  %1520 = vmatprep.mubr.bf16.mxu1 %v2198_v47 }
  0x5c   : > { %2049 = vmatpush3.bf16.msra.mxu0 %v2197_v33  ;;  %2067 = vmatprep.subr.bf16.mxu1 %v2197_v33 }
  0x5d   : > { %2050 = vmatprep.subr.bf16.mxu0 %v2203_v57 }
  0x5f   : > { %1456 = vmatmul.mubr.bf16.gmra.mrb[28].mxu0 %v2199_v55  ;;  %2075 = vmatpush3.bf16.msra.mxu1 %v2197_v33 }
  0x60   : > { %2051 = vmatpush3.bf16.msra.mxu0 %v2203_v57  ;;  %2068 = vmatprep.subr.bf16.mxu1 %v2203_v57 }
  0x61   : > { %2052 = vmatprep.subr.bf16.mxu0 %v2204_v0  ;;  %2054 = vmatprep.mubr.bf16.mxu0 %v1763_v14 }
  0x62   : > { %1521 = vmatmul.mubr.bf16.gmra.mrb[28].mxu1 %v1788_v7 }
  0x63   : > { %2076 = vmatpush3.bf16.msra.mxu1 %v2203_v57  ;;  %2058 = vmatprep.mubr.bf16.mxu1 %v1781_v15 }
  0x64   : > { %2053 = vmatpush3.bf16.msra.mxu0 %v2204_v0  ;;  %2069 = vmatprep.subr.bf16.mxu1 %v2204_v0 }
  0x67   : > { %2055 = vmatmul.mubr.bf16.vlgmr.msra.gmra.mrb[32].mxu0 %v1772_v16  ;;  %2077 = vmatpush3.bf16.msra.mxu1 %v2204_v0 }
  0x6a   : > { %2059 = vmatmul.mubr.bf16.vlgmr.msra.gmra.mrb[32].mxu1 %v1790_v19 }
  0xfa   : > { %v1882_v20 = vpop.f32.mrb[0].mxu0 }
  0xfb   : > { %v1883_v21 = vpop.f32.mrb[1].mxu0  ;;  %v1922_v27 = vpop.f32.mrb[0].mxu1 }
  0xfc   : > { %v1884_v22 = vadd.f32 %v1883_v21, %v1882_v20  ;;  %v1885_v23 = vpop.f32.mrb[2].mxu0  ;;  %v1923_v29 = vpop.f32.mrb[1].mxu1 }
  0xfd   : > { %v1886_v24 = vpop.f32.mrb[3].mxu0  ;;  %v1924_v30 = vadd.f32 %v1923_v29, %v1922_v27  ;;  %v1925_v31 = vpop.f32.mrb[2].mxu1 }
  0xfe   : > { %v1887_v25 = vadd.f32 %v1886_v24, %v1885_v23  ;;  %v1304_v28 = vadd.f32 %v1884_v22, %v1754_v26  ;;  %v1926_v33 = vpop.f32.mrb[3].mxu1 }
  0xff   : > { %v1927_v35 = vadd.f32 %v1926_v33, %v1925_v31 }
 0x100   : > { %v1307_v32 = vadd.f32 %v1887_v25, %v1754_v26  ;;  %v1369_v34 = vadd.f32 %v1924_v30, %v1304_v28 }
 0x102   : > { %v1888_v36 = vpop.f32.mrb[4].mxu0  ;;  %v1372_v38 = vadd.f32 %v1927_v35, %v1307_v32 }
 0x103   : > { %v1889_v37 = vpop.f32.mrb[5].mxu0  ;;  %v1928_v43 = vpop.f32.mrb[4].mxu1 }
 0x104   : > { %v1890_v39 = vadd.f32 %v1889_v37, %v1888_v36  ;;  %v1891_v40 = vpop.f32.mrb[6].mxu0  ;;  %v1929_v45 = vpop.f32.mrb[5].mxu1 }
 0x105   : > { %v1892_v41 = vpop.f32.mrb[7].mxu0  ;;  %v1930_v46 = vadd.f32 %v1929_v45, %v1928_v43  ;;  %v1931_v47 = vpop.f32.mrb[6].mxu1 }
 0x106   : > { %v1893_v42 = vadd.f32 %v1892_v41, %v1891_v40  ;;  %v1312_v44 = vadd.f32 %v1890_v39, %v1754_v26  ;;  %v1932_v49 = vpop.f32.mrb[7].mxu1 }
 0x107   : > { %v1933_v51 = vadd.f32 %v1932_v49, %v1931_v47 }
 0x108   : > { %v1315_v48 = vadd.f32 %v1893_v42, %v1754_v26  ;;  %v1377_v50 = vadd.f32 %v1930_v46, %v1312_v44 }
 0x10a   : > { %v1894_v52 = vpop.f32.mrb[8].mxu0  ;;  %v1380_v54 = vadd.f32 %v1933_v51, %v1315_v48 }
 0x10b   : > { %v1895_v53 = vpop.f32.mrb[9].mxu0  ;;  %v1934_v61 = vpop.f32.mrb[8].mxu1 }
 0x10c   : > { %v1896_v55 = vadd.f32 %v1895_v53, %v1894_v52  ;;  %v1897_v56 = vpop.f32.mrb[10].mxu0  ;;  %v1935_v63 = vpop.f32.mrb[9].mxu1 }
 0x10d   : > { %v1898_v57 = vpop.f32.mrb[11].mxu0  ;;  %v1936_v58 = vadd.f32 %v1935_v63, %v1934_v61  ;;  %v1937_v59 = vpop.f32.mrb[10].mxu1 }
 0x10e   : > { %v1899_v60 = vadd.f32 %v1898_v57, %v1897_v56  ;;  %v1320_v62 = vadd.f32 %v1896_v55, %v1754_v26  ;;  %v1938_v1 = vpop.f32.mrb[11].mxu1 }
 0x10f   : > { %v1939_v3 = vadd.f32 %v1938_v1, %v1937_v59 }
 0x110   : > { %v1323_v0 = vadd.f32 %v1899_v60, %v1754_v26  ;;  %v1385_v2 = vadd.f32 %v1936_v58, %v1320_v62 }
 0x112   : > { %v1900_v4 = vpop.f32.mrb[12].mxu0  ;;  %v1388_v6 = vadd.f32 %v1939_v3, %v1323_v0 }
 0x113   : > { %v1901_v5 = vpop.f32.mrb[13].mxu0 }
 0x114   : > { %v1902_v7 = vadd.f32 %v1901_v5, %v1900_v4  ;;  %v1903_v8 = vpop.f32.mrb[14].mxu0 }
 0x115   : > { %v1904_v9 = vpop.f32.mrb[15].mxu0  ;;  %v1940_v11 = vpop.f32.mrb[12].mxu1 }
 0x116   : > { %v1905_v10 = vadd.f32 %v1904_v9, %v1903_v8  ;;  %v1328_v12 = vadd.f32 %v1902_v7, %v1754_v26  ;;  %v1941_v13 = vpop.f32.mrb[13].mxu1 }
 0x117   : > { %v1942_v15 = vadd.f32 %v1941_v13, %v1940_v11  ;;  %v1943_v16 = vpop.f32.mrb[14].mxu1 }
 0x118   : > { %v1331_v17 = vadd.f32 %v1905_v10, %v1754_v26  ;;  %v1944_v19 = vpop.f32.mrb[15].mxu1 }
 0x119   : > { %v1393_v22 = vadd.f32 %v1942_v15, %v1328_v12  ;;  %v1945_v23 = vadd.f32 %v1944_v19, %v1943_v16 }
 0x11a   : > { %v1962_v14 = vpop.f32.mrb[16].mxu0 }
 0x11b   : > { %v1963_v18 = vpop.f32.mrb[17].mxu0  ;;  %v1396_v28 = vadd.f32 %v1945_v23, %v1331_v17 }
 0x11c   : > { %v1964_v20 = vadd.f32 %v1963_v18, %v1962_v14  ;;  %v1965_v21 = vpop.f32.mrb[18].mxu0 }
 0x11d   : > { %v1966_v24 = vpop.f32.mrb[19].mxu0  ;;  %v2002_v30 = vpop.f32.mrb[16].mxu1 }
 0x11e   : > { %v1434_v25 = vadd.f32 %v1964_v20, %v1369_v34  ;;  %v1967_v27 = vadd.f32 %v1966_v24, %v1965_v21  ;;  %v2003_v31 = vpop.f32.mrb[17].mxu1 }
 0x11f   : > { %v2004_v32 = vadd.f32 %v2003_v31, %v2002_v30  ;;  %v2005_v33 = vpop.f32.mrb[18].mxu1 }
 0x120   : > { %v1437_v29 = vadd.f32 %v1967_v27, %v1372_v38  ;;  %v2006_v36 = vpop.f32.mrb[19].mxu1 }
 0x121   : > { %v2007_v39 = vadd.f32 %v2006_v36, %v2005_v33  ;;  %v1499_v41 = vadd.f32 %v2004_v32, %v1434_v25 }
 0x122   : > { %v1968_v35 = vpop.f32.mrb[20].mxu0 }
 0x123   : > { %v1969_v37 = vpop.f32.mrb[21].mxu0  ;;  %v1502_v45 = vadd.f32 %v2007_v39, %v1437_v29 }
 0x124   : > { %v1970_v26 = vadd.f32 %v1969_v37, %v1968_v35  ;;  %v1971_v40 = vpop.f32.mrb[22].mxu0 }
 0x125   : > { %v1972_v42 = vpop.f32.mrb[23].mxu0  ;;  %v2008_v46 = vpop.f32.mrb[20].mxu1 }
 0x126   : > { %v1442_v43 = vadd.f32 %v1970_v26, %v1377_v50  ;;  %v1973_v44 = vadd.f32 %v1972_v42, %v1971_v40  ;;  %v2009_v47 = vpop.f32.mrb[21].mxu1 }
 0x127   : > { %v2010_v48 = vadd.f32 %v2009_v47, %v2008_v46  ;;  %v2011_v38 = vpop.f32.mrb[22].mxu1 }
 0x128   : > { %v1445_v34 = vadd.f32 %v1973_v44, %v1380_v54  ;;  %v2012_v51 = vpop.f32.mrb[23].mxu1 }
 0x129   : > { %v2013_v53 = vadd.f32 %v2012_v51, %v2011_v38  ;;  %v1507_v57 = vadd.f32 %v2010_v48, %v1442_v43 }
 0x12a   : > { %v1974_v49 = vpop.f32.mrb[24].mxu0 }
 0x12b   : > { %v1975_v52 = vpop.f32.mrb[25].mxu0  ;;  %v1510_v63 = vadd.f32 %v2013_v53, %v1445_v34 }
 0x12c   : > { %v1976_v55 = vadd.f32 %v1975_v52, %v1974_v49  ;;  %v1977_v56 = vpop.f32.mrb[26].mxu0 }
 0x12d   : > { %v1978_v60 = vpop.f32.mrb[27].mxu0  ;;  %v2014_v50 = vpop.f32.mrb[24].mxu1 }
 0x12e   : > { %v1450_v61 = vadd.f32 %v1976_v55, %v1385_v2  ;;  %v1979_v62 = vadd.f32 %v1978_v60, %v1977_v56  ;;  %v2015_v59 = vpop.f32.mrb[25].mxu1 }
 0x12f   : > { %v2016_v54 = vadd.f32 %v2015_v59, %v2014_v50  ;;  %v2017_v0 = vpop.f32.mrb[26].mxu1 }
 0x130   : > { %v1453_v58 = vadd.f32 %v1979_v62, %v1388_v6  ;;  %v2018_v3 = vpop.f32.mrb[27].mxu1 }
 0x131   : > { %v2019_v5 = vadd.f32 %v2018_v3, %v2017_v0  ;;  %v1515_v9 = vadd.f32 %v2016_v54, %v1450_v61 }
 0x132   : > { %v1980_v1 = vpop.f32.mrb[28].mxu0 }
 0x133   : > { %v1981_v4 = vpop.f32.mrb[29].mxu0  ;;  %v1518_v2 = vadd.f32 %v2019_v5, %v1453_v58 }
 0x134   : > { %v1982_v7 = vadd.f32 %v1981_v4, %v1980_v1  ;;  %v1983_v8 = vpop.f32.mrb[30].mxu0 }
 0x135   : > { %v1984_v10 = vpop.f32.mrb[31].mxu0  ;;  %v2020_v13 = vpop.f32.mrb[28].mxu1 }
 0x136   : > { %v1458_v11 = vadd.f32 %v1982_v7, %v1393_v22  ;;  %v1985_v12 = vadd.f32 %v1984_v10, %v1983_v8  ;;  %v2021_v15 = vpop.f32.mrb[29].mxu1 }
 0x137   : > { %v2022_v6 = vadd.f32 %v2021_v15, %v2020_v13  ;;  %v2023_v16 = vpop.f32.mrb[30].mxu1 }
 0x138   : > { %v1461_v14 = vadd.f32 %v1985_v12, %v1396_v28  ;;  %v2024_v17 = vpop.f32.mrb[31].mxu1 }
 0x139   : > { %v2025_v19 = vadd.f32 %v2024_v17, %v2023_v16  ;;  %v1523_v21 = vadd.f32 %v2022_v6, %v1458_v11 }
 0x13a   : > { %v2056_v18 = vpop.f32.mrb[32].mxu0 }
 0x13b   : > { %v1572_v20 = vadd.f32 %v2056_v18, %v1507_v57  ;;  %v1563_v23 = vpop.f32.mrb[33].mxu0  ;;  %v1526_v29 = vadd.f32 %v2025_v19, %v1461_v14 }
 0x13c   : > { %v1564_v22 = vadd.f32 %v1563_v23, %v1499_v41  ;;  %v2057_v24 = vpop.f32.mrb[34].mxu0 }
 0x13d   : > { %v1596_v25 = vmax.f32 %v1572_v20, 0.0  ;;  %v1575_v27 = vadd.f32 %v2057_v24, %v1510_v63  ;;  %v1566_v28 = vpop.f32.mrb[35].mxu0  ;;  %v2060_v32 = vpop.f32.mrb[32].mxu1 }
 0x13e   : > { %v1594_v30 = vmax.f32 %v1564_v22, 0.0  ;;  %v1567_v31 = vadd.f32 %v1566_v28, %v1502_v45  ;;  %v1588_v35 = vadd.f32 %v2060_v32, %v1523_v21  ;;  %v1579_v36 = vpop.f32.mrb[33].mxu1 }
 0x13f   : > { %1604 = vst [vmem:[%s175_s20 + $0x10] sm:$0xff] %v1596_v25  ;;  %v1597_v33 = vmax.f32 %v1575_v27, 0.0  ;;  %v1580_v39 = vadd.f32 %v1579_v36, %v1515_v9  ;;  %v2061_v26 = vpop.f32.mrb[34].mxu1 }
 0x140   : > { %1602 = vst [vmem:[%s175_s20] sm:$0xff] %v1594_v30  ;;  %v1595_v37 = vmax.f32 %v1567_v31, 0.0  ;;  %v1600_v40 = vmax.f32 %v1588_v35, 0.0  ;;  %v1591_v42 = vadd.f32 %v2061_v26, %v1526_v29  ;;  %v1582_v41 = vpop.f32.mrb[35].mxu1 }
 0x141   : > { %1605 = vst [vmem:[%s175_s20 + $0x18] sm:$0xff] %v1597_v33  ;;  %v1598_v43 = vmax.f32 %v1580_v39, 0.0  ;;  %v1583_v44 = vadd.f32 %v1582_v41, %v1518_v2 }
 0x142   : > { %1603 = vst [vmem:[%s175_s20 + $0x8] sm:$0xff] %v1595_v37  ;;  %1608 = vst [vmem:[%s175_s20 + $0x30] sm:$0xff] %v1600_v40  ;;  %v1601_v46 = vmax.f32 %v1591_v42, 0.0 }
 0x143   : > { %1606 = vst [vmem:[%s175_s20 + $0x20] sm:$0xff] %v1598_v43  ;;  %v1599_v45 = vmax.f32 %v1583_v44, 0.0 }
 0x144   : > { %1609 = vst [vmem:[%s175_s20 + $0x38] sm:$0xff] %v1601_v46 }
 0x145   : > { %1607 = vst [vmem:[%s175_s20 + $0x28] sm:$0xff] %v1599_v45 }
 0x146 PF: > { %s13_s12 = sadd.s32 1, %s2213_s12  }
 0x147   : > { %p10_p5 = scmp.ge.s32.totalorder %s13_s12, 4  }
 0x149   :  { %12 = sbr.rel (!%p10_p5) target bundleno = 1 (0x1), region = 67 }

// kernel: inception_d_forward.9
= control target key start
LH: loop header
LB: loop body
LE: loop exit
PB: predicated region body
PF: predicated region fallthrough
CT: control target
= control target key end

     0   :  { %s3580_s12 = smov 0   ;;  %s4148_s0 = inlined_call_operand.vmem [shape: bf16[2,22,16,128], index: 0, kind: input, shape index: {}]   ;;  %s4149_s1 = inlined_call_operand.vmem [shape: bf16[896,128], index: 1, kind: input, shape index: {}]   ;;  %s4150_s2 = inlined_call_operand.vmem [shape: f32[1,128], index: 2, kind: input, shape index: {}]   ;;  %s4151_s3 = inlined_call_operand.vmem [shape: bf16[2,256,128], index: 3, kind: output, shape index: {}]  }
   0x1 LB: > { %s2420_s13 = sadd.s32 4294967295, %s3558_s12   ;;  %p2424_p0 = scmp.ge.s32.totalorder %s3558_s12, 1  ;;  %s3558_s12 = sphi %s3580_s12, %s13_s12  }
   0x2   : > { %p137_p1 = scmp.lt.s32.totalorder %s3558_s12, 3 }
   0x4   : > { %p138_p2 = pnand %p2424_p0, %p137_p1 }
   0x5   : > { %v3384_v0 = vld [vmem:[%s4149_s1 + $0x40] sm:$0xff] (!%p138_p2)   ;;  %p161_p3 = scmp.lt.s32.totalorder (!%p138_p2), %s2420_s13, 1  ;;  %v3386_v2 = vld [vmem:[%s4149_s1 + $0x48] sm:$0xff] (!%p138_p2)   ;;  %v3388_v4 = vld [vmem:[%s4149_s1 + $0x50] sm:$0xff] (!%p138_p2)  }
   0x6   : > { %141 = sbr.rel (%p138_p2) target bundleno = 480 (0x1e0), region = 32  ;;  %v3385_v1 = vld [vmem:[%s4149_s1] sm:$0xff] (!%p138_p2)   ;;  %2951 = vmatprep.subr.bf16.mxu0 (!%p138_p2), %v3384_v0  ;;  %3359 = vmatprep.subr.bf16.mxu1 (!%p138_p2), %v3384_v0  ;;  %v3387_v3 = vld [vmem:[%s4149_s1 + $0x8] sm:$0xff] (!%p138_p2)   ;;  %v3389_v5 = vld [vmem:[%s4149_s1 + $0x10] sm:$0xff] (!%p138_p2)  }
   0x7   : > { %2952 = vmatpush3.bf16.msra.mxu0 (!%p138_p2), %v3385_v1  ;;  %3367 = vmatpush3.bf16.msra.mxu1 (!%p138_p2), %v3385_v1  ;;  %v3390_v6 = vld [vmem:[%s4149_s1 + $0x58] sm:$0xff] (!%p138_p2)   ;;  %v3392_v8 = vld [vmem:[%s4149_s1 + $0x60] sm:$0xff] (!%p138_p2)   ;;  %v3394_v10 = vld [vmem:[%s4149_s1 + $0x68] sm:$0xff] (!%p138_p2)  }
   0x8   : > { %2953 = vmatprep.subr.bf16.mxu0 (!%p138_p2), %v3386_v2  ;;  %3360 = vmatprep.subr.bf16.mxu1 (!%p138_p2), %v3386_v2  ;;  %v3391_v7 = vld [vmem:[%s4149_s1 + $0x18] sm:$0xff] (!%p138_p2)   ;;  %v3393_v9 = vld [vmem:[%s4149_s1 + $0x20] sm:$0xff] (!%p138_p2)   ;;  %v3395_v13 = vld [vmem:[%s4149_s1 + $0x28] sm:$0xff] (!%p138_p2)  }
   0x9   : > { %v3396_v14 = vld [vmem:[%s4149_s1 + $0x70] sm:$0xff] (!%p138_p2)   ;;  %v3398_v16 = vld [vmem:[%s4149_s1 + $0x78] sm:$0xff] (!%p138_p2)   ;;  %v3404_v18 = vld [vmem:[%s4149_s1 + $0xc0] sm:$0xff] (!%p138_p2)  }
   0xa   : > { %v3397_v15 = vld [vmem:[%s4149_s1 + $0x30] sm:$0xff] (!%p138_p2)   ;;  %v3399_v17 = vld [vmem:[%s4149_s1 + $0x38] sm:$0xff] (!%p138_p2)   ;;  %v3405_v21 = vld [vmem:[%s4149_s1 + $0x140] sm:$0xff] (!%p138_p2)  }
   0xb   : > { %2954 = vmatpush3.bf16.msra.mxu0 (!%p138_p2), %v3387_v3  ;;  %3368 = vmatpush3.bf16.msra.mxu1 (!%p138_p2), %v3387_v3  ;;  %v3406_v22 = vld [vmem:[%s4149_s1 + $0x80] sm:$0xff] (!%p138_p2)   ;;  %v3408_v24 = vld [vmem:[%s4149_s1 + $0xc8] sm:$0xff] (!%p138_p2)   ;;  %v3414_v32 = vld [vmem:[%s4149_s1 + $0xd0] sm:$0xff] (!%p138_p2)  }
   0xc   : > { %2955 = vmatprep.subr.bf16.mxu0 (!%p138_p2), %v3388_v4  ;;  %3361 = vmatprep.subr.bf16.mxu1 (!%p138_p2), %v3388_v4  ;;  %v3407_v23 = vld [vmem:[%s4149_s1 + $0x100] sm:$0xff] (!%p138_p2)   ;;  %v3417_v27 = vld [vmem:[%s4149_s1 + $0x148] sm:$0xff] (!%p138_p2)   ;;  %v3415_v33 = vld [vmem:[%s4149_s1 + $0x90] sm:$0xff] (!%p138_p2)  }
   0xd   : > { %s4153_s13 = smov (!%p161_p3, %s2420_s13), 1  ;;  %v3409_v28 = vld [vmem:[%s4149_s1 + $0x88] sm:$0xff]   ;;  %v3416_v34 = vld [vmem:[%s4149_s1 + $0xd8] sm:$0xff]   ;;  %v3424_v40 = vld [vmem:[%s4149_s1 + $0xe0] sm:$0xff]  }
   0xe   : > { %s3375_s28 = smul.u32 176, %s4153_s13  ;;  %v3419_v29 = vld [vmem:[%s4149_s1 + $0x108] sm:$0xff]   ;;  %v3418_v37 = vld [vmem:[%s4149_s1 + $0x98] sm:$0xff]   ;;  %v3425_v41 = vld [vmem:[%s4149_s1 + $0xa0] sm:$0xff]   ;;  %s2823_s7 = sshll.u32 %s4153_s13, 7 }
   0xf   : > { %2956 = vmatpush3.bf16.msra.mxu0 %v3389_v5  ;;  %3369 = vmatpush3.bf16.msra.mxu1 %v3389_v5  ;;  %v3426_v42 = vld [vmem:[%s4149_s1 + $0xe8] sm:$0xff]   ;;  %v3433_v45 = vld [vmem:[%s4149_s1 + $0x150] sm:$0xff]   ;;  %v3436_v52 = vld [vmem:[%s4149_s1 + $0xf8] sm:$0xff]   ;;  %s4090_s11 = scalar_lea.vmem %s4151_s3, %s2823_s7 }
  0x10   : > { %2957 = vmatprep.subr.bf16.mxu0 %v3390_v6  ;;  %3362 = vmatprep.subr.bf16.mxu1 %v3390_v6  ;;  %s3621_s8 = scalar_lea.vmem %s4148_s0, %s3375_s28  ;;  %v3427_v46 = vld [vmem:[%s4149_s1 + $0xa8] sm:$0xff]   ;;  %v3435_v47 = vld [vmem:[%s4149_s1 + $0x110] sm:$0xff]   ;;  %v3437_v55 = vld [vmem:[%s4149_s1 + $0xb8] sm:$0xff]  }
  0x11   : > { %v3400_v11 = vld [vmem:[%s3621_s8 + $0x8] sm:$0xff]   ;;  %v3402_v19 = vld [vmem:[%s3621_s8] sm:$0xff]   ;;  %v3410_v25 = vld [vmem:[%s3621_s8 + $0x10] sm:$0xff]  }
  0x12   : > { %v3401_v12 = vld [vmem:[%s3621_s8 + $0x68] sm:$0xff]   ;;  %1561 = vmatprep.mubr.bf16.mxu0 %v3400_v11  ;;  %v3403_v20 = vld [vmem:[%s3621_s8 + $0x60] sm:$0xff]   ;;  %v3411_v26 = vld [vmem:[%s3621_s8 + $0x70] sm:$0xff]  }
  0x13   : > { %2958 = vmatpush3.bf16.msra.mxu0 %v3391_v7  ;;  %3370 = vmatpush3.bf16.msra.mxu1 %v3391_v7  ;;  %v3412_v30 = vld [vmem:[%s3621_s8 + $0x8] sm:$0xff]   ;;  %v3420_v35 = vld [vmem:[%s3621_s8 + $0x18] sm:$0xff]   ;;  %v3422_v38 = vld [vmem:[%s3621_s8 + $0x10] sm:$0xff]  }
  0x14   : > { %2959 = vmatprep.subr.bf16.mxu0 %v3392_v8  ;;  %3363 = vmatprep.subr.bf16.mxu1 %v3392_v8  ;;  %v3413_v31 = vld [vmem:[%s3621_s8 + $0x68] sm:$0xff]   ;;  %v3421_v36 = vld [vmem:[%s3621_s8 + $0x78] sm:$0xff]   ;;  %v3423_v39 = vld [vmem:[%s3621_s8 + $0x70] sm:$0xff]  }
  0x15   : > { %1657 = vmatprep.mubr.bf16.mxu1 %v3401_v12  ;;  %v3428_v43 = vld [vmem:[%s3621_s8 + $0x20] sm:$0xff]   ;;  %v3430_v48 = vld [vmem:[%s3621_s8 + $0x18] sm:$0xff]   ;;  %v3432_v50 = vld [vmem:[%s4149_s1 + $0xf0] sm:$0xff]  }
  0x16   : > { %v3429_v44 = vld [vmem:[%s3621_s8 + $0x80] sm:$0xff]   ;;  %v3431_v49 = vld [vmem:[%s3621_s8 + $0x78] sm:$0xff]   ;;  %v3434_v51 = vld [vmem:[%s4149_s1 + $0xb0] sm:$0xff]  }
  0x17   : > { %2960 = vmatpush3.bf16.msra.mxu0 %v3393_v9  ;;  %3371 = vmatpush3.bf16.msra.mxu1 %v3393_v9  ;;  %v3438_v53 = vld [vmem:[%s3621_s8 + $0x28] sm:$0xff]   ;;  %v3439_v54 = vld [vmem:[%s3621_s8 + $0x18] sm:$0xff]   ;;  %v3443_v57 = vld [vmem:[%s4149_s1 + $0x180] sm:$0xff]  }
  0x18   : > { %2961 = vmatprep.subr.bf16.mxu0 %v3394_v10  ;;  %3364 = vmatprep.subr.bf16.mxu1 %v3394_v10  ;;  %v3442_v56 = vld [vmem:[%s4149_s1 + $0x158] sm:$0xff]   ;;  %v3440_v59 = vld [vmem:[%s3621_s8 + $0x20] sm:$0xff]   ;;  %v3441_v60 = vld [vmem:[%s3621_s8 + $0x10] sm:$0xff]  }
  0x19   : > { %v3444_v58 = vld [vmem:[%s4149_s1 + $0x118] sm:$0xff]   ;;  %v3445_v61 = vld [vmem:[%s3621_s8 + $0x30] sm:$0xff]   ;;  %v3446_v62 = vld [vmem:[%s3621_s8 + $0x20] sm:$0xff]  }
  0x1a   : > { %v3447_v63 = vld [vmem:[%s3621_s8 + $0x28] sm:$0xff]   ;;  %v3448_v0 = vld [vmem:[%s3621_s8 + $0x18] sm:$0xff]   ;;  %v3453_v3 = vld [vmem:[%s4149_s1 + $0x160] sm:$0xff]  }
  0x1b   : > { %2962 = vmatpush3.bf16.msra.mxu0 %v3395_v13  ;;  %3372 = vmatpush3.bf16.msra.mxu1 %v3395_v13  ;;  %v3449_v1 = vld [vmem:[%s3621_s8 + $0x38] sm:$0xff]   ;;  %v3450_v2 = vld [vmem:[%s3621_s8 + $0x28] sm:$0xff]   ;;  %v3454_v4 = vld [vmem:[%s4149_s1 + $0x120] sm:$0xff]  }
  0x1c   : > { %2963 = vmatprep.subr.bf16.mxu0 %v3396_v14  ;;  %3365 = vmatprep.subr.bf16.mxu1 %v3396_v14  ;;  %v3455_v5 = vld [vmem:[%s4149_s1 + $0x188] sm:$0xff]   ;;  %v3451_v6 = vld [vmem:[%s3621_s8 + $0x30] sm:$0xff]   ;;  %v3452_v7 = vld [vmem:[%s3621_s8 + $0x20] sm:$0xff]  }
  0x1d   : > { %v3460_v8 = vld [vmem:[%s4149_s1 + $0x168] sm:$0xff]   ;;  %v3456_v10 = vld [vmem:[%s3621_s8 + $0x40] sm:$0xff]   ;;  %v3457_v11 = vld [vmem:[%s3621_s8 + $0x30] sm:$0xff]  }
  0x1e   : > { %v3461_v9 = vld [vmem:[%s4149_s1 + $0x128] sm:$0xff]   ;;  %v3466_v12 = vld [vmem:[%s4149_s1 + $0x190] sm:$0xff]   ;;  %v3458_v13 = vld [vmem:[%s3621_s8 + $0x38] sm:$0xff]  }
  0x1f   : > { %2964 = vmatpush3.bf16.msra.mxu0 %v3397_v15  ;;  %3373 = vmatpush3.bf16.msra.mxu1 %v3397_v15  ;;  %v3459_v14 = vld [vmem:[%s3621_s8 + $0x28] sm:$0xff]  }
  0x20   : > { %2965 = vmatprep.subr.bf16.mxu0 %v3398_v16  ;;  %3366 = vmatprep.subr.bf16.mxu1 %v3398_v16  ;;  %v3462_v15 = vld [vmem:[%s3621_s8 + $0x48] sm:$0xff]   ;;  %v3463_v16 = vld [vmem:[%s3621_s8 + $0x38] sm:$0xff]  }
  0x23   : > { %2966 = vmatpush3.bf16.msra.mxu0 %v3399_v17  ;;  %3374 = vmatpush3.bf16.msra.mxu1 %v3399_v17  ;;  %v3471_v17 = vld [vmem:[%s4149_s1 + $0x170] sm:$0xff]  }
  0x24   : > { %3063 = vmatprep.subr.bf16.mxu1 %v3404_v18  ;;  %3175 = vmatprep.subr.bf16.mxu0 %v3405_v21  ;;  %v3472_v18 = vld [vmem:[%s4149_s1 + $0x130] sm:$0xff]  }
  0x25   : > { %v3467_v21 = vld [vmem:[%s3621_s8 + $0x50] sm:$0xff]  }
  0x26   : > { %1562 = vmatmul.mubr.bf16.vlgmr.msra.gmra.mrb[0].mxu0 %v3402_v19  ;;  %1658 = vmatmul.mubr.bf16.vlgmr.msra.gmra.mrb[0].mxu1 %v3403_v20  ;;  %v3464_v19 = vld [vmem:[%s3621_s8 + $0x40] sm:$0xff]   ;;  %v3465_v20 = vld [vmem:[%s3621_s8 + $0x30] sm:$0xff]  }
  0x27   : > { %3064 = vmatpush3.bf16.msra.mxu1 %v3406_v22  ;;  %3176 = vmatpush3.bf16.msra.mxu0 %v3407_v23  ;;  %v3468_v22 = vld [vmem:[%s3621_s8 + $0x40] sm:$0xff]   ;;  %v3477_v23 = vld [vmem:[%s4149_s1 + $0x178] sm:$0xff]  }
  0x28   : > { %3065 = vmatprep.subr.bf16.mxu1 %v3408_v24  ;;  %1569 = vmatprep.mubr.bf16.mxu0 %v3410_v25  ;;  %v3478_v24 = vld [vmem:[%s4149_s1 + $0x198] sm:$0xff]  }
  0x29   : > { %1665 = vmatprep.mubr.bf16.mxu1 %v3411_v26  ;;  %3177 = vmatprep.subr.bf16.mxu0 %v3417_v27  ;;  %v3479_v25 = vld [vmem:[%s4149_s1 + $0x138] sm:$0xff]   ;;  %v3469_v26 = vld [vmem:[%s3621_s8 + $0x48] sm:$0xff]  }
  0x2a   : > { %v3470_v27 = vld [vmem:[%s3621_s8 + $0x38] sm:$0xff]  }
  0x2b   : > { %3066 = vmatpush3.bf16.msra.mxu1 %v3409_v28  ;;  %3178 = vmatpush3.bf16.msra.mxu0 %v3419_v29  ;;  %v3473_v28 = vld [vmem:[%s3621_s8 + $0x58] sm:$0xff]   ;;  %v3474_v29 = vld [vmem:[%s3621_s8 + $0x48] sm:$0xff]  }
  0x2c   : > { %3067 = vmatprep.subr.bf16.mxu1 %v3414_v32  ;;  %3179 = vmatprep.subr.bf16.mxu0 %v3433_v45  ;;  %v3476_v32 = vld [vmem:[%s3621_s8 + $0x40] sm:$0xff]   ;;  %v3515_v45 = vld [vmem:[%s4149_s1 + $0x1b8] sm:$0xff]  }
  0x2e   : > { %1570 = vmatmul.mubr.bf16.gmra.mrb[4].mxu0 %v3412_v30  ;;  %1666 = vmatmul.mubr.bf16.gmra.mrb[4].mxu1 %v3413_v31  ;;  %v3488_v30 = vld [vmem:[%s4149_s1 + $0x1a0] sm:$0xff]   ;;  %v3475_v31 = vld [vmem:[%s3621_s8 + $0x50] sm:$0xff]  }
  0x2f   : > { %3068 = vmatpush3.bf16.msra.mxu1 %v3415_v33  ;;  %1577 = vmatprep.mubr.bf16.mxu0 %v3420_v35  ;;  %v3480_v33 = vld [vmem:[%s3621_s8 + $0x60] sm:$0xff]   ;;  %v3497_v35 = vld [vmem:[%s4149_s1 + $0x1a8] sm:$0xff]  }
  0x30   : > { %3069 = vmatprep.subr.bf16.mxu1 %v3416_v34  ;;  %1673 = vmatprep.mubr.bf16.mxu1 %v3421_v36  ;;  %v3481_v34 = vld [vmem:[%s3621_s8 + $0x50] sm:$0xff]   ;;  %v3482_v36 = vld [vmem:[%s3621_s8 + $0x58] sm:$0xff]  }
  0x31   : > { %3180 = vmatpush3.bf16.msra.mxu0 %v3435_v47  ;;  %v3492_v47 = vld [vmem:[%s3621_s8 + $0x28] sm:$0xff]  }
  0x32   : > { %3181 = vmatprep.subr.bf16.mxu0 %v3442_v56  ;;  %v3502_v56 = vld [vmem:[%s3621_s8 + $0x78] sm:$0xff]  }
  0x33   : > { %3070 = vmatpush3.bf16.msra.mxu1 %v3418_v37  ;;  %v3483_v37 = vld [vmem:[%s3621_s8 + $0x48] sm:$0xff]  }
  0x34   : > { %3071 = vmatprep.subr.bf16.mxu1 %v3424_v40  ;;  %v3506_v40 = vld [vmem:[%s4149_s1 + $0x1b0] sm:$0xff]  }
  0x35   : > { %3182 = vmatpush3.bf16.msra.mxu0 %v3444_v58  ;;  %v3504_v58 = vld [vmem:[%s3621_s8 + $0x70] sm:$0xff]  }
  0x36   : > { %1578 = vmatmul.mubr.bf16.gmra.mrb[8].mxu0 %v3422_v38  ;;  %1674 = vmatmul.mubr.bf16.gmra.mrb[8].mxu1 %v3423_v39  ;;  %v3484_v38 = vld [vmem:[%s3621_s8 + $0x58] sm:$0xff]   ;;  %v3485_v39 = vld [vmem:[%s3621_s8 + $0x28] sm:$0xff]  }
  0x37   : > { %3072 = vmatpush3.bf16.msra.mxu1 %v3425_v41  ;;  %1585 = vmatprep.mubr.bf16.mxu0 %v3428_v43  ;;  %v3486_v41 = vld [vmem:[%s3621_s8 + $0x50] sm:$0xff]   ;;  %v3489_v43 = vld [vmem:[%s3621_s8 + $0x60] sm:$0xff]  }
  0x38   : > { %3073 = vmatprep.subr.bf16.mxu1 %v3426_v42  ;;  %1681 = vmatprep.mubr.bf16.mxu1 %v3429_v44  ;;  %v3487_v42 = vld [vmem:[%s3621_s8 + $0x20] sm:$0xff]   ;;  %v3490_v44 = vld [vmem:[%s3621_s8 + $0x30] sm:$0xff]  }
  0x39   : > { %3183 = vmatprep.subr.bf16.mxu0 %v3453_v3  ;;  %v3514_v3 = vld [vmem:[%s3621_s8 + $0x50] sm:$0xff]  }
  0x3a   : > { %3184 = vmatpush3.bf16.msra.mxu0 %v3454_v4  ;;  %v3516_v4 = vld [vmem:[%s3621_s8 + $0x90] sm:$0xff]  }
  0x3b   : > { %3074 = vmatpush3.bf16.msra.mxu1 %v3427_v46  ;;  %3185 = vmatprep.subr.bf16.mxu0 %v3460_v8  ;;  %v3491_v46 = vld [vmem:[%s3621_s8 + $0x58] sm:$0xff]   ;;  %v3520_v8 = vld [vmem:[%s3621_s8 + $0x68] sm:$0xff]  }
  0x3c   : > { %3075 = vmatprep.subr.bf16.mxu1 %v3432_v50  ;;  %v3495_v50 = vld [vmem:[%s3621_s8 + $0x60] sm:$0xff]  }
  0x3e   : > { %1586 = vmatmul.mubr.bf16.gmra.mrb[12].mxu0 %v3430_v48  ;;  %1682 = vmatmul.mubr.bf16.gmra.mrb[12].mxu1 %v3431_v49  ;;  %v3493_v48 = vld [vmem:[%s3621_s8 + $0x68] sm:$0xff]   ;;  %v3494_v49 = vld [vmem:[%s3621_s8 + $0x38] sm:$0xff]  }
  0x3f   : > { %3076 = vmatpush3.bf16.msra.mxu1 %v3434_v51  ;;  %1593 = vmatprep.mubr.bf16.mxu0 %v3438_v53  ;;  %v3496_v51 = vld [vmem:[%s3621_s8 + $0x30] sm:$0xff]   ;;  %v3499_v53 = vld [vmem:[%s3621_s8 + $0x40] sm:$0xff]  }
  0x40   : > { %3077 = vmatprep.subr.bf16.mxu1 %v3436_v52  ;;  %1722 = vmatprep.mubr.bf16.mxu1 %v3439_v54  ;;  %v3498_v52 = vld [vmem:[%s3621_s8 + $0x70] sm:$0xff]   ;;  %v3500_v54 = vld [vmem:[%s3621_s8 + $0x68] sm:$0xff]  }
  0x41   : > { %3186 = vmatpush3.bf16.msra.mxu0 %v3461_v9  ;;  %v3521_v9 = vld [vmem:[%s3621_s8 + $0x30] sm:$0xff]  }
  0x42   : > { %3187 = vmatprep.subr.bf16.mxu0 %v3471_v17  ;;  %v3529_v17 = vld [vmem:[%s3621_s8 + $0x50] sm:$0xff]  }
  0x43   : > { %3078 = vmatpush3.bf16.msra.mxu1 %v3437_v55  ;;  %v3501_v55 = vld [vmem:[%s3621_s8 + $0x38] sm:$0xff]  }
  0x44   : > { %3311 = vmatprep.subr.bf16.mxu1 %v3443_v57 }
  0x45   : > { %3188 = vmatpush3.bf16.msra.mxu0 %v3472_v18  ;;  %v3530_v18 = vld [vmem:[%s3621_s8 + $0x70] sm:$0xff]  }
  0x46   : > { %1594 = vmatmul.mubr.bf16.gmra.mrb[16].mxu0 %v3440_v59  ;;  %1723 = vmatmul.mubr.bf16.vlgmr.msra.gmra.mrb[16].mxu1 %v3441_v60  ;;  %v3505_v59 = vld [vmem:[%s3621_s8 + $0x40] sm:$0xff]  }
  0x47   : > { %3312 = vmatpush3.bf16.msra.mxu1 %v3443_v57  ;;  %1601 = vmatprep.mubr.bf16.mxu0 %v3445_v61  ;;  %v3503_v57 = vld [vmem:[%s3621_s8 + $0x48] sm:$0xff]   ;;  %v3507_v60 = vld [vmem:[%s3621_s8 + $0x80] sm:$0xff]   ;;  %v3508_v61 = vld [vmem:[%s3621_s8 + $0x50] sm:$0xff]  }
  0x48   : > { %1730 = vmatprep.mubr.bf16.mxu1 %v3446_v62  ;;  %3313 = vmatprep.subr.bf16.mxu1 %v3455_v5  ;;  %v3509_v62 = vld [vmem:[%s3621_s8 + $0x78] sm:$0xff]  }
  0x49   : > { %3189 = vmatprep.subr.bf16.mxu0 %v3477_v23  ;;  %v3535_v23 = vld [vmem:[%s3621_s8 + $0x68] sm:$0xff]  }
  0x4a   : > { %3190 = vmatpush3.bf16.msra.mxu0 %v3479_v25  ;;  %v3537_v25 = vld [vmem:[%s3621_s8 + $0x70] sm:$0xff]  }
  0x4b   : > { %3314 = vmatpush3.bf16.msra.mxu1 %v3455_v5  ;;  %v3517_v5 = vld [vmem:[%s3621_s8 + $0x60] sm:$0xff]  }
  0x4c   : > { %3315 = vmatprep.subr.bf16.mxu1 %v3466_v12 }
  0x4e   : > { %1602 = vmatmul.mubr.bf16.gmra.mrb[20].mxu0 %v3447_v63  ;;  %1731 = vmatmul.mubr.bf16.gmra.mrb[20].mxu1 %v3448_v0  ;;  %v3510_v63 = vld [vmem:[%s3621_s8 + $0x48] sm:$0xff]  }
  0x4f   : > { %1609 = vmatprep.mubr.bf16.mxu0 %v3449_v1  ;;  %1738 = vmatprep.mubr.bf16.mxu1 %v3450_v2  ;;  %v3511_v0 = vld [vmem:[%s3621_s8 + $0x88] sm:$0xff]   ;;  %v3512_v1 = vld [vmem:[%s3621_s8 + $0x58] sm:$0xff]   ;;  %v3513_v2 = vld [vmem:[%s3621_s8 + $0x80] sm:$0xff]  }
  0x50   : > { %3316 = vmatpush3.bf16.msra.mxu1 %v3466_v12  ;;  %v3524_v12 = vld [vmem:[%s3621_s8 + $0x70] sm:$0xff]  }
  0x51   : > { %3317 = vmatprep.subr.bf16.mxu1 %v3478_v24 }
  0x54   : > { %3318 = vmatpush3.bf16.msra.mxu1 %v3478_v24  ;;  %v3536_v24 = vld [vmem:[%s3621_s8 + $0x88] sm:$0xff]  }
  0x55   : > { %3319 = vmatprep.subr.bf16.mxu1 %v3488_v30 }
  0x56   : > { %1610 = vmatmul.mubr.bf16.gmra.mrb[24].mxu0 %v3451_v6  ;;  %1739 = vmatmul.mubr.bf16.gmra.mrb[24].mxu1 %v3452_v7  ;;  %v3518_v6 = vld [vmem:[%s3621_s8 + $0x88] sm:$0xff]   ;;  %v3519_v7 = vld [vmem:[%s3621_s8 + $0x58] sm:$0xff]  }
  0x57   : > { %1617 = vmatprep.mubr.bf16.mxu0 %v3456_v10  ;;  %1746 = vmatprep.mubr.bf16.mxu1 %v3457_v11  ;;  %v3522_v10 = vld [vmem:[%s3621_s8 + $0x60] sm:$0xff]   ;;  %v3523_v11 = vld [vmem:[%s3621_s8 + $0x38] sm:$0xff]  }
  0x58   : > { %3320 = vmatpush3.bf16.msra.mxu1 %v3488_v30  ;;  %v3542_v30 = vld [vmem:[%s3621_s8 + $0x88] sm:$0xff]  }
  0x59   : > { %3321 = vmatprep.subr.bf16.mxu1 %v3497_v35 }
  0x5c   : > { %3322 = vmatpush3.bf16.msra.mxu1 %v3497_v35  ;;  %v3547_v35 = vld [vmem:[%s3621_s8 + $0x98] sm:$0xff]  }
  0x5d   : > { %3323 = vmatprep.subr.bf16.mxu1 %v3506_v40 }
  0x5e   : > { %1618 = vmatmul.mubr.bf16.gmra.mrb[28].mxu0 %v3458_v13  ;;  %1747 = vmatmul.mubr.bf16.gmra.mrb[28].mxu1 %v3459_v14  ;;  %v3525_v13 = vld [vmem:[%s3621_s8 + $0x40] sm:$0xff]   ;;  %v3526_v14 = vld [vmem:[%s3621_s8 + $0x68] sm:$0xff]  }
  0x5f   : > { %1625 = vmatprep.mubr.bf16.mxu0 %v3462_v15  ;;  %1754 = vmatprep.mubr.bf16.mxu1 %v3463_v16  ;;  %v3527_v15 = vld [vmem:[%s3621_s8 + $0x48] sm:$0xff]   ;;  %v3528_v16 = vld [vmem:[%s3621_s8 + $0x78] sm:$0xff]  }
  0x60   : > { %3324 = vmatpush3.bf16.msra.mxu1 %v3506_v40 }
  0x61   : > { %3325 = vmatprep.subr.bf16.mxu1 %v3515_v45 }
  0x64   : > { %3326 = vmatpush3.bf16.msra.mxu1 %v3515_v45 }
  0x66   : > { %1626 = vmatmul.mubr.bf16.gmra.mrb[32].mxu0 %v3464_v19  ;;  %1755 = vmatmul.mubr.bf16.gmra.mrb[32].mxu1 %v3465_v20  ;;  %v3531_v19 = vld [vmem:[%s3621_s8 + $0x58] sm:$0xff]   ;;  %v3532_v20 = vld [vmem:[%s3621_s8 + $0x80] sm:$0xff]  }
  0x67   : > { %1633 = vmatprep.mubr.bf16.mxu0 %v3467_v21  ;;  %1762 = vmatprep.mubr.bf16.mxu1 %v3468_v22  ;;  %v3533_v21 = vld [vmem:[%s3621_s8 + $0x60] sm:$0xff]   ;;  %v3534_v22 = vld [vmem:[%s3621_s8 + $0x78] sm:$0xff]  }
  0x6e   : > { %1634 = vmatmul.mubr.bf16.gmra.mrb[36].mxu0 %v3469_v26  ;;  %1763 = vmatmul.mubr.bf16.gmra.mrb[36].mxu1 %v3470_v27  ;;  %v3538_v26 = vld [vmem:[%s3621_s8 + $0x80] sm:$0xff]   ;;  %v3539_v27 = vld [vmem:[%s3621_s8 + $0x78] sm:$0xff]  }
  0x6f   : > { %1641 = vmatprep.mubr.bf16.mxu0 %v3473_v28  ;;  %1770 = vmatprep.mubr.bf16.mxu1 %v3474_v29  ;;  %v3540_v28 = vld [vmem:[%s3621_s8 + $0x90] sm:$0xff]   ;;  %v3541_v29 = vld [vmem:[%s3621_s8 + $0x80] sm:$0xff]  }
  0x76   : > { %1642 = vmatmul.mubr.bf16.gmra.mrb[40].mxu0 %v3475_v31  ;;  %1771 = vmatmul.mubr.bf16.gmra.mrb[40].mxu1 %v3476_v32  ;;  %v3543_v31 = vld [vmem:[%s3621_s8 + $0x88] sm:$0xff]   ;;  %v3544_v32 = vld [vmem:[%s3621_s8 + $0x98] sm:$0xff]  }
  0x77   : > { %1649 = vmatprep.mubr.bf16.mxu0 %v3480_v33  ;;  %1778 = vmatprep.mubr.bf16.mxu1 %v3481_v34  ;;  %v3545_v33 = vld [vmem:[%s3621_s8 + $0x90] sm:$0xff]  }
  0x78   : > { %v3546_v34 = vld [vmem:[%s3621_s8 + $0x90] sm:$0xff]  }
  0x7e   : > { %1650 = vmatmul.mubr.bf16.gmra.mrb[44].mxu0 %v3482_v36  ;;  %1779 = vmatmul.mubr.bf16.gmra.mrb[44].mxu1 %v3483_v37  ;;  %v3548_v36 = vld [vmem:[%s3621_s8 + $0xa0] sm:$0xff]  }
  0x7f   : > { %1786 = vmatprep.mubr.bf16.mxu1 %v3484_v38  ;;  %1883 = vmatprep.mubr.bf16.mxu0 %v3485_v39  ;;  %v3549_v37 = vld [vmem:[%s3621_s8 + $0xa0] sm:$0xff]  }
  0x86   : > { %1787 = vmatmul.mubr.bf16.gmra.mrb[48].mxu1 %v3486_v41  ;;  %1884 = vmatmul.mubr.bf16.vlgmr.msra.gmra.mrb[48].mxu0 %v3487_v42  ;;  %v3550_v42 = vld [vmem:[%s3621_s8 + $0x98] sm:$0xff]  }
  0x87   : > { %1794 = vmatprep.mubr.bf16.mxu1 %v3489_v43  ;;  %1891 = vmatprep.mubr.bf16.mxu0 %v3490_v44  ;;  %v3551_v43 = vld [vmem:[%s3621_s8 + $0xa8] sm:$0xff]  }
  0x8e   : > { %1795 = vmatmul.mubr.bf16.gmra.mrb[52].mxu1 %v3491_v46  ;;  %1892 = vmatmul.mubr.bf16.gmra.mrb[52].mxu0 %v3492_v47 }
  0x8f   : > { %1802 = vmatprep.mubr.bf16.mxu1 %v3493_v48  ;;  %1899 = vmatprep.mubr.bf16.mxu0 %v3494_v49 }
  0x96   : > { %1803 = vmatmul.mubr.bf16.gmra.mrb[56].mxu1 %v3495_v50  ;;  %1900 = vmatmul.mubr.bf16.gmra.mrb[56].mxu0 %v3496_v51 }
  0x97   : > { %1810 = vmatprep.mubr.bf16.mxu1 %v3498_v52  ;;  %1907 = vmatprep.mubr.bf16.mxu0 %v3499_v53 }
  0x9e   : > { %1811 = vmatmul.mubr.bf16.gmra.mrb[60].mxu1 %v3500_v54  ;;  %1908 = vmatmul.mubr.bf16.gmra.mrb[60].mxu0 %v3501_v55 }
  0x9f   : > { %1818 = vmatprep.mubr.bf16.mxu1 %v3502_v56  ;;  %1915 = vmatprep.mubr.bf16.mxu0 %v3503_v57 }
  0xa6   : > { %1819 = vmatmul.mubr.bf16.gmra.mrb[64].mxu1 %v3504_v58  ;;  %1916 = vmatmul.mubr.bf16.gmra.mrb[64].mxu0 %v3505_v59 }
  0xa7   : > { %1826 = vmatprep.mubr.bf16.mxu1 %v3507_v60  ;;  %1923 = vmatprep.mubr.bf16.mxu0 %v3508_v61 }
  0xae   : > { %1827 = vmatmul.mubr.bf16.gmra.mrb[68].mxu1 %v3509_v62  ;;  %1924 = vmatmul.mubr.bf16.gmra.mrb[68].mxu0 %v3510_v63 }
  0xaf   : > { %1834 = vmatprep.mubr.bf16.mxu1 %v3511_v0  ;;  %1931 = vmatprep.mubr.bf16.mxu0 %v3512_v1 }
  0xb6   : > { %1835 = vmatmul.mubr.bf16.gmra.mrb[72].mxu1 %v3513_v2  ;;  %1932 = vmatmul.mubr.bf16.gmra.mrb[72].mxu0 %v3514_v3 }
  0xb7   : > { %1842 = vmatprep.mubr.bf16.mxu1 %v3516_v4  ;;  %1939 = vmatprep.mubr.bf16.mxu0 %v3517_v5 }
  0xbe   : > { %1843 = vmatmul.mubr.bf16.gmra.mrb[76].mxu1 %v3518_v6  ;;  %1940 = vmatmul.mubr.bf16.gmra.mrb[76].mxu0 %v3519_v7 }
  0xbf   : > { %1947 = vmatprep.mubr.bf16.mxu0 %v3520_v8  ;;  %3327 = vmatprep.mubr.bf16.mxu1 %v3521_v9 }
  0xc6   : > { %1948 = vmatmul.mubr.bf16.gmra.mrb[80].mxu0 %v3522_v10  ;;  %3328 = vmatmul.mubr.bf16.vlgmr.msra.gmra.mrb[80].mxu1 %v3523_v11 }
  0xc7   : > { %1955 = vmatprep.mubr.bf16.mxu0 %v3524_v12  ;;  %3331 = vmatprep.mubr.bf16.mxu1 %v3525_v13 }
  0xce   : > { %1956 = vmatmul.mubr.bf16.gmra.mrb[84].mxu0 %v3526_v14  ;;  %3332 = vmatmul.mubr.bf16.gmra.mrb[84].mxu1 %v3527_v15 }
  0xcf   : > { %1963 = vmatprep.mubr.bf16.mxu0 %v3528_v16  ;;  %3335 = vmatprep.mubr.bf16.mxu1 %v3529_v17 }
  0xd6   : > { %1964 = vmatmul.mubr.bf16.gmra.mrb[88].mxu0 %v3530_v18  ;;  %3336 = vmatmul.mubr.bf16.gmra.mrb[88].mxu1 %v3531_v19 }
  0xd7   : > { %1971 = vmatprep.mubr.bf16.mxu0 %v3532_v20  ;;  %3339 = vmatprep.mubr.bf16.mxu1 %v3533_v21 }
  0xde   : > { %1972 = vmatmul.mubr.bf16.gmra.mrb[92].mxu0 %v3534_v22  ;;  %3340 = vmatmul.mubr.bf16.gmra.mrb[92].mxu1 %v3535_v23 }
  0xdf   : > { %1979 = vmatprep.mubr.bf16.mxu0 %v3536_v24  ;;  %3343 = vmatprep.mubr.bf16.mxu1 %v3537_v25  ;;  %v3895_v24 = vld [vmem:[%s4150_s2] ss:$0 sm:$0xff] }
  0xe6   : > { %1980 = vmatmul.mubr.bf16.gmra.mrb[96].mxu0 %v3538_v26  ;;  %3344 = vmatmul.mubr.bf16.gmra.mrb[96].mxu1 %v3539_v27 }
  0xe7   : > { %1987 = vmatprep.mubr.bf16.mxu0 %v3540_v28  ;;  %3347 = vmatprep.mubr.bf16.mxu1 %v3541_v29 }
  0xee   : > { %1988 = vmatmul.mubr.bf16.gmra.mrb[100].mxu0 %v3542_v30  ;;  %3348 = vmatmul.mubr.bf16.gmra.mrb[100].mxu1 %v3543_v31 }
  0xef   : > { %1995 = vmatprep.mubr.bf16.mxu0 %v3544_v32  ;;  %3351 = vmatprep.mubr.bf16.mxu1 %v3545_v33 }
  0xf6   : > { %1996 = vmatmul.mubr.bf16.gmra.mrb[104].mxu0 %v3546_v34  ;;  %3352 = vmatmul.mubr.bf16.gmra.mrb[104].mxu1 %v3547_v35 }
  0xf7   : > { %2003 = vmatprep.mubr.bf16.mxu0 %v3548_v36  ;;  %3355 = vmatprep.mubr.bf16.mxu1 %v3549_v37 }
  0xf9   : > { %v2967_v38 = vpop.f32.mrb[0].mxu0  ;;  %v3039_v39 = vpop.f32.mrb[0].mxu1 }
  0xfa   : > { %v2968_v40 = vpop.f32.mrb[1].mxu0  ;;  %v3040_v41 = vpop.f32.mrb[1].mxu1 }
  0xfb   : > { %v2969_v44 = vadd.f32 %v2968_v40, %v2967_v38  ;;  %v2970_v45 = vpop.f32.mrb[2].mxu0  ;;  %v3876_v46 = vadd.f32 %v3040_v41, %v3039_v39  ;;  %v3042_v47 = vpop.f32.mrb[2].mxu1 }
  0xfc   : > { %v2971_v48 = vpop.f32.mrb[3].mxu0  ;;  %v3043_v49 = vpop.f32.mrb[3].mxu1 }
  0xfd   : > { %v2972_v50 = vadd.f32 %v2971_v48, %v2970_v45  ;;  %v3878_v51 = vadd.f32 %v3043_v49, %v3042_v47  ;;  %v1564_v29 = vadd.f32 %v2969_v44, %v3895_v24 }
  0xfe   : > { %2004 = vmatmul.mubr.bf16.gmra.mrb[108].mxu0 %v3550_v42  ;;  %3356 = vmatmul.mubr.bf16.gmra.mrb[108].mxu1 %v3551_v43 }
  0xff   : > { %v1567_v36 = vadd.f32 %v2972_v50, %v3895_v24 }
 0x101   : > { %v2973_v52 = vpop.f32.mrb[4].mxu0  ;;  %v3045_v53 = vpop.f32.mrb[4].mxu1 }
 0x102   : > { %v2974_v54 = vpop.f32.mrb[5].mxu0  ;;  %v3046_v55 = vpop.f32.mrb[5].mxu1 }
 0x103   : > { %v2975_v56 = vadd.f32 %v2974_v54, %v2973_v52  ;;  %v2976_v57 = vpop.f32.mrb[6].mxu0  ;;  %v3880_v58 = vadd.f32 %v3046_v55, %v3045_v53  ;;  %v3048_v59 = vpop.f32.mrb[6].mxu1 }
 0x104   : > { %v2977_v60 = vpop.f32.mrb[7].mxu0  ;;  %v3049_v61 = vpop.f32.mrb[7].mxu1 }
 0x105   : > { %v2978_v62 = vadd.f32 %v2977_v60, %v2976_v57  ;;  %v3882_v63 = vadd.f32 %v3049_v61, %v3048_v59  ;;  %v1572_v44 = vadd.f32 %v2975_v56, %v3895_v24 }
 0x107   : > { %v1575_v50 = vadd.f32 %v2978_v62, %v3895_v24 }
 0x109   : > { %v2979_v0 = vpop.f32.mrb[8].mxu0  ;;  %v3051_v1 = vpop.f32.mrb[8].mxu1 }
 0x10a   : > { %v2980_v2 = vpop.f32.mrb[9].mxu0  ;;  %v3052_v3 = vpop.f32.mrb[9].mxu1 }
 0x10b   : > { %v2981_v4 = vadd.f32 %v2980_v2, %v2979_v0  ;;  %v2982_v5 = vpop.f32.mrb[10].mxu0  ;;  %v3884_v6 = vadd.f32 %v3052_v3, %v3051_v1  ;;  %v3054_v7 = vpop.f32.mrb[10].mxu1 }
 0x10c   : > { %v2983_v8 = vpop.f32.mrb[11].mxu0  ;;  %v3055_v9 = vpop.f32.mrb[11].mxu1 }
 0x10d   : > { %v2984_v10 = vadd.f32 %v2983_v8, %v2982_v5  ;;  %v3886_v11 = vadd.f32 %v3055_v9, %v3054_v7  ;;  %v1580_v56 = vadd.f32 %v2981_v4, %v3895_v24 }
 0x10f   : > { %v1583_v62 = vadd.f32 %v2984_v10, %v3895_v24 }
 0x111   : > { %v2985_v12 = vpop.f32.mrb[12].mxu0  ;;  %v3057_v13 = vpop.f32.mrb[12].mxu1 }
 0x112   : > { %v2986_v14 = vpop.f32.mrb[13].mxu0  ;;  %v3058_v15 = vpop.f32.mrb[13].mxu1 }
 0x113   : > { %v2987_v16 = vadd.f32 %v2986_v14, %v2985_v12  ;;  %v2988_v17 = vpop.f32.mrb[14].mxu0  ;;  %v3888_v18 = vadd.f32 %v3058_v15, %v3057_v13  ;;  %v3060_v19 = vpop.f32.mrb[14].mxu1 }
 0x114   : > { %v2989_v20 = vpop.f32.mrb[15].mxu0  ;;  %v3061_v21 = vpop.f32.mrb[15].mxu1 }
 0x115   : > { %v2990_v22 = vadd.f32 %v2989_v20, %v2988_v17  ;;  %v3890_v23 = vadd.f32 %v3061_v21, %v3060_v19  ;;  %v1588_v4 = vadd.f32 %v2987_v16, %v3895_v24 }
 0x117   : > { %v1591_v10 = vadd.f32 %v2990_v22, %v3895_v24 }
 0x119   : > { %v2991_v25 = vpop.f32.mrb[16].mxu0  ;;  %v3079_v26 = vpop.f32.mrb[16].mxu1 }
 0x11a   : > { %v2992_v27 = vpop.f32.mrb[17].mxu0  ;;  %v3080_v28 = vpop.f32.mrb[17].mxu1 }
 0x11b   : > { %v3898_v30 = vadd.f32 %v2992_v27, %v2991_v25  ;;  %v3081_v31 = vadd.f32 %v3080_v28, %v3079_v26  ;;  %v2994_v32 = vpop.f32.mrb[18].mxu0  ;;  %v3082_v33 = vpop.f32.mrb[18].mxu1 }
 0x11c   : > { %v2995_v34 = vpop.f32.mrb[19].mxu0  ;;  %v3083_v35 = vpop.f32.mrb[19].mxu1 }
 0x11d   : > { %v3901_v37 = vadd.f32 %v3081_v31, %v1564_v29  ;;  %v2996_v38 = vadd.f32 %v2995_v34, %v2994_v32  ;;  %v3084_v39 = vadd.f32 %v3083_v35, %v3082_v33  ;;  %v1596_v16 = vadd.f32 %v3898_v30, %v3895_v24 }
 0x11f   : > { %v3903_v40 = vadd.f32 %v3084_v39, %v1567_v36 }
 0x121   : > { %v2997_v41 = vpop.f32.mrb[20].mxu0  ;;  %v3085_v42 = vpop.f32.mrb[20].mxu1 }
 0x122   : > { %v2998_v43 = vpop.f32.mrb[21].mxu0  ;;  %v3086_v45 = vpop.f32.mrb[21].mxu1 }
 0x123   : > { %v3906_v47 = vadd.f32 %v2998_v43, %v2997_v41  ;;  %v3087_v48 = vadd.f32 %v3086_v45, %v3085_v42  ;;  %v3000_v49 = vpop.f32.mrb[22].mxu0  ;;  %v3088_v52 = vpop.f32.mrb[22].mxu1 }
 0x124   : > { %v3001_v53 = vpop.f32.mrb[23].mxu0  ;;  %v3089_v54 = vpop.f32.mrb[23].mxu1 }
 0x125   : > { %v3909_v55 = vadd.f32 %v3087_v48, %v1572_v44  ;;  %v3002_v57 = vadd.f32 %v3001_v53, %v3000_v49  ;;  %v3090_v59 = vadd.f32 %v3089_v54, %v3088_v52  ;;  %v1599_v53 = vadd.f32 %v2996_v38, %v3895_v24 }
 0x126   : > { %v1604_v30 = vadd.f32 %v3906_v47, %v3895_v24 }
 0x127   : > { %v3911_v60 = vadd.f32 %v3090_v59, %v1575_v50 }
 0x129   : > { %v3003_v61 = vpop.f32.mrb[24].mxu0  ;;  %v3091_v0 = vpop.f32.mrb[24].mxu1 }
 0x12a   : > { %v3004_v1 = vpop.f32.mrb[25].mxu0  ;;  %v3092_v2 = vpop.f32.mrb[25].mxu1 }
 0x12b   : > { %v3914_v3 = vadd.f32 %v3004_v1, %v3003_v61  ;;  %v3093_v5 = vadd.f32 %v3092_v2, %v3091_v0  ;;  %v3006_v7 = vpop.f32.mrb[26].mxu0  ;;  %v3094_v8 = vpop.f32.mrb[26].mxu1 }
 0x12c   : > { %v3007_v9 = vpop.f32.mrb[27].mxu0  ;;  %v3095_v12 = vpop.f32.mrb[27].mxu1 }
 0x12d   : > { %v3917_v13 = vadd.f32 %v3093_v5, %v1580_v56  ;;  %v3008_v14 = vadd.f32 %v3007_v9, %v3006_v7  ;;  %v3096_v15 = vadd.f32 %v3095_v12, %v3094_v8  ;;  %v1612_v47 = vadd.f32 %v3914_v3, %v3895_v24 }
 0x12f   : > { %v3919_v17 = vadd.f32 %v3096_v15, %v1583_v62  ;;  %v1607_v62 = vadd.f32 %v3002_v57, %v3895_v24 }
 0x131   : > { %v3009_v19 = vpop.f32.mrb[28].mxu0  ;;  %v3097_v20 = vpop.f32.mrb[28].mxu1 }
 0x132   : > { %v3010_v21 = vpop.f32.mrb[29].mxu0  ;;  %v3098_v25 = vpop.f32.mrb[29].mxu1 }
 0x133   : > { %v3922_v26 = vadd.f32 %v3010_v21, %v3009_v19  ;;  %v3099_v27 = vadd.f32 %v3098_v25, %v3097_v20  ;;  %v3012_v28 = vpop.f32.mrb[30].mxu0  ;;  %v3100_v29 = vpop.f32.mrb[30].mxu1 }
 0x134   : > { %v3013_v31 = vpop.f32.mrb[31].mxu0  ;;  %v3101_v32 = vpop.f32.mrb[31].mxu1 }
 0x135   : > { %v3925_v33 = vadd.f32 %v3099_v27, %v1588_v4  ;;  %v3014_v34 = vadd.f32 %v3013_v31, %v3012_v28  ;;  %v3102_v35 = vadd.f32 %v3101_v32, %v3100_v29 }
 0x137   : > { %v3927_v36 = vadd.f32 %v3102_v35, %v1591_v10 }
 0x139   : > { %v3015_v39 = vpop.f32.mrb[32].mxu0  ;;  %v3103_v41 = vpop.f32.mrb[32].mxu1 }
 0x13a   : > { %v3016_v42 = vpop.f32.mrb[33].mxu0  ;;  %v3104_v43 = vpop.f32.mrb[33].mxu1 }
 0x13b   : > { %v3931_v45 = vadd.f32 %v3016_v42, %v3015_v39  ;;  %v3105_v44 = vadd.f32 %v3104_v43, %v3103_v41  ;;  %v3018_v48 = vpop.f32.mrb[34].mxu0  ;;  %v3106_v49 = vpop.f32.mrb[34].mxu1  ;;  %v1615_v39 = vadd.f32 %v3008_v14, %v3895_v24 }
 0x13c   : > { %v3019_v52 = vpop.f32.mrb[35].mxu0  ;;  %v3107_v22 = vpop.f32.mrb[35].mxu1 }
 0x13d   : > { %v3934_v54 = vadd.f32 %v3105_v44, %v1596_v16  ;;  %v3020_v50 = vadd.f32 %v3019_v52, %v3018_v48  ;;  %v3108_v59 = vadd.f32 %v3107_v22, %v3106_v49  ;;  %v1620_v52 = vadd.f32 %v3922_v26, %v3895_v24 }
 0x13f   : > { %v3936_v61 = vadd.f32 %v3108_v59, %v1599_v53 }
 0x141   : > { %v3021_v0 = vpop.f32.mrb[36].mxu0  ;;  %v3109_v1 = vpop.f32.mrb[36].mxu1 }
 0x142   : > { %v3022_v2 = vpop.f32.mrb[37].mxu0  ;;  %v3110_v56 = vpop.f32.mrb[37].mxu1 }
 0x143   : > { %v3940_v5 = vadd.f32 %v3022_v2, %v3021_v0  ;;  %v3111_v7 = vadd.f32 %v3110_v56, %v3109_v1  ;;  %v3024_v8 = vpop.f32.mrb[38].mxu0  ;;  %v3112_v9 = vpop.f32.mrb[38].mxu1  ;;  %v1623_v2 = vadd.f32 %v3014_v34, %v3895_v24  ;;  %v1631_v34 = vadd.f32 %v3020_v50, %v3895_v24 }
 0x144   : > { %v3025_v12 = vpop.f32.mrb[39].mxu0  ;;  %v3113_v38 = vpop.f32.mrb[39].mxu1 }
 0x145   : > { %v3943_v15 = vadd.f32 %v3111_v7, %v1604_v30  ;;  %v3026_v19 = vadd.f32 %v3025_v12, %v3024_v8  ;;  %v3114_v20 = vadd.f32 %v3113_v38, %v3112_v9  ;;  %v1636_v50 = vadd.f32 %v3940_v5, %v3895_v24 }
 0x147   : > { %v3945_v21 = vadd.f32 %v3114_v20, %v1607_v62  ;;  %v1628_v62 = vadd.f32 %v3931_v45, %v3895_v24 }
 0x149   : > { %v3027_v25 = vpop.f32.mrb[40].mxu0  ;;  %v3115_v4 = vpop.f32.mrb[40].mxu1 }
 0x14a   : > { %v3028_v27 = vpop.f32.mrb[41].mxu0  ;;  %v3116_v28 = vpop.f32.mrb[41].mxu1 }
 0x14b   : > { %v3949_v29 = vadd.f32 %v3028_v27, %v3027_v25  ;;  %v3117_v31 = vadd.f32 %v3116_v28, %v3115_v4  ;;  %v3030_v32 = vpop.f32.mrb[42].mxu0  ;;  %v3118_v10 = vpop.f32.mrb[42].mxu1 }
 0x14c   : > { %v3031_v35 = vpop.f32.mrb[43].mxu0  ;;  %v3119_v57 = vpop.f32.mrb[43].mxu1 }
 0x14d   : > { %v3952_v41 = vadd.f32 %v3117_v31, %v1612_v47  ;;  %v3954_v42 = vadd.f32 %v3031_v35, %v3030_v32  ;;  %v3120_v43 = vadd.f32 %v3119_v57, %v3118_v10 }
 0x14f   : > { %v3956_v16 = vadd.f32 %v3120_v43, %v1615_v39 }
 0x151   : > { %v3033_v44 = vpop.f32.mrb[44].mxu0  ;;  %v3121_v48 = vpop.f32.mrb[44].mxu1 }
 0x152   : > { %v3034_v49 = vpop.f32.mrb[45].mxu0  ;;  %v3122_v3 = vpop.f32.mrb[45].mxu1 }
 0x153   : > { %v3960_v22 = vadd.f32 %v3034_v49, %v3033_v44  ;;  %v3123_v53 = vadd.f32 %v3122_v3, %v3121_v48  ;;  %v3036_v59 = vpop.f32.mrb[46].mxu0  ;;  %v3124_v0 = vpop.f32.mrb[46].mxu1 }
 0x154   : > { %v3037_v14 = vpop.f32.mrb[47].mxu0  ;;  %v3125_v1 = vpop.f32.mrb[47].mxu1 }
 0x155   : > { %v3963_v56 = vadd.f32 %v3123_v53, %v1620_v52  ;;  %v3965_v30 = vadd.f32 %v3037_v14, %v3036_v59  ;;  %v3126_v7 = vadd.f32 %v3125_v1, %v3124_v0  ;;  %v1639_v59 = vadd.f32 %v3026_v19, %v3895_v24 }
 0x156   : > { %v1644_v19 = vadd.f32 %v3949_v29, %v3895_v24 }
 0x157   : > { %v3967_v8 = vadd.f32 %v3126_v7, %v1623_v2 }
 0x159   : > { %v3127_v9 = vpop.f32.mrb[48].mxu1  ;;  %v3191_v12 = vpop.f32.mrb[48].mxu0 }
 0x15a   : > { %v3128_v38 = vpop.f32.mrb[49].mxu1  ;;  %v3192_v26 = vpop.f32.mrb[49].mxu0 }
 0x15b   : > { %v3129_v20 = vadd.f32 %v3128_v38, %v3127_v9  ;;  %v3193_v25 = vadd.f32 %v3192_v26, %v3191_v12  ;;  %v3130_v4 = vpop.f32.mrb[50].mxu1  ;;  %v3194_v27 = vpop.f32.mrb[50].mxu0 }
 0x15c   : > { %v3131_v28 = vpop.f32.mrb[51].mxu1  ;;  %v3195_v47 = vpop.f32.mrb[51].mxu0 }
 0x15d   : > { %v3972_v31 = vadd.f32 %v3129_v20, %v1628_v62  ;;  %v3132_v32 = vadd.f32 %v3131_v28, %v3130_v4  ;;  %v3196_v10 = vadd.f32 %v3195_v47, %v3194_v27  ;;  %v3975_v35 = vadd.f32 %v3193_v25, %v3901_v37 }
 0x15f   : > { %v3977_v57 = vadd.f32 %v3132_v32, %v1631_v34  ;;  %v3980_v39 = vadd.f32 %v3196_v10, %v3903_v40 }
 0x161   : > { %v3133_v45 = vpop.f32.mrb[52].mxu1  ;;  %v3197_v43 = vpop.f32.mrb[52].mxu0 }
 0x162   : > { %v3134_v44 = vpop.f32.mrb[53].mxu1  ;;  %v3198_v48 = vpop.f32.mrb[53].mxu0 }
 0x163   : > { %v3135_v49 = vadd.f32 %v3134_v44, %v3133_v45  ;;  %v3199_v3 = vadd.f32 %v3198_v48, %v3197_v43  ;;  %v3136_v52 = vpop.f32.mrb[54].mxu1  ;;  %v3200_v53 = vpop.f32.mrb[54].mxu0 }
 0x164   : > { %v3137_v37 = vpop.f32.mrb[55].mxu1  ;;  %v3201_v0 = vpop.f32.mrb[55].mxu0 }
 0x165   : > { %v3985_v14 = vadd.f32 %v3135_v49, %v1636_v50  ;;  %v3138_v1 = vadd.f32 %v3137_v37, %v3136_v52  ;;  %v3202_v40 = vadd.f32 %v3201_v0, %v3200_v53  ;;  %v3988_v2 = vadd.f32 %v3199_v3, %v3909_v55 }
 0x166   : > { %v1647_v55 = vadd.f32 %v3954_v42, %v3895_v24  ;;  %v1652_v42 = vadd.f32 %v3960_v22, %v3895_v24 }
 0x167   : > { %v3990_v7 = vadd.f32 %v3138_v1, %v1639_v59  ;;  %v3993_v9 = vadd.f32 %v3202_v40, %v3911_v60 }
 0x169   : > { %v3139_v5 = vpop.f32.mrb[56].mxu1  ;;  %v3203_v12 = vpop.f32.mrb[56].mxu0 }
 0x16a   : > { %v3140_v38 = vpop.f32.mrb[57].mxu1  ;;  %v3204_v26 = vpop.f32.mrb[57].mxu0 }
 0x16b   : > { %v3141_v62 = vadd.f32 %v3140_v38, %v3139_v5  ;;  %v3205_v20 = vadd.f32 %v3204_v26, %v3203_v12  ;;  %v3142_v25 = vpop.f32.mrb[58].mxu1  ;;  %v3206_v4 = vpop.f32.mrb[58].mxu0 }
 0x16c   : > { %v3143_v27 = vpop.f32.mrb[59].mxu1  ;;  %v3207_v34 = vpop.f32.mrb[59].mxu0 }
 0x16d   : > { %v3999_v28 = vadd.f32 %v3141_v62, %v1644_v19  ;;  %v3144_v60 = vadd.f32 %v3143_v27, %v3142_v25  ;;  %v3208_v47 = vadd.f32 %v3207_v34, %v3206_v4  ;;  %v4002_v32 = vadd.f32 %v3205_v20, %v3917_v13 }
 0x16e   : > { %v1655_v13 = vadd.f32 %v3965_v30, %v3895_v24  ;;  %v1660_v30 = vadd.f32 %v3876_v46, %v3895_v24 }
 0x16f   : > { %v4004_v10 = vadd.f32 %v3144_v60, %v1647_v55  ;;  %v4007_v29 = vadd.f32 %v3208_v47, %v3919_v17 }
 0x171   : > { %v3145_v45 = vpop.f32.mrb[60].mxu1  ;;  %v3209_v43 = vpop.f32.mrb[60].mxu0 }
 0x172   : > { %v3146_v44 = vpop.f32.mrb[61].mxu1  ;;  %v3210_v48 = vpop.f32.mrb[61].mxu0 }
 0x173   : > { %v3147_v50 = vadd.f32 %v3146_v44, %v3145_v45  ;;  %v3211_v49 = vadd.f32 %v3210_v48, %v3209_v43  ;;  %v3148_v3 = vpop.f32.mrb[62].mxu1  ;;  %v3212_v52 = vpop.f32.mrb[62].mxu0 }
 0x174   : > { %v3149_v53 = vpop.f32.mrb[63].mxu1  ;;  %v3213_v59 = vpop.f32.mrb[63].mxu0 }
 0x175   : > { %v4013_v37 = vadd.f32 %v3147_v50, %v1652_v42  ;;  %v3150_v17 = vadd.f32 %v3149_v53, %v3148_v3  ;;  %v3214_v0 = vadd.f32 %v3213_v59, %v3212_v52  ;;  %v4016_v1 = vadd.f32 %v3211_v49, %v3925_v33 }
 0x176   : > { %v1663_v33 = vadd.f32 %v3878_v51, %v3895_v24  ;;  %v1668_v51 = vadd.f32 %v3880_v58, %v3895_v24 }
 0x177   : > { %v4018_v40 = vadd.f32 %v3150_v17, %v1655_v13  ;;  %v4021_v22 = vadd.f32 %v3214_v0, %v3927_v36 }
 0x179   : > { %v3151_v5 = vpop.f32.mrb[64].mxu1  ;;  %v3215_v12 = vpop.f32.mrb[64].mxu0 }
 0x17a   : > { %v3152_v38 = vpop.f32.mrb[65].mxu1  ;;  %v3216_v26 = vpop.f32.mrb[65].mxu0 }
 0x17b   : > { %v3153_v19 = vadd.f32 %v3152_v38, %v3151_v5  ;;  %v3217_v62 = vadd.f32 %v3216_v26, %v3215_v12  ;;  %v3154_v20 = vpop.f32.mrb[66].mxu1  ;;  %v3218_v25 = vpop.f32.mrb[66].mxu0 }
 0x17c   : > { %v3155_v4 = vpop.f32.mrb[67].mxu1  ;;  %v3219_v55 = vpop.f32.mrb[67].mxu0 }
 0x17d   : > { %v4027_v27 = vadd.f32 %v3153_v19, %v1660_v30  ;;  %v3156_v36 = vadd.f32 %v3155_v4, %v3154_v20  ;;  %v3220_v34 = vadd.f32 %v3219_v55, %v3218_v25  ;;  %v4030_v60 = vadd.f32 %v3217_v62, %v3934_v54 }
 0x17e   : > { %v1671_v54 = vadd.f32 %v3882_v63, %v3895_v24  ;;  %v1676_v63 = vadd.f32 %v3884_v6, %v3895_v24 }
 0x17f   : > { %v4032_v47 = vadd.f32 %v3156_v36, %v1663_v33  ;;  %v4035_v46 = vadd.f32 %v3220_v34, %v3936_v61 }
 0x181   : > { %v3157_v45 = vpop.f32.mrb[68].mxu1  ;;  %v3221_v43 = vpop.f32.mrb[68].mxu0 }
 0x182   : > { %v3158_v44 = vpop.f32.mrb[69].mxu1  ;;  %v3222_v48 = vpop.f32.mrb[69].mxu0 }
 0x183   : > { %v3159_v42 = vadd.f32 %v3158_v44, %v3157_v45  ;;  %v3223_v50 = vadd.f32 %v3222_v48, %v3221_v43  ;;  %v3160_v49 = vpop.f32.mrb[70].mxu1  ;;  %v3224_v3 = vpop.f32.mrb[70].mxu0 }
 0x184   : > { %v3161_v52 = vpop.f32.mrb[71].mxu1  ;;  %v3225_v13 = vpop.f32.mrb[71].mxu0 }
 0x185   : > { %v4041_v53 = vadd.f32 %v3159_v42, %v1668_v51  ;;  %v3162_v61 = vadd.f32 %v3161_v52, %v3160_v49  ;;  %v3226_v59 = vadd.f32 %v3225_v13, %v3224_v3  ;;  %v4044_v17 = vadd.f32 %v3223_v50, %v3943_v15 }
 0x186   : > { %v1679_v15 = vadd.f32 %v3886_v11, %v3895_v24  ;;  %v1684_v11 = vadd.f32 %v3888_v18, %v3895_v24 }
 0x187   : > { %v4046_v0 = vadd.f32 %v3162_v61, %v1671_v54  ;;  %v4049_v58 = vadd.f32 %v3226_v59, %v3945_v21 }
 0x189   : > { %v3163_v5 = vpop.f32.mrb[72].mxu1  ;;  %v3227_v12 = vpop.f32.mrb[72].mxu0 }
 0x18a   : > { %v3164_v38 = vpop.f32.mrb[73].mxu1  ;;  %v3228_v26 = vpop.f32.mrb[73].mxu0 }
 0x18b   : > { %v3165_v30 = vadd.f32 %v3164_v38, %v3163_v5  ;;  %v3229_v19 = vadd.f32 %v3228_v26, %v3227_v12  ;;  %v3166_v62 = vpop.f32.mrb[74].mxu1  ;;  %v3230_v20 = vpop.f32.mrb[74].mxu0 }
 0x18c   : > { %v3167_v25 = vpop.f32.mrb[75].mxu1  ;;  %v3231_v33 = vpop.f32.mrb[75].mxu0 }
 0x18d   : > { %v4055_v4 = vadd.f32 %v3165_v30, %v1676_v63  ;;  %v3168_v21 = vadd.f32 %v3167_v25, %v3166_v62  ;;  %v3232_v55 = vadd.f32 %v3231_v33, %v3230_v20  ;;  %v4058_v36 = vadd.f32 %v3229_v19, %v3952_v41 }
 0x18e   : > { %v1687_v41 = vadd.f32 %v3890_v23, %v3895_v24 }
 0x18f   : > { %v4060_v34 = vadd.f32 %v3168_v21, %v1679_v15  ;;  %v4063_v6 = vadd.f32 %v3232_v55, %v3956_v16 }
 0x191   : > { %v3169_v45 = vpop.f32.mrb[76].mxu1  ;;  %v3233_v43 = vpop.f32.mrb[76].mxu0 }
 0x192   : > { %v3170_v44 = vpop.f32.mrb[77].mxu1  ;;  %v3234_v48 = vpop.f32.mrb[77].mxu0 }
 0x193   : > { %v3171_v51 = vadd.f32 %v3170_v44, %v3169_v45  ;;  %v3235_v42 = vadd.f32 %v3234_v48, %v3233_v43  ;;  %v3172_v50 = vpop.f32.mrb[78].mxu1  ;;  %v3236_v49 = vpop.f32.mrb[78].mxu0 }
 0x194   : > { %v3173_v3 = vpop.f32.mrb[79].mxu1  ;;  %v3237_v54 = vpop.f32.mrb[79].mxu0 }
 0x195   : > { %v4069_v52 = vadd.f32 %v3171_v51, %v1684_v11  ;;  %v3174_v16 = vadd.f32 %v3173_v3, %v3172_v50  ;;  %v3238_v13 = vadd.f32 %v3237_v54, %v3236_v49  ;;  %v4072_v61 = vadd.f32 %v3235_v42, %v3963_v56 }
 0x197   : > { %v4074_v59 = vadd.f32 %v3174_v16, %v1687_v41  ;;  %v4077_v18 = vadd.f32 %v3238_v13, %v3967_v8 }
 0x199   : > { %v3239_v5 = vpop.f32.mrb[80].mxu0  ;;  %v3329_v12 = vpop.f32.mrb[80].mxu1 }
 0x19a   : > { %v2055_v38 = vadd.f32 %v3329_v12, %v3988_v2  ;;  %v3240_v23 = vpop.f32.mrb[81].mxu0  ;;  %v2046_v24 = vpop.f32.mrb[81].mxu1 }
 0x19b   : > { %v3241_v26 = vadd.f32 %v3240_v23, %v3239_v5  ;;  %v2047_v63 = vadd.f32 %v2046_v24, %v3975_v35  ;;  %v3242_v30 = vpop.f32.mrb[82].mxu0  ;;  %v3330_v19 = vpop.f32.mrb[82].mxu1 }
 0x19c   : > { %v2058_v56 = vadd.f32 %v3330_v19, %v3993_v9  ;;  %v3243_v62 = vpop.f32.mrb[83].mxu0  ;;  %v2049_v20 = vpop.f32.mrb[83].mxu1  ;;  %v2175_v33 = vmax.f32 %v2055_v38, 0.0 }
 0x19d   : > { %v3244_v15 = vadd.f32 %v3243_v62, %v3242_v30  ;;  %v2050_v8 = vadd.f32 %v2049_v20, %v3980_v39  ;;  %v4085_v25 = vadd.f32 %v3241_v26, %v3972_v31  ;;  %v2173_v21 = vmax.f32 %v2047_v63, 0.0 }
 0x19e   : > { %v2176_v2 = vmax.f32 %v2058_v56, 0.0 }
 0x19f   : > { %v2174_v35 = vmax.f32 %v2050_v8, 0.0  ;;  %v4093_v9 = vadd.f32 %v3244_v15, %v3977_v57 }
 0x1a0   : > { %v2864_v55 = vpack.c.bf16 %v2176_v2, %v2175_v33 }
 0x1a1   : > { %v2859_v45 = vpack.c.bf16 %v2174_v35, %v2173_v21  ;;  %v3245_v39 = vpop.f32.mrb[84].mxu0  ;;  %v3333_v43 = vpop.f32.mrb[84].mxu1 }
 0x1a2   : > { %2936 = vst [vmem:[%s4090_s11 + $0x8] sm:$0xff] %v2864_v55   ;;  %v2071_v31 = vadd.f32 %v3333_v43, %v4016_v1  ;;  %v3246_v44 = vpop.f32.mrb[85].mxu0  ;;  %v2062_v48 = vpop.f32.mrb[85].mxu1 }
 0x1a3   : > { %2860 = vst [vmem:[%s4090_s11] sm:$0xff] %v2859_v45   ;;  %v3247_v11 = vadd.f32 %v3246_v44, %v3245_v39  ;;  %v2063_v51 = vadd.f32 %v2062_v48, %v4002_v32  ;;  %v3248_v42 = vpop.f32.mrb[86].mxu0  ;;  %v3334_v50 = vpop.f32.mrb[86].mxu1 }
 0x1a4   : > { %v2074_v49 = vadd.f32 %v3334_v50, %v4021_v22  ;;  %v3249_v57 = vpop.f32.mrb[87].mxu0  ;;  %v2065_v41 = vpop.f32.mrb[87].mxu1  ;;  %v2179_v1 = vmax.f32 %v2071_v31, 0.0 }
 0x1a5   : > { %v3250_v3 = vadd.f32 %v3249_v57, %v3248_v42  ;;  %v2066_v54 = vadd.f32 %v2065_v41, %v4007_v29  ;;  %v1958_v16 = vadd.f32 %v3247_v11, %v3985_v14  ;;  %v2177_v5 = vmax.f32 %v2063_v51, 0.0 }
 0x1a6   : > { %v2180_v13 = vmax.f32 %v2074_v49, 0.0 }
 0x1a7   : > { %v2178_v12 = vmax.f32 %v2066_v54, 0.0  ;;  %v1961_v38 = vadd.f32 %v3250_v3, %v3990_v7 }
 0x1a8   : > { %v2874_v32 = vpack.c.bf16 %v2180_v13, %v2179_v1 }
 0x1a9   : > { %v2869_v23 = vpack.c.bf16 %v2178_v12, %v2177_v5  ;;  %v3251_v24 = vpop.f32.mrb[88].mxu0  ;;  %v3337_v26 = vpop.f32.mrb[88].mxu1 }
 0x1aa   : > { %2938 = vst [vmem:[%s4090_s11 + $0x18] sm:$0xff] %v2874_v32   ;;  %v2087_v22 = vadd.f32 %v3337_v26, %v4044_v17  ;;  %v3252_v63 = vpop.f32.mrb[89].mxu0  ;;  %v2078_v30 = vpop.f32.mrb[89].mxu1 }
 0x1ab   : > { %2937 = vst [vmem:[%s4090_s11 + $0x10] sm:$0xff] %v2869_v23   ;;  %v3253_v19 = vadd.f32 %v3252_v63, %v3251_v24  ;;  %v2079_v29 = vadd.f32 %v2078_v30, %v4030_v60  ;;  %v3254_v14 = vpop.f32.mrb[90].mxu0  ;;  %v3338_v56 = vpop.f32.mrb[90].mxu1 }
 0x1ac   : > { %v2090_v62 = vadd.f32 %v3338_v56, %v4049_v58  ;;  %v3255_v20 = vpop.f32.mrb[91].mxu0  ;;  %v2081_v7 = vpop.f32.mrb[91].mxu1  ;;  %v2183_v17 = vmax.f32 %v2087_v22, 0.0 }
 0x1ad   : > { %v3256_v15 = vadd.f32 %v3255_v20, %v3254_v14  ;;  %v2082_v8 = vadd.f32 %v2081_v7, %v4035_v46  ;;  %v4110_v33 = vadd.f32 %v3253_v19, %v3999_v28  ;;  %v2181_v21 = vmax.f32 %v2079_v29, 0.0 }
 0x1ae   : > { %v2184_v2 = vmax.f32 %v2090_v62, 0.0 }
 0x1af   : > { %v2182_v35 = vmax.f32 %v2082_v8, 0.0  ;;  %v4113_v60 = vadd.f32 %v3256_v15, %v4004_v10 }
 0x1b0   : > { %v2884_v55 = vpack.c.bf16 %v2184_v2, %v2183_v17 }
 0x1b1   : > { %v2879_v45 = vpack.c.bf16 %v2182_v35, %v2181_v21  ;;  %v3257_v39 = vpop.f32.mrb[92].mxu0  ;;  %v3341_v58 = vpop.f32.mrb[92].mxu1 }
 0x1b2   : > { %2940 = vst [vmem:[%s4090_s11 + $0x28] sm:$0xff] %v2884_v55   ;;  %v2103_v43 = vadd.f32 %v3341_v58, %v4072_v61  ;;  %v3258_v31 = vpop.f32.mrb[93].mxu0  ;;  %v2094_v44 = vpop.f32.mrb[93].mxu1 }
 0x1b3   : > { %2939 = vst [vmem:[%s4090_s11 + $0x20] sm:$0xff] %v2879_v45   ;;  %v3259_v46 = vadd.f32 %v3258_v31, %v3257_v39  ;;  %v2095_v28 = vadd.f32 %v2094_v44, %v4058_v36  ;;  %v3260_v48 = vpop.f32.mrb[94].mxu0  ;;  %v3342_v11 = vpop.f32.mrb[94].mxu1 }
 0x1b4   : > { %v2106_v51 = vadd.f32 %v3342_v11, %v4077_v18  ;;  %v3261_v10 = vpop.f32.mrb[95].mxu0  ;;  %v2097_v42 = vpop.f32.mrb[95].mxu1  ;;  %v2187_v61 = vmax.f32 %v2103_v43, 0.0 }
 0x1b5   : > { %v3262_v50 = vadd.f32 %v3261_v10, %v3260_v48  ;;  %v2098_v49 = vadd.f32 %v2097_v42, %v4063_v6  ;;  %v1974_v57 = vadd.f32 %v3259_v46, %v4013_v37  ;;  %v2185_v3 = vmax.f32 %v2095_v28, 0.0 }
 0x1b6   : > { %v2188_v41 = vmax.f32 %v2106_v51, 0.0 }
 0x1b7   : > { %v2186_v54 = vmax.f32 %v2098_v49, 0.0  ;;  %v1977_v1 = vadd.f32 %v3262_v50, %v4018_v40 }
 0x1b8   : > { %v2894_v36 = vpack.c.bf16 %v2188_v41, %v2187_v61 }
 0x1b9   : > { %v2889_v13 = vpack.c.bf16 %v2186_v54, %v2185_v3  ;;  %v3263_v5 = vpop.f32.mrb[96].mxu0  ;;  %v3345_v12 = vpop.f32.mrb[96].mxu1 }
 0x1ba   : > { %2942 = vst [vmem:[%s4090_s11 + $0x38] sm:$0xff] %v2894_v36   ;;  %v2119_v18 = vadd.f32 %v3345_v12, %v1958_v16  ;;  %v3264_v32 = vpop.f32.mrb[97].mxu0  ;;  %v2110_v23 = vpop.f32.mrb[97].mxu1 }
 0x1bb   : > { %2941 = vst [vmem:[%s4090_s11 + $0x30] sm:$0xff] %v2889_v13   ;;  %v3265_v24 = vadd.f32 %v3264_v32, %v3263_v5  ;;  %v2111_v6 = vadd.f32 %v2110_v23, %v4085_v25  ;;  %v3266_v26 = vpop.f32.mrb[98].mxu0  ;;  %v3346_v37 = vpop.f32.mrb[98].mxu1 }
 0x1bc   : > { %v2122_v22 = vadd.f32 %v3346_v37, %v1961_v38  ;;  %v3267_v63 = vpop.f32.mrb[99].mxu0  ;;  %v2113_v30 = vpop.f32.mrb[99].mxu1  ;;  %v2191_v14 = vmax.f32 %v2119_v18, 0.0 }
 0x1bd   : > { %v3268_v19 = vadd.f32 %v3267_v63, %v3266_v26  ;;  %v2114_v40 = vadd.f32 %v2113_v30, %v4093_v9  ;;  %v1982_v29 = vadd.f32 %v3265_v24, %v4027_v27  ;;  %v2189_v56 = vmax.f32 %v2111_v6, 0.0 }
 0x1be   : > { %v2192_v16 = vmax.f32 %v2122_v22, 0.0 }
 0x1bf   : > { %v2190_v62 = vmax.f32 %v2114_v40, 0.0  ;;  %v1985_v20 = vadd.f32 %v3268_v19, %v4032_v47 }
 0x1c0   : > { %v2904_v7 = vpack.c.bf16 %v2192_v16, %v2191_v14 }
 0x1c1   : > { %v2899_v25 = vpack.c.bf16 %v2190_v62, %v2189_v56  ;;  %v3269_v15 = vpop.f32.mrb[100].mxu0  ;;  %v3349_v8 = vpop.f32.mrb[100].mxu1 }
 0x1c2   : > { %2944 = vst [vmem:[%s4090_s11 + $0x48] sm:$0xff] %v2904_v7   ;;  %v2135_v38 = vadd.f32 %v3349_v8, %v1974_v57  ;;  %v3270_v17 = vpop.f32.mrb[101].mxu0  ;;  %v2126_v2 = vpop.f32.mrb[101].mxu1 }
 0x1c3   : > { %2943 = vst [vmem:[%s4090_s11 + $0x40] sm:$0xff] %v2899_v25   ;;  %v3271_v21 = vadd.f32 %v3270_v17, %v3269_v15  ;;  %v2127_v9 = vadd.f32 %v2126_v2, %v4110_v33  ;;  %v3272_v35 = vpop.f32.mrb[102].mxu0  ;;  %v3350_v27 = vpop.f32.mrb[102].mxu1 }
 0x1c4   : > { %v2138_v55 = vadd.f32 %v3350_v27, %v1977_v1  ;;  %v3273_v45 = vpop.f32.mrb[103].mxu0  ;;  %v2129_v39 = vpop.f32.mrb[103].mxu1  ;;  %v2195_v31 = vmax.f32 %v2135_v38, 0.0 }
 0x1c5   : > { %v3274_v58 = vadd.f32 %v3273_v45, %v3272_v35  ;;  %v2130_v47 = vadd.f32 %v2129_v39, %v4113_v60  ;;  %v1990_v43 = vadd.f32 %v3271_v21, %v4041_v53  ;;  %v2193_v46 = vmax.f32 %v2127_v9, 0.0 }
 0x1c6   : > { %v2196_v44 = vmax.f32 %v2138_v55, 0.0 }
 0x1c7   : > { %v2194_v28 = vmax.f32 %v2130_v47, 0.0  ;;  %v1993_v48 = vadd.f32 %v3274_v58, %v4046_v0 }
 0x1c8   : > { %v2914_v11 = vpack.c.bf16 %v2196_v44, %v2195_v31 }
 0x1c9   : > { %v2909_v33 = vpack.c.bf16 %v2194_v28, %v2193_v46  ;;  %v3275_v51 = vpop.f32.mrb[104].mxu0  ;;  %v3353_v10 = vpop.f32.mrb[104].mxu1 }
 0x1ca   : > { %2946 = vst [vmem:[%s4090_s11 + $0x58] sm:$0xff] %v2914_v11   ;;  %v2151_v42 = vadd.f32 %v3353_v10, %v1990_v43  ;;  %v3276_v50 = vpop.f32.mrb[105].mxu0  ;;  %v2142_v49 = vpop.f32.mrb[105].mxu1 }
 0x1cb   : > { %2945 = vst [vmem:[%s4090_s11 + $0x50] sm:$0xff] %v2909_v33   ;;  %v3277_v57 = vadd.f32 %v3276_v50, %v3275_v51  ;;  %v2143_v61 = vadd.f32 %v2142_v49, %v1982_v29  ;;  %v3278_v60 = vpop.f32.mrb[106].mxu0  ;;  %v3354_v41 = vpop.f32.mrb[106].mxu1 }
 0x1cc   : > { %v2154_v53 = vadd.f32 %v3354_v41, %v1993_v48  ;;  %v3279_v3 = vpop.f32.mrb[107].mxu0  ;;  %v2145_v54 = vpop.f32.mrb[107].mxu1  ;;  %v2199_v13 = vmax.f32 %v2151_v42, 0.0 }
 0x1cd   : > { %v3280_v1 = vadd.f32 %v3279_v3, %v3278_v60  ;;  %v2146_v0 = vadd.f32 %v2145_v54, %v1985_v20  ;;  %v1998_v36 = vadd.f32 %v3277_v57, %v4055_v4  ;;  %v2197_v12 = vmax.f32 %v2143_v61, 0.0 }
 0x1ce   : > { %v2200_v5 = vmax.f32 %v2154_v53, 0.0 }
 0x1cf   : > { %v2198_v18 = vmax.f32 %v2146_v0, 0.0  ;;  %v2001_v32 = vadd.f32 %v3280_v1, %v4060_v34 }
 0x1d0   : > { %v2924_v23 = vpack.c.bf16 %v2200_v5, %v2199_v13 }
 0x1d1   : > { %v2919_v24 = vpack.c.bf16 %v2198_v18, %v2197_v12  ;;  %v3281_v6 = vpop.f32.mrb[108].mxu0  ;;  %v3357_v26 = vpop.f32.mrb[108].mxu1 }
 0x1d2   : > { %2948 = vst [vmem:[%s4090_s11 + $0x68] sm:$0xff] %v2924_v23   ;;  %v3282_v37 = vpop.f32.mrb[109].mxu0  ;;  %v2158_v22 = vpop.f32.mrb[109].mxu1 }
 0x1d3   : > { %2947 = vst [vmem:[%s4090_s11 + $0x60] sm:$0xff] %v2919_v24   ;;  %v3283_v63 = vadd.f32 %v3282_v37, %v3281_v6  ;;  %v2159_v30 = vadd.f32 %v2158_v22, %v1998_v36  ;;  %v3284_v19 = vpop.f32.mrb[110].mxu0  ;;  %v3358_v40 = vpop.f32.mrb[110].mxu1 }
 0x1d4   : > { %v3285_v4 = vpop.f32.mrb[111].mxu0  ;;  %v2161_v29 = vpop.f32.mrb[111].mxu1 }
 0x1d5   : > { %v2006_v14 = vadd.f32 %v3283_v63, %v4069_v52  ;;  %v3286_v16 = vadd.f32 %v3285_v4, %v3284_v19  ;;  %v2162_v34 = vadd.f32 %v2161_v29, %v2001_v32  ;;  %v2201_v62 = vmax.f32 %v2159_v30, 0.0 }
 0x1d7   : > { %v2167_v56 = vadd.f32 %v3357_v26, %v2006_v14  ;;  %v2009_v20 = vadd.f32 %v3286_v16, %v4074_v59  ;;  %v2202_v7 = vmax.f32 %v2162_v34, 0.0 }
 0x1d9   : > { %v2170_v25 = vadd.f32 %v3358_v40, %v2009_v20  ;;  %v2929_v15 = vpack.c.bf16 %v2202_v7, %v2201_v62  ;;  %v2203_v8 = vmax.f32 %v2167_v56, 0.0 }
 0x1db   : > { %v2204_v38 = vmax.f32 %v2170_v25, 0.0  ;;  %2949 = vst [vmem:[%s4090_s11 + $0x70] sm:$0xff] %v2929_v15  }
 0x1dd   : > { %v2934_v17 = vpack.c.bf16 %v2204_v38, %v2203_v8 }
 0x1df   : > { %2950 = vst [vmem:[%s4090_s11 + $0x78] sm:$0xff] %v2934_v17  }
 0x1e0 PF: > { %s13_s12 = sadd.s32 1, %s3558_s12  }
 0x1e1   : > { %p10_p4 = scmp.ge.s32.totalorder %s13_s12, 4  }
 0x1e3   :  { %12 = sbr.rel (!%p10_p4) target bundleno = 1 (0x1), region = 68 }

</bundles_post_ra>
